<compile_context>
chip_gen: v7x
topology: tpu7x:2x2x1
jax: 0.10.0
libtpu: 0.0.40
codegen_flags: <defaults>
</compile_context>

<pallas_src>
import functools
import math

import jax
import jax.numpy as jnp
import numpy as np
from jax import lax
from jax.experimental import pallas as pl
from jax.experimental.pallas import tpu as pltpu

EPS = 1e-6                     # RMSNorm epsilon (LLaMA default)
STATS_ROWS = 8                 # sublane-padded height of the per-tile router-stats slab
STATS_LANES = 128              # lane-padded width of the per-tile router-stats slab
VMEM_LIMIT_BYTES = 48 * 1024 * 1024   # explicit scoped-VMEM budget (fits v7x 64 MiB)


def _rms_norm(x, w):
    var = jnp.mean(x * x, axis=-1, keepdims=True)
    return x * lax.rsqrt(var + EPS) * w


def _pick_tile(n, cap):
    """MXU-friendly tile: prefer 256-, then 128-, then 8-aligned divisors of n, and
    prefer leaving >=2 tiles so both v7x TensorCores get work."""
    for want_multi in (True, False):
        for align in (256, 128, 8):
            cands = [c for c in range(align, min(n, cap) + 1, align)
                     if n % c == 0 and (not want_multi or n // c >= 2)]
            if cands:
                return max(cands)
    return n


def _pick_col(n, cap=2048):
    """Weight-streaming column chunk: largest 256- (then 128-) aligned divisor <= cap."""
    for align in (256, 128):
        cands = [c for c in range(align, min(n, cap) + 1, align) if n % c == 0]
        if cands:
            return max(cands)
    return n


# --------------------------- kernel 1: RMSNorm + fused QKV ----------------------------
def qkv_proj_kernel(x_ref, ln1_ref, wqkv_ref, qkv_ref, h_sc):
    # post-LN activations computed once per token tile (j == 0) and cached in VMEM.
    @pl.when(pl.program_id(1) == 0)
    def _ln():
        h_sc[...] = _rms_norm(x_ref[...], ln1_ref[...]).astype(jnp.bfloat16)

    qkv_ref[...] = jnp.dot(h_sc[...], wqkv_ref[...],
                           preferred_element_type=jnp.float32).astype(qkv_ref.dtype)


# --------------------------- kernel 2: flash attention --------------------------------
def flash_attn_kernel(q_ref, k_ref, v_ref, o_ref, m_sc, l_sc, acc_sc,
                      *, num_heads, scale):
    # TODO(synk): RoPE / attention_mask / KV-cache not applied (matches the
    #             attention_mask=None reference path of the module).
    # TODO(synk): per-head 2-D matmuls kept for lowering robustness; a head-batched
    #             dot_general would further improve MXU utilisation when dH < 128.
    ki = pl.program_id(2)
    nk = pl.num_programs(2)

    @pl.when(ki == 0)
    def _init():
        m_sc[...] = jnp.full_like(m_sc, -jnp.inf)
        l_sc[...] = jnp.zeros_like(l_sc)
        acc_sc[...] = jnp.zeros_like(acc_sc)

    for h in range(num_heads):                       # static unroll over heads
        q = q_ref[0, :, 0, h, :]                     # (tq, dH) bf16
        k = k_ref[0, :, 0, h, :]                     # (tk, dH) bf16
        v = v_ref[0, :, 0, h, :]                     # (tk, dH) bf16
        s = lax.dot_general(q, k, (((1,), (1,)), ((), ())),
                            preferred_element_type=jnp.float32) * scale   # (tq, tk)
        m_prev = m_sc[h]                             # (tq, 1)
        m_new = jnp.maximum(m_prev, jnp.max(s, axis=-1, keepdims=True))
        alpha = jnp.exp(m_prev - m_new)
        p = jnp.exp(s - m_new)
        l_sc[h] = alpha * l_sc[h] + jnp.sum(p, axis=-1, keepdims=True)
        acc_sc[h] = alpha * acc_sc[h] + jnp.dot(p.astype(v.dtype), v,
                                                preferred_element_type=jnp.float32)
        m_sc[h] = m_new

    @pl.when(ki == nk - 1)
    def _store():
        for h in range(num_heads):
            out = acc_sc[h] * pl.reciprocal(l_sc[h], approx=True)       # (tq, dH)
            o_ref[0, :, h, :] = out.astype(o_ref.dtype)                  # concat layout


# ------------------ kernel 3a: Wo (column-tiled) + residual + router ------------------
def attn_out_router_kernel(x_ref, ctx_ref, wo_ref, ln2_ref, wr_ref, br_ref,
                           hid_ref, h2_ref, chosen_ref, stats_ref, *, tnh):
    j = pl.program_id(1)
    nj = pl.num_programs(1)

    # attention output projection for this Wo column chunk + first residual; the
    # resident (tile, H) output block doubles as the accumulator across chunks.
    chunk = jnp.dot(ctx_ref[...], wo_ref[...], preferred_element_type=jnp.float32)
    if tnh == hid_ref.shape[1]:                      # single chunk: static full store
        hid_ref[...] = x_ref[...] + chunk
    else:                                            # general: dynamic column slab
        hid_ref[:, pl.ds(j * tnh, tnh)] = x_ref[...] + chunk

    @pl.when(j == nj - 1)
    def _router():
        hidden = hid_ref[...]                        # (tile, H) f32, fully assembled
        h2 = _rms_norm(hidden, ln2_ref[...])
        h2_ref[...] = h2.astype(jnp.bfloat16)

        logits = (jnp.dot(h2, wr_ref[...], preferred_element_type=jnp.float32)
                  + br_ref[...])                     # (tile, E) f32
        tile, E = logits.shape
        m = jnp.max(logits, axis=-1, keepdims=True)
        el = jnp.exp(logits - m)
        denom = jnp.sum(el, axis=-1, keepdims=True)
        probs = el / denom
        lse = m + jnp.log(denom)

        # first-argmax over logits (== argmax over probs)
        iota_e = lax.broadcasted_iota(jnp.int32, (tile, E), 1)
        chosen = jnp.min(jnp.where(logits == m, iota_e, E), axis=-1, keepdims=True)
        chosen_ref[...] = chosen

        # fused router statistics for the aux losses (lane-dense (8,128) slab)
        onehot = (chosen == iota_e).astype(jnp.float32)
        stats_ref[...] = jnp.zeros((STATS_ROWS, STATS_LANES), jnp.float32)
        stats_ref[0:1, 0:E] = jnp.sum(onehot, axis=0, keepdims=True)
        stats_ref[1:2, 0:E] = jnp.sum(probs, axis=0, keepdims=True)
        stats_ref[2:3, 0:1] = jnp.sum(lse * lse, axis=0, keepdims=True)


# ------------------ kernel 3b: grouped top-1 expert SwiGLU (sorted tokens) ------------
def expert_ffn_kernel(widx_e_ref, widx_i_ref, needed_ref,          # scalar prefetch
                      chosen_ref, h2_ref, wg_ref, wu_ref, wd_ref,  # inputs
                      out_ref, *, num_experts):                    # output (accumulator)
    t = pl.program_id(0)
    e = pl.program_id(1)
    i = pl.program_id(2)

    @pl.when(jnp.logical_and(e == 0, i == 0))
    def _init():
        out_ref[...] = jnp.zeros_like(out_ref)

    # skip compute entirely when no token of this (sorted) tile routed to expert e;
    # the weight index_maps also repeat the previous block then, so no DMA is issued.
    @pl.when(needed_ref[t * num_experts + e] == 1)
    def _expert():
        mask = (chosen_ref[...] == e).astype(jnp.float32)           # (tile_g, 1)
        h2b = h2_ref[...]                                           # (tile_g, H) bf16
        gate = jnp.dot(h2b, wg_ref[0], preferred_element_type=jnp.float32)
        up = jnp.dot(h2b, wu_ref[0], preferred_element_type=jnp.float32)
        act = gate * pl.reciprocal(1.0 + jnp.exp(-gate), approx=True) * up   # SiLU*up
        down = jnp.dot(act.astype(jnp.bfloat16), wd_ref[0],
                       preferred_element_type=jnp.float32)          # (tile_g, H)
        out_ref[...] = out_ref[...] + mask * down


# --------------------------------- parameter packing ----------------------------------
def pack_params(p):
    """One-time packing: fused QKV concat + bf16 casts (hoisted out of the forward)."""
    return dict(
        ln1=p['ln1'], ln2=p['ln2'], wr=p['wr'], br=p['br'],
        wqkv=jnp.concatenate([p['wq'], p['wk'], p['wv']], axis=1).astype(jnp.bfloat16),
        wo=p['wo'].astype(jnp.bfloat16),
        wg=p['wg'].astype(jnp.bfloat16),
        wu=p['wu'].astype(jnp.bfloat16),
        wd=p['wd'].astype(jnp.bfloat16),
    )


# --------------------------------------- forward --------------------------------------
@functools.partial(jax.jit, static_argnames=("num_heads", "num_experts"))
def moe_decoder_forward(x, p, *, num_heads, num_experts):
    B, S, H = x.shape
    assert H % num_heads == 0
    dH = H // num_heads
    T = B * S
    E = num_experts
    assert E <= STATS_LANES
    inter = p['wg'].shape[-1]
    scale = 1.0 / math.sqrt(dH)

    tile = _pick_tile(T, 512)            # token tile (kernels 1 / 3a)
    num_tiles = T // tile
    tn3 = _pick_col(3 * H)               # QKV weight/output column chunk
    n3_tiles = (3 * H) // tn3
    tnh = _pick_col(H)                   # Wo weight/output column chunk
    nh_tiles = H // tnh
    tq = _pick_tile(S, 256)              # attention q tile
    tk = _pick_tile(S, 256)              # attention kv tile
    nq, nk = S // tq, S // tk
    tile_g = _pick_tile(T, 512)          # grouped-MoE token tile (sorted order)
    num_gt = T // tile_g
    ti = _pick_col(inter)                # expert inter chunk
    num_i = inter // ti

    xf = x.reshape(T, H)

    # ---- kernel 1: RMSNorm + fused QKV projection (weight streamed over 3H) ----------
    qkv = pl.pallas_call(
        qkv_proj_kernel,
        grid=(num_tiles, n3_tiles),
        in_specs=[pl.BlockSpec((tile, H), lambda t, j: (t, 0)),
                  pl.BlockSpec((1, H), lambda t, j: (0, 0)),
                  pl.BlockSpec((H, tn3), lambda t, j: (0, j))],
        out_specs=pl.BlockSpec((tile, tn3), lambda t, j: (t, j)),
        out_shape=jax.ShapeDtypeStruct((T, 3 * H), jnp.bfloat16),
        scratch_shapes=[pltpu.VMEM((tile, H), jnp.bfloat16)],
        compiler_params=pltpu.CompilerParams(
            dimension_semantics=("parallel", "arbitrary"),
            vmem_limit_bytes=VMEM_LIMIT_BYTES),
    )(xf, p['ln1'], p['wqkv'])

    # free reshape: (T, 3H) -> (B, S, 3, nh, dH); no head transposes anywhere.
    qkv5 = qkv.reshape(B, S, 3, num_heads, dH)

    # ---- kernel 2: flash attention, all heads per step, lane-dense output store ------
    ctx = pl.pallas_call(
        functools.partial(flash_attn_kernel, num_heads=num_heads, scale=scale),
        grid=(B, nq, nk),
        in_specs=[
            pl.BlockSpec((1, tq, 1, num_heads, dH), lambda b, qi, ki: (b, qi, 0, 0, 0)),
            pl.BlockSpec((1, tk, 1, num_heads, dH), lambda b, qi, ki: (b, ki, 1, 0, 0)),
            pl.BlockSpec((1, tk, 1, num_heads, dH), lambda b, qi, ki: (b, ki, 2, 0, 0)),
        ],
        out_specs=pl.BlockSpec((1, tq, num_heads, dH), lambda b, qi, ki: (b, qi, 0, 0)),
        out_shape=jax.ShapeDtypeStruct((B, S, num_heads, dH), jnp.bfloat16),
        scratch_shapes=[pltpu.VMEM((num_heads, tq, 1), jnp.float32),
                        pltpu.VMEM((num_heads, tq, 1), jnp.float32),
                        pltpu.VMEM((num_heads, tq, dH), jnp.float32)],
        compiler_params=pltpu.CompilerParams(
            dimension_semantics=("parallel", "parallel", "arbitrary"),
            vmem_limit_bytes=VMEM_LIMIT_BYTES),
    )(qkv5, qkv5, qkv5)

    ctx_flat = ctx.reshape(T, H)        # free reshape: heads are already concatenated

    # ---- kernel 3a: Wo (column-tiled) + residual + RMSNorm + router + fused stats ----
    hid, h2, chosen, stats = pl.pallas_call(
        functools.partial(attn_out_router_kernel, tnh=tnh),
        grid=(num_tiles, nh_tiles),
        in_specs=[
            pl.BlockSpec((tile, tnh), lambda t, j: (t, j)),     # residual x chunk
            pl.BlockSpec((tile, H), lambda t, j: (t, 0)),       # attention context
            pl.BlockSpec((H, tnh), lambda t, j: (0, j)),        # Wo column chunk
            pl.BlockSpec((1, H), lambda t, j: (0, 0)),          # ln2
            pl.BlockSpec((H, E), lambda t, j: (0, 0)),          # router W
            pl.BlockSpec((1, E), lambda t, j: (0, 0)),          # router b
        ],
        out_specs=[
            pl.BlockSpec((tile, H), lambda t, j: (t, 0)),
            pl.BlockSpec((tile, H), lambda t, j: (t, 0)),
            pl.BlockSpec((tile, 1), lambda t, j: (t, 0)),
            pl.BlockSpec((STATS_ROWS, STATS_LANES), lambda t, j: (t, 0)),
        ],
        out_shape=[
            jax.ShapeDtypeStruct((T, H), jnp.float32),            # post-attn residual
            jax.ShapeDtypeStruct((T, H), jnp.bfloat16),            # post-LN expert input
            jax.ShapeDtypeStruct((T, 1), jnp.int32),               # chosen expert ids
            jax.ShapeDtypeStruct((num_tiles * STATS_ROWS, STATS_LANES), jnp.float32),
        ],
        compiler_params=pltpu.CompilerParams(
            dimension_semantics=("parallel", "arbitrary"),
            vmem_limit_bytes=VMEM_LIMIT_BYTES),
    )(xf, ctx_flat, p['wo'], p['ln2'], p['wr'], p['br'])

    # ---- wrapper routing: sort tokens by expert + grouped-matmul metadata ------------
    chosen_tok = chosen[:, 0]
    order = jnp.argsort(chosen_tok)
    inv_order = jnp.zeros((T,), jnp.int32).at[order].set(jnp.arange(T, dtype=jnp.int32))
    h2_sorted = jnp.take(h2, order, axis=0)
    chosen_sorted = jnp.take(chosen_tok, order, axis=0)

    ch_tiles = chosen_sorted.reshape(num_gt, tile_g)
    needed = jnp.any(
        ch_tiles[:, :, None] == jnp.arange(E, dtype=jnp.int32)[None, None, :],
        axis=1)                                                     # (num_gt, E) bool
    needed_flat = needed.reshape(-1).astype(jnp.int32)

    # forward-filled (expert, inter-chunk) weight block indices over the flattened
    # (tile, expert, chunk) grid-step order: skipped experts repeat the previous block
    # (Pallas elides the weight DMA); needed steps always resolve to their own (e, i).
    steps = num_gt * E * num_i
    flat_e = jnp.repeat(jnp.tile(jnp.arange(E, dtype=jnp.int32), num_gt), num_i)
    flat_i = jnp.tile(jnp.arange(num_i, dtype=jnp.int32), num_gt * E)
    flat_needed = jnp.repeat(needed.reshape(-1), num_i)
    step_id = jnp.arange(steps, dtype=jnp.int32)
    last_needed = jnp.maximum(
        lax.cummax(jnp.where(flat_needed, step_id, -1), axis=0), 0)
    widx_e = jnp.take(flat_e, last_needed).astype(jnp.int32)
    widx_i = jnp.take(flat_i, last_needed).astype(jnp.int32)

    # ---- kernel 3b: grouped top-1 expert SwiGLU over sorted tokens --------------------
    expert_sorted = pl.pallas_call(
        functools.partial(expert_ffn_kernel, num_experts=E),
        grid_spec=pltpu.PrefetchScalarGridSpec(
            num_scalar_prefetch=3,
            grid=(num_gt, E, num_i),
            in_specs=[
                pl.BlockSpec((tile_g, 1), lambda t, e, i, we, wi, nd: (t, 0)),
                pl.BlockSpec((tile_g, H), lambda t, e, i, we, wi, nd: (t, 0)),
                pl.BlockSpec((1, H, ti),
                             lambda t, e, i, we, wi, nd:
                             (we[(t * E + e) * num_i + i], 0,
                              wi[(t * E + e) * num_i + i])),         # gate_proj chunk
                pl.BlockSpec((1, H, ti),
                             lambda t, e, i, we, wi, nd:
                             (we[(t * E + e) * num_i + i], 0,
                              wi[(t * E + e) * num_i + i])),         # up_proj chunk
                pl.BlockSpec((1, ti, H),
                             lambda t, e, i, we, wi, nd:
                             (we[(t * E + e) * num_i + i],
                              wi[(t * E + e) * num_i + i], 0)),      # down_proj chunk
            ],
            out_specs=pl.BlockSpec((tile_g, H), lambda t, e, i, we, wi, nd: (t, 0)),
        ),
        out_shape=jax.ShapeDtypeStruct((T, H), jnp.float32),
        compiler_params=pltpu.CompilerParams(
            dimension_semantics=("parallel", "arbitrary", "arbitrary"),
            vmem_limit_bytes=VMEM_LIMIT_BYTES),
    )(widx_e, widx_i, needed_flat,
      chosen_sorted[:, None], h2_sorted, p['wg'], p['wu'], p['wd'])

    # unsort the expert outputs and add the post-attention residual (fused by XLA).
    out = hid + jnp.take(expert_sorted, inv_order, axis=0)

    # tiny per-tile stats reduction -> aux losses (no (B,S,E) probs/logits HBM traffic)
    stats = stats.reshape(num_tiles, STATS_ROWS, STATS_LANES)
    counts = jnp.sum(stats[:, 0, :E], axis=0)
    psums = jnp.sum(stats[:, 1, :E], axis=0)
    lse2 = jnp.sum(stats[:, 2, 0])
    lb_loss = jnp.sum(counts / T * psums) * E
    z_loss = lse2 / T * E

    return out.reshape(B, S, H), lb_loss, z_loss


# ------------------------------ pure-JAX f32 reference --------------------------------
def reference(x, p, num_heads, num_experts):
    B, S, H = x.shape
    dH = H // num_heads

    def rms(v, w):
        return v * lax.rsqrt(jnp.mean(v * v, -1, keepdims=True) + EPS) * w

    res = x
    h = rms(x, p['ln1'])
    q, k, v = h @ p['wq'], h @ p['wk'], h @ p['wv']
    qh = q.reshape(B, S, num_heads, dH).transpose(0, 2, 1, 3)
    kh = k.reshape(B, S, num_heads, dH).transpose(0, 2, 1, 3)
    vh = v.reshape(B, S, num_heads, dH).transpose(0, 2, 1, 3)
    sc = jnp.einsum('bhqd,bhkd->bhqk', qh, kh) / jnp.sqrt(float(dH))
    a = jax.nn.softmax(sc, -1)
    ctx = jnp.einsum('bhqk,bhkd->bhqd', a, vh).transpose(0, 2, 1, 3).reshape(B, S, H)
    hidden = res + ctx @ p['wo']
    res2 = hidden
    h2 = rms(hidden, p['ln2'])
    logits = h2 @ p['wr'] + p['br']
    probs = jax.nn.softmax(logits, -1)
    chosen = jnp.argmax(probs, -1)
    eo = jnp.zeros_like(h2)
    for i in range(num_experts):
        g, u = h2 @ p['wg'][i], h2 @ p['wu'][i]
        d = (g * jax.nn.sigmoid(g) * u) @ p['wd'][i]
        eo = eo + (chosen == i)[..., None].astype(jnp.float32) * d
    out = res2 + eo
    total = B * S
    counts = jnp.array([jnp.sum(chosen == i) for i in range(num_experts)], jnp.float32)
    psum = jnp.sum(probs, axis=(0, 1))
    lb = jnp.sum(counts / total * psum) * num_experts
    lse = jax.nn.logsumexp(logits, -1)
    z = jnp.mean(lse ** 2) * num_experts
    return out, lb, z


if __name__ == "__main__":
    B, S, H = 2, 32, 32          # batch, seq, hidden
    NUM_HEADS = 4                # head_dim = 8
    INTER = 64                   # FFN intermediate size
    E = 4                        # num_experts

    key = jax.random.PRNGKey(0)
    ks = jax.random.split(key, 10)
    init = lambda k, shape: (0.02 * jax.random.normal(k, shape)).astype(jnp.float32)

    params = dict(
        ln1=jnp.ones((1, H), jnp.float32),
        ln2=jnp.ones((1, H), jnp.float32),
        wq=init(ks[0], (H, H)),
        wk=init(ks[1], (H, H)),
        wv=init(ks[2], (H, H)),
        wo=init(ks[3], (H, H)),
        wr=init(ks[4], (H, E)),
        br=jnp.zeros((1, E), jnp.float32),
        wg=init(ks[5], (E, H, INTER)),
        wu=init(ks[6], (E, H, INTER)),
        wd=init(ks[7], (E, INTER, H)),
    )
    x = jax.random.normal(ks[8], (B, S, H), dtype=jnp.float32)

    packed = pack_params(params)          # one-time weight packing (hoisted out of fwd)

    hidden, lb_loss, z_loss = moe_decoder_forward(
        x, packed, num_heads=NUM_HEADS, num_experts=E)
    jax.block_until_ready((hidden, lb_loss, z_loss))

    ref_hidden, ref_lb, ref_z = reference(x, params, NUM_HEADS, E)
    # bf16 MXU operands in the kernels vs f32 reference -> relaxed tolerances
    np.testing.assert_allclose(np.asarray(hidden), np.asarray(ref_hidden),
                               rtol=1e-2, atol=1e-2)
    np.testing.assert_allclose(np.asarray(lb_loss), np.asarray(ref_lb),
                               rtol=1e-2, atol=1e-2)
    np.testing.assert_allclose(np.asarray(z_loss), np.asarray(ref_z),
                               rtol=1e-2, atol=1e-2)

    print("KERNEL_OK")
</pallas_src>

<mosaic_0001>
module attributes {stable_mosaic.version = 11 : i64} {
  func.func @qkv_proj_kernel(%arg0: i32, %arg1: i32, %arg2: memref<32x32xf32, #tpu.memory_space<vmem>>, %arg3: memref<1x32xf32, #tpu.memory_space<vmem>>, %arg4: memref<32x96xbf16, #tpu.memory_space<vmem>>, %arg5: memref<32x96xbf16, #tpu.memory_space<vmem>>, %arg6: memref<32x32xbf16, #tpu.memory_space<vmem>>) attributes {dimension_semantics = [#tpu.dimension_semantics<parallel>, #tpu.dimension_semantics<arbitrary>], iteration_bounds = array<i64: 2, 1>, scalar_prefetch = 0 : i64, scratch_operands = 1 : i64, tpu.core_type = #tpu.core_type<tc>, window_params = [{transform_indices = @transform_0, window_bounds = array<i64: 32, 32>}, {pipeline_mode = #tpu.pipeline_mode<synchronous>, transform_indices = @transform_1, window_bounds = array<i64: 1, 32>}, {transform_indices = @transform_2, window_bounds = array<i64: 32, 96>}, {transform_indices = @transform_3, window_bounds = array<i64: 32, 96>}]} {
    %c0_i32 = arith.constant 0 : i32
    %0 = arith.cmpi eq, %arg1, %c0_i32 : i32
    %1 = arith.extui %0 : i1 to i32
    %c0_i32_0 = arith.constant 0 : i32
    %2 = arith.cmpi ne, %1, %c0_i32_0 : i32
    scf.if %2 {
      %c0_6 = arith.constant 0 : index
      %c0_7 = arith.constant 0 : index
      %8 = vector.load %arg2[%c0_6, %c0_7] : memref<32x32xf32, #tpu.memory_space<vmem>>, vector<32x32xf32>
      %c0_8 = arith.constant 0 : index
      %c0_9 = arith.constant 0 : index
      %9 = vector.load %arg3[%c0_8, %c0_9] : memref<1x32xf32, #tpu.memory_space<vmem>>, vector<1x32xf32>
      %10 = arith.mulf %8, %8 : vector<32x32xf32>
      %cst_10 = arith.constant dense<0.000000e+00> : vector<32xf32>
      %11 = vector.multi_reduction <add>, %10, %cst_10 [1] : vector<32x32xf32> to vector<32xf32>
      %12 = vector.shape_cast %11 : vector<32xf32> to vector<32x1xf32>
      %cst_11 = arith.constant 3.200000e+01 : f32
      %13 = vector.broadcast %cst_11 : f32 to vector<32x1xf32>
      %14 = arith.divf %12, %13 : vector<32x1xf32>
      %cst_12 = arith.constant 9.99999997E-7 : f32
      %15 = vector.broadcast %cst_12 : f32 to vector<32x1xf32>
      %16 = arith.addf %14, %15 : vector<32x1xf32>
      %17 = math.rsqrt %16 : vector<32x1xf32>
      %18 = vector.broadcast %17 : vector<32x1xf32> to vector<32x32xf32>
      %19 = arith.mulf %8, %18 : vector<32x32xf32>
      %20 = vector.broadcast %9 : vector<1x32xf32> to vector<32x32xf32>
      %21 = arith.mulf %19, %20 : vector<32x32xf32>
      %22 = arith.truncf %21 : vector<32x32xf32> to vector<32x32xbf16>
      %c0_13 = arith.constant 0 : index
      %c0_14 = arith.constant 0 : index
      %23 = vector.load %arg6[%c0_13, %c0_14] : memref<32x32xbf16, #tpu.memory_space<vmem>>, vector<32x32xbf16>
      tpu.vector_store %arg6[%c0_13, %c0_14], %22 {strides = array<i32>} : memref<32x32xbf16, #tpu.memory_space<vmem>>, vector<32x32xbf16>,
    } else {
    }
    %c0 = arith.constant 0 : index
    %c0_1 = arith.constant 0 : index
    %3 = vector.load %arg6[%c0, %c0_1] : memref<32x32xbf16, #tpu.memory_space<vmem>>, vector<32x32xbf16>
    %c0_2 = arith.constant 0 : index
    %c0_3 = arith.constant 0 : index
    %4 = vector.load %arg4[%c0_2, %c0_3] : memref<32x96xbf16, #tpu.memory_space<vmem>>, vector<32x96xbf16>
    %cst = arith.constant dense<0.000000e+00> : vector<32x96xf32>
    %5 = tpu.matmul %3, %4, %cst {dimension_numbers = #tpu.dot_dimension_numbers<[1], [0], [0], [1], [0, 0, 1, 1], [], []>} : vector<32x32xbf16>, vector<32x96xbf16>, vector<32x96xf32> -> vector<32x96xf32>
    %6 = arith.truncf %5 : vector<32x96xf32> to vector<32x96xbf16>
    %c0_4 = arith.constant 0 : index
    %c0_5 = arith.constant 0 : index
    %7 = vector.load %arg5[%c0_4, %c0_5] : memref<32x96xbf16, #tpu.memory_space<vmem>>, vector<32x96xbf16>
    tpu.vector_store %arg5[%c0_4, %c0_5], %6 {strides = array<i32>} : memref<32x96xbf16, #tpu.memory_space<vmem>>, vector<32x96xbf16>,
    return
  }
  func.func @transform_0(%arg0: i32, %arg1: i32) -> (i32, i32) {
    %c0_i32 = arith.constant 0 : i32
    %c0_i32_0 = arith.constant 0 : i32
    return %arg0, %c0_i32 : i32, i32
  }
  func.func @transform_1(%arg0: i32, %arg1: i32) -> (i32, i32) {
    %c0_i32 = arith.constant 0 : i32
    %c0_i32_0 = arith.constant 0 : i32
    %c0_i32_1 = arith.constant 0 : i32
    return %c0_i32, %c0_i32_0 : i32, i32
  }
  func.func @transform_2(%arg0: i32, %arg1: i32) -> (i32, i32) {
    %c0_i32 = arith.constant 0 : i32
    %c0_i32_0 = arith.constant 0 : i32
    return %c0_i32, %arg1 : i32, i32
  }
  func.func @transform_3(%arg0: i32, %arg1: i32) -> (i32, i32) {
    %c0_i32 = arith.constant 0 : i32
    return %arg0, %arg1 : i32, i32
  }
}

module attributes {stable_mosaic.version = 11 : i64} {
  func.func @flash_attn_kernel(%arg0: i32, %arg1: i32, %arg2: i32, %arg3: memref<1x16x1x4x8xbf16, #tpu.memory_space<vmem>>, %arg4: memref<1x16x1x4x8xbf16, #tpu.memory_space<vmem>>, %arg5: memref<1x16x1x4x8xbf16, #tpu.memory_space<vmem>>, %arg6: memref<1x16x4x8xbf16, #tpu.memory_space<vmem>>, %arg7: memref<4x16x1xf32, #tpu.memory_space<vmem>>, %arg8: memref<4x16x1xf32, #tpu.memory_space<vmem>>, %arg9: memref<4x16x8xf32, #tpu.memory_space<vmem>>) attributes {dimension_semantics = [#tpu.dimension_semantics<parallel>, #tpu.dimension_semantics<parallel>, #tpu.dimension_semantics<arbitrary>], iteration_bounds = array<i64: 2, 2, 2>, scalar_prefetch = 0 : i64, scratch_operands = 3 : i64, tpu.core_type = #tpu.core_type<tc>, window_params = [{transform_indices = @transform_0, window_bounds = array<i64: 1, 16, 1, 4, 8>}, {transform_indices = @transform_1, window_bounds = array<i64: 1, 16, 1, 4, 8>}, {transform_indices = @transform_2, window_bounds = array<i64: 1, 16, 1, 4, 8>}, {transform_indices = @transform_3, window_bounds = array<i64: 1, 16, 4, 8>}]} {
    %c0_i32 = arith.constant 0 : i32
    %0 = arith.cmpi eq, %arg2, %c0_i32 : i32
    %1 = arith.extui %0 : i1 to i32
    %c0_i32_0 = arith.constant 0 : i32
    %2 = arith.cmpi ne, %1, %c0_i32_0 : i32
    scf.if %2 {
      %cst_149 = arith.constant 0xFF800000 : f32
      %170 = vector.broadcast %cst_149 : f32 to vector<4x16x1xf32>
      %c0_150 = arith.constant 0 : index
      %c0_151 = arith.constant 0 : index
      %c0_152 = arith.constant 0 : index
      %171 = vector.load %arg7[%c0_150, %c0_151, %c0_152] : memref<4x16x1xf32, #tpu.memory_space<vmem>>, vector<4x16x1xf32>
      tpu.vector_store %arg7[%c0_150, %c0_151, %c0_152], %170 {strides = array<i32>} : memref<4x16x1xf32, #tpu.memory_space<vmem>>, vector<4x16x1xf32>,
      %cst_153 = arith.constant 0.000000e+00 : f32
      %172 = vector.broadcast %cst_153 : f32 to vector<4x16x1xf32>
      %c0_154 = arith.constant 0 : index
      %c0_155 = arith.constant 0 : index
      %c0_156 = arith.constant 0 : index
      %173 = vector.load %arg8[%c0_154, %c0_155, %c0_156] : memref<4x16x1xf32, #tpu.memory_space<vmem>>, vector<4x16x1xf32>
      tpu.vector_store %arg8[%c0_154, %c0_155, %c0_156], %172 {strides = array<i32>} : memref<4x16x1xf32, #tpu.memory_space<vmem>>, vector<4x16x1xf32>,
      %cst_157 = arith.constant 0.000000e+00 : f32
      %174 = vector.broadcast %cst_157 : f32 to vector<4x16x8xf32>
      %c0_158 = arith.constant 0 : index
      %c0_159 = arith.constant 0 : index
      %c0_160 = arith.constant 0 : index
      %175 = vector.load %arg9[%c0_158, %c0_159, %c0_160] : memref<4x16x8xf32, #tpu.memory_space<vmem>>, vector<4x16x8xf32>
      tpu.vector_store %arg9[%c0_158, %c0_159, %c0_160], %174 {strides = array<i32>} : memref<4x16x8xf32, #tpu.memory_space<vmem>>, vector<4x16x8xf32>,
    } else {
    }
    %c0 = arith.constant 0 : index
    %c0_1 = arith.constant 0 : index
    %c0_2 = arith.constant 0 : index
    %c0_3 = arith.constant 0 : index
    %c0_4 = arith.constant 0 : index
    %3 = vector.load %arg3[%c0, %c0_1, %c0_2, %c0_3, %c0_4] : memref<1x16x1x4x8xbf16, #tpu.memory_space<vmem>>, vector<1x16x1x1x8xbf16>
    %4 = vector.shape_cast %3 : vector<1x16x1x1x8xbf16> to vector<16x8xbf16>
    %c0_5 = arith.constant 0 : index
    %c0_6 = arith.constant 0 : index
    %c0_7 = arith.constant 0 : index
    %c0_8 = arith.constant 0 : index
    %c0_9 = arith.constant 0 : index
    %5 = vector.load %arg4[%c0_5, %c0_6, %c0_7, %c0_8, %c0_9] : memref<1x16x1x4x8xbf16, #tpu.memory_space<vmem>>, vector<1x16x1x1x8xbf16>
    %6 = vector.shape_cast %5 : vector<1x16x1x1x8xbf16> to vector<16x8xbf16>
    %c0_10 = arith.constant 0 : index
    %c0_11 = arith.constant 0 : index
    %c0_12 = arith.constant 0 : index
    %c0_13 = arith.constant 0 : index
    %c0_14 = arith.constant 0 : index
    %7 = vector.load %arg5[%c0_10, %c0_11, %c0_12, %c0_13, %c0_14] : memref<1x16x1x4x8xbf16, #tpu.memory_space<vmem>>, vector<1x16x1x1x8xbf16>
    %8 = vector.shape_cast %7 : vector<1x16x1x1x8xbf16> to vector<16x8xbf16>
    %cst = arith.constant dense<0.000000e+00> : vector<16x16xf32>
    %9 = tpu.matmul %4, %6, %cst {dimension_numbers = #tpu.dot_dimension_numbers<[1], [1], [0], [0], [0, 0, 1, 0], [], []>} : vector<16x8xbf16>, vector<16x8xbf16>, vector<16x16xf32> -> vector<16x16xf32>
    %cst_15 = arith.constant 0.353553385 : f32
    %10 = vector.broadcast %cst_15 : f32 to vector<16x16xf32>
    %11 = arith.mulf %9, %10 : vector<16x16xf32>
    %c0_16 = arith.constant 0 : index
    %c0_17 = arith.constant 0 : index
    %c0_18 = arith.constant 0 : index
    %12 = vector.load %arg7[%c0_16, %c0_17, %c0_18] : memref<4x16x1xf32, #tpu.memory_space<vmem>>, vector<1x16x1xf32>
    %13 = vector.shape_cast %12 : vector<1x16x1xf32> to vector<16x1xf32>
    %cst_19 = arith.constant dense<0xFF800000> : vector<16xf32>
    %14 = vector.multi_reduction <maximumf>, %11, %cst_19 [1] : vector<16x16xf32> to vector<16xf32>
    %15 = vector.shape_cast %14 : vector<16xf32> to vector<16x1xf32>
    %16 = arith.maximumf %13, %15 : vector<16x1xf32>
    %17 = arith.subf %13, %16 : vector<16x1xf32>
    %18 = math.exp %17 : vector<16x1xf32>
    %19 = vector.broadcast %16 : vector<16x1xf32> to vector<16x16xf32>
    %20 = arith.subf %11, %19 : vector<16x16xf32>
    %21 = math.exp %20 : vector<16x16xf32>
    %c0_20 = arith.constant 0 : index
    %c0_21 = arith.constant 0 : index
    %c0_22 = arith.constant 0 : index
    %22 = vector.load %arg8[%c0_20, %c0_21, %c0_22] : memref<4x16x1xf32, #tpu.memory_space<vmem>>, vector<1x16x1xf32>
    %23 = vector.shape_cast %22 : vector<1x16x1xf32> to vector<16x1xf32>
    %24 = arith.mulf %18, %23 : vector<16x1xf32>
    %cst_23 = arith.constant dense<0.000000e+00> : vector<16xf32>
    %25 = vector.multi_reduction <add>, %21, %cst_23 [1] : vector<16x16xf32> to vector<16xf32>
    %26 = vector.shape_cast %25 : vector<16xf32> to vector<16x1xf32>
    %27 = arith.addf %24, %26 : vector<16x1xf32>
    %c0_24 = arith.constant 0 : index
    %c0_25 = arith.constant 0 : index
    %c0_26 = arith.constant 0 : index
    %28 = vector.load %arg8[%c0_24, %c0_25, %c0_26] : memref<4x16x1xf32, #tpu.memory_space<vmem>>, vector<1x16x1xf32>
    %29 = vector.shape_cast %28 : vector<1x16x1xf32> to vector<16x1xf32>
    %30 = vector.shape_cast %27 : vector<16x1xf32> to vector<1x16x1xf32>
    tpu.vector_store %arg8[%c0_24, %c0_25, %c0_26], %30 {strides = array<i32>} : memref<4x16x1xf32, #tpu.memory_space<vmem>>, vector<1x16x1xf32>,
    %c0_27 = arith.constant 0 : index
    %c0_28 = arith.constant 0 : index
    %c0_29 = arith.constant 0 : index
    %31 = vector.load %arg9[%c0_27, %c0_28, %c0_29] : memref<4x16x8xf32, #tpu.memory_space<vmem>>, vector<1x16x8xf32>
    %32 = vector.shape_cast %31 : vector<1x16x8xf32> to vector<16x8xf32>
    %33 = vector.broadcast %18 : vector<16x1xf32> to vector<16x8xf32>
    %34 = arith.mulf %33, %32 : vector<16x8xf32>
    %35 = arith.truncf %21 : vector<16x16xf32> to vector<16x16xbf16>
    %cst_30 = arith.constant dense<0.000000e+00> : vector<16x8xf32>
    %36 = tpu.matmul %35, %8, %cst_30 {dimension_numbers = #tpu.dot_dimension_numbers<[1], [0], [0], [1], [0, 0, 1, 1], [], []>} : vector<16x16xbf16>, vector<16x8xbf16>, vector<16x8xf32> -> vector<16x8xf32>
    %37 = arith.addf %34, %36 : vector<16x8xf32>
    %c0_31 = arith.constant 0 : index
    %c0_32 = arith.constant 0 : index
    %c0_33 = arith.constant 0 : index
    %38 = vector.load %arg9[%c0_31, %c0_32, %c0_33] : memref<4x16x8xf32, #tpu.memory_space<vmem>>, vector<1x16x8xf32>
    %39 = vector.shape_cast %38 : vector<1x16x8xf32> to vector<16x8xf32>
    %40 = vector.shape_cast %37 : vector<16x8xf32> to vector<1x16x8xf32>
    tpu.vector_store %arg9[%c0_31, %c0_32, %c0_33], %40 {strides = array<i32>} : memref<4x16x8xf32, #tpu.memory_space<vmem>>, vector<1x16x8xf32>,
    %c0_34 = arith.constant 0 : index
    %c0_35 = arith.constant 0 : index
    %c0_36 = arith.constant 0 : index
    %41 = vector.load %arg7[%c0_34, %c0_35, %c0_36] : memref<4x16x1xf32, #tpu.memory_space<vmem>>, vector<1x16x1xf32>
    %42 = vector.shape_cast %41 : vector<1x16x1xf32> to vector<16x1xf32>
    %43 = vector.shape_cast %16 : vector<16x1xf32> to vector<1x16x1xf32>
    tpu.vector_store %arg7[%c0_34, %c0_35, %c0_36], %43 {strides = array<i32>} : memref<4x16x1xf32, #tpu.memory_space<vmem>>, vector<1x16x1xf32>,
    %c0_37 = arith.constant 0 : index
    %c0_38 = arith.constant 0 : index
    %c0_39 = arith.constant 0 : index
    %c1 = arith.constant 1 : index
    %c0_40 = arith.constant 0 : index
    %44 = vector.load %arg3[%c0_37, %c0_38, %c0_39, %c1, %c0_40] : memref<1x16x1x4x8xbf16, #tpu.memory_space<vmem>>, vector<1x16x1x1x8xbf16>
    %45 = vector.shape_cast %44 : vector<1x16x1x1x8xbf16> to vector<16x8xbf16>
    %c0_41 = arith.constant 0 : index
    %c0_42 = arith.constant 0 : index
    %c0_43 = arith.constant 0 : index
    %c1_44 = arith.constant 1 : index
    %c0_45 = arith.constant 0 : index
    %46 = vector.load %arg4[%c0_41, %c0_42, %c0_43, %c1_44, %c0_45] : memref<1x16x1x4x8xbf16, #tpu.memory_space<vmem>>, vector<1x16x1x1x8xbf16>
    %47 = vector.shape_cast %46 : vector<1x16x1x1x8xbf16> to vector<16x8xbf16>
    %c0_46 = arith.constant 0 : index
    %c0_47 = arith.constant 0 : index
    %c0_48 = arith.constant 0 : index
    %c1_49 = arith.constant 1 : index
    %c0_50 = arith.constant 0 : index
    %48 = vector.load %arg5[%c0_46, %c0_47, %c0_48, %c1_49, %c0_50] : memref<1x16x1x4x8xbf16, #tpu.memory_space<vmem>>, vector<1x16x1x1x8xbf16>
    %49 = vector.shape_cast %48 : vector<1x16x1x1x8xbf16> to vector<16x8xbf16>
    %cst_51 = arith.constant dense<0.000000e+00> : vector<16x16xf32>
    %50 = tpu.matmul %45, %47, %cst_51 {dimension_numbers = #tpu.dot_dimension_numbers<[1], [1], [0], [0], [0, 0, 1, 0], [], []>} : vector<16x8xbf16>, vector<16x8xbf16>, vector<16x16xf32> -> vector<16x16xf32>
    %cst_52 = arith.constant 0.353553385 : f32
    %51 = vector.broadcast %cst_52 : f32 to vector<16x16xf32>
    %52 = arith.mulf %50, %51 : vector<16x16xf32>
    %c1_53 = arith.constant 1 : index
    %c0_54 = arith.constant 0 : index
    %c0_55 = arith.constant 0 : index
    %53 = vector.load %arg7[%c1_53, %c0_54, %c0_55] : memref<4x16x1xf32, #tpu.memory_space<vmem>>, vector<1x16x1xf32>
    %54 = vector.shape_cast %53 : vector<1x16x1xf32> to vector<16x1xf32>
    %cst_56 = arith.constant dense<0xFF800000> : vector<16xf32>
    %55 = vector.multi_reduction <maximumf>, %52, %cst_56 [1] : vector<16x16xf32> to vector<16xf32>
    %56 = vector.shape_cast %55 : vector<16xf32> to vector<16x1xf32>
    %57 = arith.maximumf %54, %56 : vector<16x1xf32>
    %58 = arith.subf %54, %57 : vector<16x1xf32>
    %59 = math.exp %58 : vector<16x1xf32>
    %60 = vector.broadcast %57 : vector<16x1xf32> to vector<16x16xf32>
    %61 = arith.subf %52, %60 : vector<16x16xf32>
    %62 = math.exp %61 : vector<16x16xf32>
    %c1_57 = arith.constant 1 : index
    %c0_58 = arith.constant 0 : index
    %c0_59 = arith.constant 0 : index
    %63 = vector.load %arg8[%c1_57, %c0_58, %c0_59] : memref<4x16x1xf32, #tpu.memory_space<vmem>>, vector<1x16x1xf32>
    %64 = vector.shape_cast %63 : vector<1x16x1xf32> to vector<16x1xf32>
    %65 = arith.mulf %59, %64 : vector<16x1xf32>
    %cst_60 = arith.constant dense<0.000000e+00> : vector<16xf32>
    %66 = vector.multi_reduction <add>, %62, %cst_60 [1] : vector<16x16xf32> to vector<16xf32>
    %67 = vector.shape_cast %66 : vector<16xf32> to vector<16x1xf32>
    %68 = arith.addf %65, %67 : vector<16x1xf32>
    %c1_61 = arith.constant 1 : index
    %c0_62 = arith.constant 0 : index
    %c0_63 = arith.constant 0 : index
    %69 = vector.load %arg8[%c1_61, %c0_62, %c0_63] : memref<4x16x1xf32, #tpu.memory_space<vmem>>, vector<1x16x1xf32>
    %70 = vector.shape_cast %69 : vector<1x16x1xf32> to vector<16x1xf32>
    %71 = vector.shape_cast %68 : vector<16x1xf32> to vector<1x16x1xf32>
    tpu.vector_store %arg8[%c1_61, %c0_62, %c0_63], %71 {strides = array<i32>} : memref<4x16x1xf32, #tpu.memory_space<vmem>>, vector<1x16x1xf32>,
    %c1_64 = arith.constant 1 : index
    %c0_65 = arith.constant 0 : index
    %c0_66 = arith.constant 0 : index
    %72 = vector.load %arg9[%c1_64, %c0_65, %c0_66] : memref<4x16x8xf32, #tpu.memory_space<vmem>>, vector<1x16x8xf32>
    %73 = vector.shape_cast %72 : vector<1x16x8xf32> to vector<16x8xf32>
    %74 = vector.broadcast %59 : vector<16x1xf32> to vector<16x8xf32>
    %75 = arith.mulf %74, %73 : vector<16x8xf32>
    %76 = arith.truncf %62 : vector<16x16xf32> to vector<16x16xbf16>
    %cst_67 = arith.constant dense<0.000000e+00> : vector<16x8xf32>
    %77 = tpu.matmul %76, %49, %cst_67 {dimension_numbers = #tpu.dot_dimension_numbers<[1], [0], [0], [1], [0, 0, 1, 1], [], []>} : vector<16x16xbf16>, vector<16x8xbf16>, vector<16x8xf32> -> vector<16x8xf32>
    %78 = arith.addf %75, %77 : vector<16x8xf32>
    %c1_68 = arith.constant 1 : index
    %c0_69 = arith.constant 0 : index
    %c0_70 = arith.constant 0 : index
    %79 = vector.load %arg9[%c1_68, %c0_69, %c0_70] : memref<4x16x8xf32, #tpu.memory_space<vmem>>, vector<1x16x8xf32>
    %80 = vector.shape_cast %79 : vector<1x16x8xf32> to vector<16x8xf32>
    %81 = vector.shape_cast %78 : vector<16x8xf32> to vector<1x16x8xf32>
    tpu.vector_store %arg9[%c1_68, %c0_69, %c0_70], %81 {strides = array<i32>} : memref<4x16x8xf32, #tpu.memory_space<vmem>>, vector<1x16x8xf32>,
    %c1_71 = arith.constant 1 : index
    %c0_72 = arith.constant 0 : index
    %c0_73 = arith.constant 0 : index
    %82 = vector.load %arg7[%c1_71, %c0_72, %c0_73] : memref<4x16x1xf32, #tpu.memory_space<vmem>>, vector<1x16x1xf32>
    %83 = vector.shape_cast %82 : vector<1x16x1xf32> to vector<16x1xf32>
    %84 = vector.shape_cast %57 : vector<16x1xf32> to vector<1x16x1xf32>
    tpu.vector_store %arg7[%c1_71, %c0_72, %c0_73], %84 {strides = array<i32>} : memref<4x16x1xf32, #tpu.memory_space<vmem>>, vector<1x16x1xf32>,
    %c0_74 = arith.constant 0 : index
    %c0_75 = arith.constant 0 : index
    %c0_76 = arith.constant 0 : index
    %c2 = arith.constant 2 : index
    %c0_77 = arith.constant 0 : index
    %85 = vector.load %arg3[%c0_74, %c0_75, %c0_76, %c2, %c0_77] : memref<1x16x1x4x8xbf16, #tpu.memory_space<vmem>>, vector<1x16x1x1x8xbf16>
    %86 = vector.shape_cast %85 : vector<1x16x1x1x8xbf16> to vector<16x8xbf16>
    %c0_78 = arith.constant 0 : index
    %c0_79 = arith.constant 0 : index
    %c0_80 = arith.constant 0 : index
    %c2_81 = arith.constant 2 : index
    %c0_82 = arith.constant 0 : index
    %87 = vector.load %arg4[%c0_78, %c0_79, %c0_80, %c2_81, %c0_82] : memref<1x16x1x4x8xbf16, #tpu.memory_space<vmem>>, vector<1x16x1x1x8xbf16>
    %88 = vector.shape_cast %87 : vector<1x16x1x1x8xbf16> to vector<16x8xbf16>
    %c0_83 = arith.constant 0 : index
    %c0_84 = arith.constant 0 : index
    %c0_85 = arith.constant 0 : index
    %c2_86 = arith.constant 2 : index
    %c0_87 = arith.constant 0 : index
    %89 = vector.load %arg5[%c0_83, %c0_84, %c0_85, %c2_86, %c0_87] : memref<1x16x1x4x8xbf16, #tpu.memory_space<vmem>>, vector<1x16x1x1x8xbf16>
    %90 = vector.shape_cast %89 : vector<1x16x1x1x8xbf16> to vector<16x8xbf16>
    %cst_88 = arith.constant dense<0.000000e+00> : vector<16x16xf32>
    %91 = tpu.matmul %86, %88, %cst_88 {dimension_numbers = #tpu.dot_dimension_numbers<[1], [1], [0], [0], [0, 0, 1, 0], [], []>} : vector<16x8xbf16>, vector<16x8xbf16>, vector<16x16xf32> -> vector<16x16xf32>
    %cst_89 = arith.constant 0.353553385 : f32
    %92 = vector.broadcast %cst_89 : f32 to vector<16x16xf32>
    %93 = arith.mulf %91, %92 : vector<16x16xf32>
    %c2_90 = arith.constant 2 : index
    %c0_91 = arith.constant 0 : index
    %c0_92 = arith.constant 0 : index
    %94 = vector.load %arg7[%c2_90, %c0_91, %c0_92] : memref<4x16x1xf32, #tpu.memory_space<vmem>>, vector<1x16x1xf32>
    %95 = vector.shape_cast %94 : vector<1x16x1xf32> to vector<16x1xf32>
    %cst_93 = arith.constant dense<0xFF800000> : vector<16xf32>
    %96 = vector.multi_reduction <maximumf>, %93, %cst_93 [1] : vector<16x16xf32> to vector<16xf32>
    %97 = vector.shape_cast %96 : vector<16xf32> to vector<16x1xf32>
    %98 = arith.maximumf %95, %97 : vector<16x1xf32>
    %99 = arith.subf %95, %98 : vector<16x1xf32>
    %100 = math.exp %99 : vector<16x1xf32>
    %101 = vector.broadcast %98 : vector<16x1xf32> to vector<16x16xf32>
    %102 = arith.subf %93, %101 : vector<16x16xf32>
    %103 = math.exp %102 : vector<16x16xf32>
    %c2_94 = arith.constant 2 : index
    %c0_95 = arith.constant 0 : index
    %c0_96 = arith.constant 0 : index
    %104 = vector.load %arg8[%c2_94, %c0_95, %c0_96] : memref<4x16x1xf32, #tpu.memory_space<vmem>>, vector<1x16x1xf32>
    %105 = vector.shape_cast %104 : vector<1x16x1xf32> to vector<16x1xf32>
    %106 = arith.mulf %100, %105 : vector<16x1xf32>
    %cst_97 = arith.constant dense<0.000000e+00> : vector<16xf32>
    %107 = vector.multi_reduction <add>, %103, %cst_97 [1] : vector<16x16xf32> to vector<16xf32>
    %108 = vector.shape_cast %107 : vector<16xf32> to vector<16x1xf32>
    %109 = arith.addf %106, %108 : vector<16x1xf32>
    %c2_98 = arith.constant 2 : index
    %c0_99 = arith.constant 0 : index
    %c0_100 = arith.constant 0 : index
    %110 = vector.load %arg8[%c2_98, %c0_99, %c0_100] : memref<4x16x1xf32, #tpu.memory_space<vmem>>, vector<1x16x1xf32>
    %111 = vector.shape_cast %110 : vector<1x16x1xf32> to vector<16x1xf32>
    %112 = vector.shape_cast %109 : vector<16x1xf32> to vector<1x16x1xf32>
    tpu.vector_store %arg8[%c2_98, %c0_99, %c0_100], %112 {strides = array<i32>} : memref<4x16x1xf32, #tpu.memory_space<vmem>>, vector<1x16x1xf32>,
    %c2_101 = arith.constant 2 : index
    %c0_102 = arith.constant 0 : index
    %c0_103 = arith.constant 0 : index
    %113 = vector.load %arg9[%c2_101, %c0_102, %c0_103] : memref<4x16x8xf32, #tpu.memory_space<vmem>>, vector<1x16x8xf32>
    %114 = vector.shape_cast %113 : vector<1x16x8xf32> to vector<16x8xf32>
    %115 = vector.broadcast %100 : vector<16x1xf32> to vector<16x8xf32>
    %116 = arith.mulf %115, %114 : vector<16x8xf32>
    %117 = arith.truncf %103 : vector<16x16xf32> to vector<16x16xbf16>
    %cst_104 = arith.constant dense<0.000000e+00> : vector<16x8xf32>
    %118 = tpu.matmul %117, %90, %cst_104 {dimension_numbers = #tpu.dot_dimension_numbers<[1], [0], [0], [1], [0, 0, 1, 1], [], []>} : vector<16x16xbf16>, vector<16x8xbf16>, vector<16x8xf32> -> vector<16x8xf32>
    %119 = arith.addf %116, %118 : vector<16x8xf32>
    %c2_105 = arith.constant 2 : index
    %c0_106 = arith.constant 0 : index
    %c0_107 = arith.constant 0 : index
    %120 = vector.load %arg9[%c2_105, %c0_106, %c0_107] : memref<4x16x8xf32, #tpu.memory_space<vmem>>, vector<1x16x8xf32>
    %121 = vector.shape_cast %120 : vector<1x16x8xf32> to vector<16x8xf32>
    %122 = vector.shape_cast %119 : vector<16x8xf32> to vector<1x16x8xf32>
    tpu.vector_store %arg9[%c2_105, %c0_106, %c0_107], %122 {strides = array<i32>} : memref<4x16x8xf32, #tpu.memory_space<vmem>>, vector<1x16x8xf32>,
    %c2_108 = arith.constant 2 : index
    %c0_109 = arith.constant 0 : index
    %c0_110 = arith.constant 0 : index
    %123 = vector.load %arg7[%c2_108, %c0_109, %c0_110] : memref<4x16x1xf32, #tpu.memory_space<vmem>>, vector<1x16x1xf32>
    %124 = vector.shape_cast %123 : vector<1x16x1xf32> to vector<16x1xf32>
    %125 = vector.shape_cast %98 : vector<16x1xf32> to vector<1x16x1xf32>
    tpu.vector_store %arg7[%c2_108, %c0_109, %c0_110], %125 {strides = array<i32>} : memref<4x16x1xf32, #tpu.memory_space<vmem>>, vector<1x16x1xf32>,
    %c0_111 = arith.constant 0 : index
    %c0_112 = arith.constant 0 : index
    %c0_113 = arith.constant 0 : index
    %c3 = arith.constant 3 : index
    %c0_114 = arith.constant 0 : index
    %126 = vector.load %arg3[%c0_111, %c0_112, %c0_113, %c3, %c0_114] : memref<1x16x1x4x8xbf16, #tpu.memory_space<vmem>>, vector<1x16x1x1x8xbf16>
    %127 = vector.shape_cast %126 : vector<1x16x1x1x8xbf16> to vector<16x8xbf16>
    %c0_115 = arith.constant 0 : index
    %c0_116 = arith.constant 0 : index
    %c0_117 = arith.constant 0 : index
    %c3_118 = arith.constant 3 : index
    %c0_119 = arith.constant 0 : index
    %128 = vector.load %arg4[%c0_115, %c0_116, %c0_117, %c3_118, %c0_119] : memref<1x16x1x4x8xbf16, #tpu.memory_space<vmem>>, vector<1x16x1x1x8xbf16>
    %129 = vector.shape_cast %128 : vector<1x16x1x1x8xbf16> to vector<16x8xbf16>
    %c0_120 = arith.constant 0 : index
    %c0_121 = arith.constant 0 : index
    %c0_122 = arith.constant 0 : index
    %c3_123 = arith.constant 3 : index
    %c0_124 = arith.constant 0 : index
    %130 = vector.load %arg5[%c0_120, %c0_121, %c0_122, %c3_123, %c0_124] : memref<1x16x1x4x8xbf16, #tpu.memory_space<vmem>>, vector<1x16x1x1x8xbf16>
    %131 = vector.shape_cast %130 : vector<1x16x1x1x8xbf16> to vector<16x8xbf16>
    %cst_125 = arith.constant dense<0.000000e+00> : vector<16x16xf32>
    %132 = tpu.matmul %127, %129, %cst_125 {dimension_numbers = #tpu.dot_dimension_numbers<[1], [1], [0], [0], [0, 0, 1, 0], [], []>} : vector<16x8xbf16>, vector<16x8xbf16>, vector<16x16xf32> -> vector<16x16xf32>
    %cst_126 = arith.constant 0.353553385 : f32
    %133 = vector.broadcast %cst_126 : f32 to vector<16x16xf32>
    %134 = arith.mulf %132, %133 : vector<16x16xf32>
    %c3_127 = arith.constant 3 : index
    %c0_128 = arith.constant 0 : index
    %c0_129 = arith.constant 0 : index
    %135 = vector.load %arg7[%c3_127, %c0_128, %c0_129] : memref<4x16x1xf32, #tpu.memory_space<vmem>>, vector<1x16x1xf32>
    %136 = vector.shape_cast %135 : vector<1x16x1xf32> to vector<16x1xf32>
    %cst_130 = arith.constant dense<0xFF800000> : vector<16xf32>
    %137 = vector.multi_reduction <maximumf>, %134, %cst_130 [1] : vector<16x16xf32> to vector<16xf32>
    %138 = vector.shape_cast %137 : vector<16xf32> to vector<16x1xf32>
    %139 = arith.maximumf %136, %138 : vector<16x1xf32>
    %140 = arith.subf %136, %139 : vector<16x1xf32>
    %141 = math.exp %140 : vector<16x1xf32>
    %142 = vector.broadcast %139 : vector<16x1xf32> to vector<16x16xf32>
    %143 = arith.subf %134, %142 : vector<16x16xf32>
    %144 = math.exp %143 : vector<16x16xf32>
    %c3_131 = arith.constant 3 : index
    %c0_132 = arith.constant 0 : index
    %c0_133 = arith.constant 0 : index
    %145 = vector.load %arg8[%c3_131, %c0_132, %c0_133] : memref<4x16x1xf32, #tpu.memory_space<vmem>>, vector<1x16x1xf32>
    %146 = vector.shape_cast %145 : vector<1x16x1xf32> to vector<16x1xf32>
    %147 = arith.mulf %141, %146 : vector<16x1xf32>
    %cst_134 = arith.constant dense<0.000000e+00> : vector<16xf32>
    %148 = vector.multi_reduction <add>, %144, %cst_134 [1] : vector<16x16xf32> to vector<16xf32>
    %149 = vector.shape_cast %148 : vector<16xf32> to vector<16x1xf32>
    %150 = arith.addf %147, %149 : vector<16x1xf32>
    %c3_135 = arith.constant 3 : index
    %c0_136 = arith.constant 0 : index
    %c0_137 = arith.constant 0 : index
    %151 = vector.load %arg8[%c3_135, %c0_136, %c0_137] : memref<4x16x1xf32, #tpu.memory_space<vmem>>, vector<1x16x1xf32>
    %152 = vector.shape_cast %151 : vector<1x16x1xf32> to vector<16x1xf32>
    %153 = vector.shape_cast %150 : vector<16x1xf32> to vector<1x16x1xf32>
    tpu.vector_store %arg8[%c3_135, %c0_136, %c0_137], %153 {strides = array<i32>} : memref<4x16x1xf32, #tpu.memory_space<vmem>>, vector<1x16x1xf32>,
    %c3_138 = arith.constant 3 : index
    %c0_139 = arith.constant 0 : index
    %c0_140 = arith.constant 0 : index
    %154 = vector.load %arg9[%c3_138, %c0_139, %c0_140] : memref<4x16x8xf32, #tpu.memory_space<vmem>>, vector<1x16x8xf32>
    %155 = vector.shape_cast %154 : vector<1x16x8xf32> to vector<16x8xf32>
    %156 = vector.broadcast %141 : vector<16x1xf32> to vector<16x8xf32>
    %157 = arith.mulf %156, %155 : vector<16x8xf32>
    %158 = arith.truncf %144 : vector<16x16xf32> to vector<16x16xbf16>
    %cst_141 = arith.constant dense<0.000000e+00> : vector<16x8xf32>
    %159 = tpu.matmul %158, %131, %cst_141 {dimension_numbers = #tpu.dot_dimension_numbers<[1], [0], [0], [1], [0, 0, 1, 1], [], []>} : vector<16x16xbf16>, vector<16x8xbf16>, vector<16x8xf32> -> vector<16x8xf32>
    %160 = arith.addf %157, %159 : vector<16x8xf32>
    %c3_142 = arith.constant 3 : index
    %c0_143 = arith.constant 0 : index
    %c0_144 = arith.constant 0 : index
    %161 = vector.load %arg9[%c3_142, %c0_143, %c0_144] : memref<4x16x8xf32, #tpu.memory_space<vmem>>, vector<1x16x8xf32>
    %162 = vector.shape_cast %161 : vector<1x16x8xf32> to vector<16x8xf32>
    %163 = vector.shape_cast %160 : vector<16x8xf32> to vector<1x16x8xf32>
    tpu.vector_store %arg9[%c3_142, %c0_143, %c0_144], %163 {strides = array<i32>} : memref<4x16x8xf32, #tpu.memory_space<vmem>>, vector<1x16x8xf32>,
    %c3_145 = arith.constant 3 : index
    %c0_146 = arith.constant 0 : index
    %c0_147 = arith.constant 0 : index
    %164 = vector.load %arg7[%c3_145, %c0_146, %c0_147] : memref<4x16x1xf32, #tpu.memory_space<vmem>>, vector<1x16x1xf32>
    %165 = vector.shape_cast %164 : vector<1x16x1xf32> to vector<16x1xf32>
    %166 = vector.shape_cast %139 : vector<16x1xf32> to vector<1x16x1xf32>
    tpu.vector_store %arg7[%c3_145, %c0_146, %c0_147], %166 {strides = array<i32>} : memref<4x16x1xf32, #tpu.memory_space<vmem>>, vector<1x16x1xf32>,
    %c1_i32 = arith.constant 1 : i32
    %167 = arith.cmpi eq, %arg2, %c1_i32 : i32
    %168 = arith.extui %167 : i1 to i32
    %c0_i32_148 = arith.constant 0 : i32
    %169 = arith.cmpi ne, %168, %c0_i32_148 : i32
    scf.if %169 {
      %c0_149 = arith.constant 0 : index
      %c0_150 = arith.constant 0 : index
      %c0_151 = arith.constant 0 : index
      %170 = vector.load %arg9[%c0_149, %c0_150, %c0_151] : memref<4x16x8xf32, #tpu.memory_space<vmem>>, vector<1x16x8xf32>
      %171 = vector.shape_cast %170 : vector<1x16x8xf32> to vector<16x8xf32>
      %c0_152 = arith.constant 0 : index
      %c0_153 = arith.constant 0 : index
      %c0_154 = arith.constant 0 : index
      %172 = vector.load %arg8[%c0_152, %c0_153, %c0_154] : memref<4x16x1xf32, #tpu.memory_space<vmem>>, vector<1x16x1xf32>
      %173 = vector.shape_cast %172 : vector<1x16x1xf32> to vector<16x1xf32>
      %174 = tpu.reciprocal %173 {approx = true} : vector<16x1xf32> -> vector<16x1xf32>
      %175 = vector.broadcast %174 : vector<16x1xf32> to vector<16x8xf32>
      %176 = arith.mulf %171, %175 : vector<16x8xf32>
      %177 = arith.truncf %176 : vector<16x8xf32> to vector<16x8xbf16>
      %c0_155 = arith.constant 0 : index
      %c0_156 = arith.constant 0 : index
      %c0_157 = arith.constant 0 : index
      %c0_158 = arith.constant 0 : index
      %178 = vector.load %arg6[%c0_155, %c0_156, %c0_157, %c0_158] : memref<1x16x4x8xbf16, #tpu.memory_space<vmem>>, vector<1x16x1x8xbf16>
      %179 = vector.shape_cast %178 : vector<1x16x1x8xbf16> to vector<16x8xbf16>
      %180 = vector.shape_cast %177 : vector<16x8xbf16> to vector<1x16x1x8xbf16>
      tpu.vector_store %arg6[%c0_155, %c0_156, %c0_157, %c0_158], %180 {strides = array<i32>} : memref<1x16x4x8xbf16, #tpu.memory_space<vmem>>, vector<1x16x1x8xbf16>,
      %c1_159 = arith.constant 1 : index
      %c0_160 = arith.constant 0 : index
      %c0_161 = arith.constant 0 : index
      %181 = vector.load %arg9[%c1_159, %c0_160, %c0_161] : memref<4x16x8xf32, #tpu.memory_space<vmem>>, vector<1x16x8xf32>
      %182 = vector.shape_cast %181 : vector<1x16x8xf32> to vector<16x8xf32>
      %c1_162 = arith.constant 1 : index
      %c0_163 = arith.constant 0 : index
      %c0_164 = arith.constant 0 : index
      %183 = vector.load %arg8[%c1_162, %c0_163, %c0_164] : memref<4x16x1xf32, #tpu.memory_space<vmem>>, vector<1x16x1xf32>
      %184 = vector.shape_cast %183 : vector<1x16x1xf32> to vector<16x1xf32>
      %185 = tpu.reciprocal %184 {approx = true} : vector<16x1xf32> -> vector<16x1xf32>
      %186 = vector.broadcast %185 : vector<16x1xf32> to vector<16x8xf32>
      %187 = arith.mulf %182, %186 : vector<16x8xf32>
      %188 = arith.truncf %187 : vector<16x8xf32> to vector<16x8xbf16>
      %c0_165 = arith.constant 0 : index
      %c0_166 = arith.constant 0 : index
      %c1_167 = arith.constant 1 : index
      %c0_168 = arith.constant 0 : index
      %189 = vector.load %arg6[%c0_165, %c0_166, %c1_167, %c0_168] : memref<1x16x4x8xbf16, #tpu.memory_space<vmem>>, vector<1x16x1x8xbf16>
      %190 = vector.shape_cast %189 : vector<1x16x1x8xbf16> to vector<16x8xbf16>
      %191 = vector.shape_cast %188 : vector<16x8xbf16> to vector<1x16x1x8xbf16>
      tpu.vector_store %arg6[%c0_165, %c0_166, %c1_167, %c0_168], %191 {strides = array<i32>} : memref<1x16x4x8xbf16, #tpu.memory_space<vmem>>, vector<1x16x1x8xbf16>,
      %c2_169 = arith.constant 2 : index
      %c0_170 = arith.constant 0 : index
      %c0_171 = arith.constant 0 : index
      %192 = vector.load %arg9[%c2_169, %c0_170, %c0_171] : memref<4x16x8xf32, #tpu.memory_space<vmem>>, vector<1x16x8xf32>
      %193 = vector.shape_cast %192 : vector<1x16x8xf32> to vector<16x8xf32>
      %c2_172 = arith.constant 2 : index
      %c0_173 = arith.constant 0 : index
      %c0_174 = arith.constant 0 : index
      %194 = vector.load %arg8[%c2_172, %c0_173, %c0_174] : memref<4x16x1xf32, #tpu.memory_space<vmem>>, vector<1x16x1xf32>
      %195 = vector.shape_cast %194 : vector<1x16x1xf32> to vector<16x1xf32>
      %196 = tpu.reciprocal %195 {approx = true} : vector<16x1xf32> -> vector<16x1xf32>
      %197 = vector.broadcast %196 : vector<16x1xf32> to vector<16x8xf32>
      %198 = arith.mulf %193, %197 : vector<16x8xf32>
      %199 = arith.truncf %198 : vector<16x8xf32> to vector<16x8xbf16>
      %c0_175 = arith.constant 0 : index
      %c0_176 = arith.constant 0 : index
      %c2_177 = arith.constant 2 : index
      %c0_178 = arith.constant 0 : index
      %200 = vector.load %arg6[%c0_175, %c0_176, %c2_177, %c0_178] : memref<1x16x4x8xbf16, #tpu.memory_space<vmem>>, vector<1x16x1x8xbf16>
      %201 = vector.shape_cast %200 : vector<1x16x1x8xbf16> to vector<16x8xbf16>
      %202 = vector.shape_cast %199 : vector<16x8xbf16> to vector<1x16x1x8xbf16>
      tpu.vector_store %arg6[%c0_175, %c0_176, %c2_177, %c0_178], %202 {strides = array<i32>} : memref<1x16x4x8xbf16, #tpu.memory_space<vmem>>, vector<1x16x1x8xbf16>,
      %c3_179 = arith.constant 3 : index
      %c0_180 = arith.constant 0 : index
      %c0_181 = arith.constant 0 : index
      %203 = vector.load %arg9[%c3_179, %c0_180, %c0_181] : memref<4x16x8xf32, #tpu.memory_space<vmem>>, vector<1x16x8xf32>
      %204 = vector.shape_cast %203 : vector<1x16x8xf32> to vector<16x8xf32>
      %c3_182 = arith.constant 3 : index
      %c0_183 = arith.constant 0 : index
      %c0_184 = arith.constant 0 : index
      %205 = vector.load %arg8[%c3_182, %c0_183, %c0_184] : memref<4x16x1xf32, #tpu.memory_space<vmem>>, vector<1x16x1xf32>
      %206 = vector.shape_cast %205 : vector<1x16x1xf32> to vector<16x1xf32>
      %207 = tpu.reciprocal %206 {approx = true} : vector<16x1xf32> -> vector<16x1xf32>
      %208 = vector.broadcast %207 : vector<16x1xf32> to vector<16x8xf32>
      %209 = arith.mulf %204, %208 : vector<16x8xf32>
      %210 = arith.truncf %209 : vector<16x8xf32> to vector<16x8xbf16>
      %c0_185 = arith.constant 0 : index
      %c0_186 = arith.constant 0 : index
      %c3_187 = arith.constant 3 : index
      %c0_188 = arith.constant 0 : index
      %211 = vector.load %arg6[%c0_185, %c0_186, %c3_187, %c0_188] : memref<1x16x4x8xbf16, #tpu.memory_space<vmem>>, vector<1x16x1x8xbf16>
      %212 = vector.shape_cast %211 : vector<1x16x1x8xbf16> to vector<16x8xbf16>
      %213 = vector.shape_cast %210 : vector<16x8xbf16> to vector<1x16x1x8xbf16>
      tpu.vector_store %arg6[%c0_185, %c0_186, %c3_187, %c0_188], %213 {strides = array<i32>} : memref<1x16x4x8xbf16, #tpu.memory_space<vmem>>, vector<1x16x1x8xbf16>,
    } else {
    }
    return
  }
  func.func @transform_0(%arg0: i32, %arg1: i32, %arg2: i32) -> (i32, i32, i32, i32, i32) {
    %c0_i32 = arith.constant 0 : i32
    %c0_i32_0 = arith.constant 0 : i32
    %c0_i32_1 = arith.constant 0 : i32
    %c0_i32_2 = arith.constant 0 : i32
    return %arg0, %arg1, %c0_i32, %c0_i32_0, %c0_i32_1 : i32, i32, i32, i32, i32
  }
  func.func @transform_1(%arg0: i32, %arg1: i32, %arg2: i32) -> (i32, i32, i32, i32, i32) {
    %c1_i32 = arith.constant 1 : i32
    %c0_i32 = arith.constant 0 : i32
    %c0_i32_0 = arith.constant 0 : i32
    %c0_i32_1 = arith.constant 0 : i32
    return %arg0, %arg2, %c1_i32, %c0_i32, %c0_i32_0 : i32, i32, i32, i32, i32
  }
  func.func @transform_2(%arg0: i32, %arg1: i32, %arg2: i32) -> (i32, i32, i32, i32, i32) {
    %c2_i32 = arith.constant 2 : i32
    %c0_i32 = arith.constant 0 : i32
    %c0_i32_0 = arith.constant 0 : i32
    %c0_i32_1 = arith.constant 0 : i32
    return %arg0, %arg2, %c2_i32, %c0_i32, %c0_i32_0 : i32, i32, i32, i32, i32
  }
  func.func @transform_3(%arg0: i32, %arg1: i32, %arg2: i32) -> (i32, i32, i32, i32) {
    %c0_i32 = arith.constant 0 : i32
    %c0_i32_0 = arith.constant 0 : i32
    %c0_i32_1 = arith.constant 0 : i32
    return %arg0, %arg1, %c0_i32, %c0_i32_0 : i32, i32, i32, i32
  }
}

module attributes {stable_mosaic.version = 11 : i64} {
  func.func @attn_out_router_kernel(%arg0: i32, %arg1: i32, %arg2: memref<32x32xf32, #tpu.memory_space<vmem>>, %arg3: memref<32x32xbf16, #tpu.memory_space<vmem>>, %arg4: memref<32x32xbf16, #tpu.memory_space<vmem>>, %arg5: memref<1x32xf32, #tpu.memory_space<vmem>>, %arg6: memref<32x4xf32, #tpu.memory_space<vmem>>, %arg7: memref<1x4xf32, #tpu.memory_space<vmem>>, %arg8: memref<32x32xf32, #tpu.memory_space<vmem>>, %arg9: memref<32x32xbf16, #tpu.memory_space<vmem>>, %arg10: memref<32x1xi32, #tpu.memory_space<vmem>>, %arg11: memref<8x128xf32, #tpu.memory_space<vmem>>) attributes {dimension_semantics = [#tpu.dimension_semantics<parallel>, #tpu.dimension_semantics<arbitrary>], iteration_bounds = array<i64: 2, 1>, scalar_prefetch = 0 : i64, scratch_operands = 0 : i64, tpu.core_type = #tpu.core_type<tc>, window_params = [{transform_indices = @transform_0, window_bounds = array<i64: 32, 32>}, {transform_indices = @transform_1, window_bounds = array<i64: 32, 32>}, {transform_indices = @transform_2, window_bounds = array<i64: 32, 32>}, {pipeline_mode = #tpu.pipeline_mode<synchronous>, transform_indices = @transform_3, window_bounds = array<i64: 1, 32>}, {pipeline_mode = #tpu.pipeline_mode<synchronous>, transform_indices = @transform_4, window_bounds = array<i64: 32, 4>}, {pipeline_mode = #tpu.pipeline_mode<synchronous>, transform_indices = @transform_5, window_bounds = array<i64: 1, 4>}, {transform_indices = @transform_6, window_bounds = array<i64: 32, 32>}, {transform_indices = @transform_7, window_bounds = array<i64: 32, 32>}, {transform_indices = @transform_8, window_bounds = array<i64: 32, 1>}, {transform_indices = @transform_9, window_bounds = array<i64: 8, 128>}]} {
    %c0 = arith.constant 0 : index
    %c0_0 = arith.constant 0 : index
    %0 = vector.load %arg3[%c0, %c0_0] : memref<32x32xbf16, #tpu.memory_space<vmem>>, vector<32x32xbf16>
    %c0_1 = arith.constant 0 : index
    %c0_2 = arith.constant 0 : index
    %1 = vector.load %arg4[%c0_1, %c0_2] : memref<32x32xbf16, #tpu.memory_space<vmem>>, vector<32x32xbf16>
    %cst = arith.constant dense<0.000000e+00> : vector<32x32xf32>
    %2 = tpu.matmul %0, %1, %cst {dimension_numbers = #tpu.dot_dimension_numbers<[1], [0], [0], [1], [0, 0, 1, 1], [], []>} : vector<32x32xbf16>, vector<32x32xbf16>, vector<32x32xf32> -> vector<32x32xf32>
    %c0_3 = arith.constant 0 : index
    %c0_4 = arith.constant 0 : index
    %3 = vector.load %arg2[%c0_3, %c0_4] : memref<32x32xf32, #tpu.memory_space<vmem>>, vector<32x32xf32>
    %4 = arith.addf %3, %2 : vector<32x32xf32>
    %c0_5 = arith.constant 0 : index
    %c0_6 = arith.constant 0 : index
    %5 = vector.load %arg8[%c0_5, %c0_6] : memref<32x32xf32, #tpu.memory_space<vmem>>, vector<32x32xf32>
    tpu.vector_store %arg8[%c0_5, %c0_6], %4 {strides = array<i32>} : memref<32x32xf32, #tpu.memory_space<vmem>>, vector<32x32xf32>,
    %c0_i32 = arith.constant 0 : i32
    %6 = arith.cmpi eq, %arg1, %c0_i32 : i32
    %7 = arith.extui %6 : i1 to i32
    %c0_i32_7 = arith.constant 0 : i32
    %8 = arith.cmpi ne, %7, %c0_i32_7 : i32
    scf.if %8 {
      %c0_8 = arith.constant 0 : index
      %c0_9 = arith.constant 0 : index
      %9 = vector.load %arg8[%c0_8, %c0_9] : memref<32x32xf32, #tpu.memory_space<vmem>>, vector<32x32xf32>
      %c0_10 = arith.constant 0 : index
      %c0_11 = arith.constant 0 : index
      %10 = vector.load %arg5[%c0_10, %c0_11] : memref<1x32xf32, #tpu.memory_space<vmem>>, vector<1x32xf32>
      %11 = arith.mulf %9, %9 : vector<32x32xf32>
      %cst_12 = arith.constant dense<0.000000e+00> : vector<32xf32>
      %12 = vector.multi_reduction <add>, %11, %cst_12 [1] : vector<32x32xf32> to vector<32xf32>
      %13 = vector.shape_cast %12 : vector<32xf32> to vector<32x1xf32>
      %cst_13 = arith.constant 3.200000e+01 : f32
      %14 = vector.broadcast %cst_13 : f32 to vector<32x1xf32>
      %15 = arith.divf %13, %14 : vector<32x1xf32>
      %cst_14 = arith.constant 9.99999997E-7 : f32
      %16 = vector.broadcast %cst_14 : f32 to vector<32x1xf32>
      %17 = arith.addf %15, %16 : vector<32x1xf32>
      %18 = math.rsqrt %17 : vector<32x1xf32>
      %19 = vector.broadcast %18 : vector<32x1xf32> to vector<32x32xf32>
      %20 = arith.mulf %9, %19 : vector<32x32xf32>
      %21 = vector.broadcast %10 : vector<1x32xf32> to vector<32x32xf32>
      %22 = arith.mulf %20, %21 : vector<32x32xf32>
      %23 = arith.truncf %22 : vector<32x32xf32> to vector<32x32xbf16>
      %c0_15 = arith.constant 0 : index
      %c0_16 = arith.constant 0 : index
      %24 = vector.load %arg9[%c0_15, %c0_16] : memref<32x32xbf16, #tpu.memory_space<vmem>>, vector<32x32xbf16>
      tpu.vector_store %arg9[%c0_15, %c0_16], %23 {strides = array<i32>} : memref<32x32xbf16, #tpu.memory_space<vmem>>, vector<32x32xbf16>,
      %c0_17 = arith.constant 0 : index
      %c0_18 = arith.constant 0 : index
      %25 = vector.load %arg6[%c0_17, %c0_18] : memref<32x4xf32, #tpu.memory_space<vmem>>, vector<32x4xf32>
      %cst_19 = arith.constant dense<0.000000e+00> : vector<32x4xf32>
      %26 = tpu.matmul %22, %25, %cst_19 {dimension_numbers = #tpu.dot_dimension_numbers<[1], [0], [0], [1], [0, 0, 1, 1], [], []>} : vector<32x32xf32>, vector<32x4xf32>, vector<32x4xf32> -> vector<32x4xf32>
      %c0_20 = arith.constant 0 : index
      %c0_21 = arith.constant 0 : index
      %27 = vector.load %arg7[%c0_20, %c0_21] : memref<1x4xf32, #tpu.memory_space<vmem>>, vector<1x4xf32>
      %28 = vector.broadcast %27 : vector<1x4xf32> to vector<32x4xf32>
      %29 = arith.addf %26, %28 : vector<32x4xf32>
      %cst_22 = arith.constant dense<0xFF800000> : vector<32xf32>
      %30 = vector.multi_reduction <maximumf>, %29, %cst_22 [1] : vector<32x4xf32> to vector<32xf32>
      %31 = vector.shape_cast %30 : vector<32xf32> to vector<32x1xf32>
      %32 = vector.broadcast %31 : vector<32x1xf32> to vector<32x4xf32>
      %33 = arith.subf %29, %32 : vector<32x4xf32>
      %34 = math.exp %33 : vector<32x4xf32>
      %cst_23 = arith.constant dense<0.000000e+00> : vector<32xf32>
      %35 = vector.multi_reduction <add>, %34, %cst_23 [1] : vector<32x4xf32> to vector<32xf32>
      %36 = vector.shape_cast %35 : vector<32xf32> to vector<32x1xf32>
      %37 = vector.broadcast %36 : vector<32x1xf32> to vector<32x4xf32>
      %38 = arith.divf %34, %37 : vector<32x4xf32>
      %39 = math.log %36 : vector<32x1xf32>
      %40 = arith.addf %31, %39 : vector<32x1xf32>
      %41 = tpu.iota {dimensions = array<i32: 1>} : vector<32x4xi32>
      %42 = vector.broadcast %31 : vector<32x1xf32> to vector<32x4xf32>
      %43 = arith.cmpf oeq, %29, %42 : vector<32x4xf32>
      %c4_i32 = arith.constant 4 : i32
      %44 = vector.broadcast %c4_i32 : i32 to vector<32x4xi32>
      %45 = arith.select %43, %41, %44 : vector<32x4xi1>, vector<32x4xi32>
      %cst_24 = arith.constant dense<2147483647> : vector<32xi32>
      %46 = vector.multi_reduction <minsi>, %45, %cst_24 [1] : vector<32x4xi32> to vector<32xi32>
      %47 = vector.shape_cast %46 : vector<32xi32> to vector<32x1xi32>
      %c0_25 = arith.constant 0 : index
      %c0_26 = arith.constant 0 : index
      %48 = vector.load %arg10[%c0_25, %c0_26] : memref<32x1xi32, #tpu.memory_space<vmem>>, vector<32x1xi32>
      tpu.vector_store %arg10[%c0_25, %c0_26], %47 {strides = array<i32>} : memref<32x1xi32, #tpu.memory_space<vmem>>, vector<32x1xi32>,
      %49 = vector.broadcast %47 : vector<32x1xi32> to vector<32x4xi32>
      %50 = arith.cmpi eq, %49, %41 : vector<32x4xi32>
      %51 = arith.extui %50 : vector<32x4xi1> to vector<32x4xi32>
      %52 = arith.sitofp %51 : vector<32x4xi32> to vector<32x4xf32>
      %cst_27 = arith.constant 0.000000e+00 : f32
      %53 = vector.broadcast %cst_27 : f32 to vector<8x128xf32>
      %c0_28 = arith.constant 0 : index
      %c0_29 = arith.constant 0 : index
      %54 = vector.load %arg11[%c0_28, %c0_29] : memref<8x128xf32, #tpu.memory_space<vmem>>, vector<8x128xf32>
      tpu.vector_store %arg11[%c0_28, %c0_29], %53 {strides = array<i32>} : memref<8x128xf32, #tpu.memory_space<vmem>>, vector<8x128xf32>,
      %cst_30 = arith.constant dense<0.000000e+00> : vector<4xf32>
      %55 = vector.multi_reduction <add>, %52, %cst_30 [0] : vector<32x4xf32> to vector<4xf32>
      %56 = vector.shape_cast %55 : vector<4xf32> to vector<1x4xf32>
      %c0_31 = arith.constant 0 : index
      %c0_32 = arith.constant 0 : index
      %57 = vector.load %arg11[%c0_31, %c0_32] : memref<8x128xf32, #tpu.memory_space<vmem>>, vector<1x4xf32>
      tpu.vector_store %arg11[%c0_31, %c0_32], %56 {strides = array<i32>} : memref<8x128xf32, #tpu.memory_space<vmem>>, vector<1x4xf32>,
      %cst_33 = arith.constant dense<0.000000e+00> : vector<4xf32>
      %58 = vector.multi_reduction <add>, %38, %cst_33 [0] : vector<32x4xf32> to vector<4xf32>
      %59 = vector.shape_cast %58 : vector<4xf32> to vector<1x4xf32>
      %c1 = arith.constant 1 : index
      %c0_34 = arith.constant 0 : index
      %60 = vector.load %arg11[%c1, %c0_34] : memref<8x128xf32, #tpu.memory_space<vmem>>, vector<1x4xf32>
      tpu.vector_store %arg11[%c1, %c0_34], %59 {strides = array<i32>} : memref<8x128xf32, #tpu.memory_space<vmem>>, vector<1x4xf32>,
      %61 = arith.mulf %40, %40 : vector<32x1xf32>
      %cst_35 = arith.constant dense<0.000000e+00> : vector<1xf32>
      %62 = vector.multi_reduction <add>, %61, %cst_35 [0] : vector<32x1xf32> to vector<1xf32>
      %63 = vector.shape_cast %62 : vector<1xf32> to vector<1x1xf32>
      %c2 = arith.constant 2 : index
      %c0_36 = arith.constant 0 : index
      %64 = vector.load %arg11[%c2, %c0_36] : memref<8x128xf32, #tpu.memory_space<vmem>>, vector<1x1xf32>
      tpu.vector_store %arg11[%c2, %c0_36], %63 {strides = array<i32>} : memref<8x128xf32, #tpu.memory_space<vmem>>, vector<1x1xf32>,
    } else {
    }
    return
  }
  func.func @transform_0(%arg0: i32, %arg1: i32) -> (i32, i32) {
    %c0_i32 = arith.constant 0 : i32
    return %arg0, %arg1 : i32, i32
  }
  func.func @transform_1(%arg0: i32, %arg1: i32) -> (i32, i32) {
    %c0_i32 = arith.constant 0 : i32
    %c0_i32_0 = arith.constant 0 : i32
    return %arg0, %c0_i32 : i32, i32
  }
  func.func @transform_2(%arg0: i32, %arg1: i32) -> (i32, i32) {
    %c0_i32 = arith.constant 0 : i32
    %c0_i32_0 = arith.constant 0 : i32
    return %c0_i32, %arg1 : i32, i32
  }
  func.func @transform_3(%arg0: i32, %arg1: i32) -> (i32, i32) {
    %c0_i32 = arith.constant 0 : i32
    %c0_i32_0 = arith.constant 0 : i32
    %c0_i32_1 = arith.constant 0 : i32
    return %c0_i32, %c0_i32_0 : i32, i32
  }
  func.func @transform_4(%arg0: i32, %arg1: i32) -> (i32, i32) {
    %c0_i32 = arith.constant 0 : i32
    %c0_i32_0 = arith.constant 0 : i32
    %c0_i32_1 = arith.constant 0 : i32
    return %c0_i32, %c0_i32_0 : i32, i32
  }
  func.func @transform_5(%arg0: i32, %arg1: i32) -> (i32, i32) {
    %c0_i32 = arith.constant 0 : i32
    %c0_i32_0 = arith.constant 0 : i32
    %c0_i32_1 = arith.constant 0 : i32
    return %c0_i32, %c0_i32_0 : i32, i32
  }
  func.func @transform_6(%arg0: i32, %arg1: i32) -> (i32, i32) {
    %c0_i32 = arith.constant 0 : i32
    %c0_i32_0 = arith.constant 0 : i32
    return %arg0, %c0_i32 : i32, i32
  }
  func.func @transform_7(%arg0: i32, %arg1: i32) -> (i32, i32) {
    %c0_i32 = arith.constant 0 : i32
    %c0_i32_0 = arith.constant 0 : i32
    return %arg0, %c0_i32 : i32, i32
  }
  func.func @transform_8(%arg0: i32, %arg1: i32) -> (i32, i32) {
    %c0_i32 = arith.constant 0 : i32
    %c0_i32_0 = arith.constant 0 : i32
    return %arg0, %c0_i32 : i32, i32
  }
  func.func @transform_9(%arg0: i32, %arg1: i32) -> (i32, i32) {
    %c0_i32 = arith.constant 0 : i32
    %c0_i32_0 = arith.constant 0 : i32
    return %arg0, %c0_i32 : i32, i32
  }
}

module attributes {stable_mosaic.version = 11 : i64} {
  func.func @expert_ffn_kernel(%arg0: i32, %arg1: i32, %arg2: i32, %arg3: memref<8xi32, #tpu.memory_space<smem>>, %arg4: memref<8xi32, #tpu.memory_space<smem>>, %arg5: memref<8xi32, #tpu.memory_space<smem>>, %arg6: memref<32x1xi32, #tpu.memory_space<vmem>>, %arg7: memref<32x32xbf16, #tpu.memory_space<vmem>>, %arg8: memref<1x32x64xbf16, #tpu.memory_space<vmem>>, %arg9: memref<1x32x64xbf16, #tpu.memory_space<vmem>>, %arg10: memref<1x64x32xbf16, #tpu.memory_space<vmem>>, %arg11: memref<32x32xf32, #tpu.memory_space<vmem>>) attributes {dimension_semantics = [#tpu.dimension_semantics<parallel>, #tpu.dimension_semantics<arbitrary>, #tpu.dimension_semantics<arbitrary>], iteration_bounds = array<i64: 2, 4, 1>, scalar_prefetch = 3 : i64, scratch_operands = 0 : i64, tpu.core_type = #tpu.core_type<tc>, window_params = [{transform_indices = @transform_0, window_bounds = array<i64: 32, 1>}, {transform_indices = @transform_1, window_bounds = array<i64: 32, 32>}, {transform_indices = @transform_2, window_bounds = array<i64: 1, 32, 64>}, {transform_indices = @transform_3, window_bounds = array<i64: 1, 32, 64>}, {transform_indices = @transform_4, window_bounds = array<i64: 1, 64, 32>}, {transform_indices = @transform_5, window_bounds = array<i64: 32, 32>}]} {
    %c0_i32 = arith.constant 0 : i32
    %0 = arith.cmpi eq, %arg1, %c0_i32 : i32
    %c0_i32_0 = arith.constant 0 : i32
    %1 = arith.cmpi eq, %arg2, %c0_i32_0 : i32
    %2 = arith.andi %0, %1 : i1
    %3 = arith.extui %2 : i1 to i32
    %c0_i32_1 = arith.constant 0 : i32
    %4 = arith.cmpi ne, %3, %c0_i32_1 : i32
    scf.if %4 {
      %cst = arith.constant 0.000000e+00 : f32
      %12 = vector.broadcast %cst : f32 to vector<32x32xf32>
      %c0 = arith.constant 0 : index
      %c0_3 = arith.constant 0 : index
      %13 = vector.load %arg11[%c0, %c0_3] : memref<32x32xf32, #tpu.memory_space<vmem>>, vector<32x32xf32>
      tpu.vector_store %arg11[%c0, %c0_3], %12 {strides = array<i32>} : memref<32x32xf32, #tpu.memory_space<vmem>>, vector<32x32xf32>,
    } else {
    }
    %c4_i32 = arith.constant 4 : i32
    %5 = arith.muli %arg0, %c4_i32 : i32
    %6 = arith.addi %5, %arg1 : i32
    %7 = arith.index_cast %6 : i32 to index
    %8 = memref.load %arg5[%7] : memref<8xi32, #tpu.memory_space<smem>>
    %c1_i32 = arith.constant 1 : i32
    %9 = arith.cmpi eq, %8, %c1_i32 : i32
    %10 = arith.extui %9 : i1 to i32
    %c0_i32_2 = arith.constant 0 : i32
    %11 = arith.cmpi ne, %10, %c0_i32_2 : i32
    scf.if %11 {
      %c0 = arith.constant 0 : index
      %c0_3 = arith.constant 0 : index
      %12 = vector.load %arg6[%c0, %c0_3] : memref<32x1xi32, #tpu.memory_space<vmem>>, vector<32x1xi32>
      %13 = vector.broadcast %arg1 : i32 to vector<32x1xi32>
      %14 = arith.cmpi eq, %12, %13 : vector<32x1xi32>
      %15 = arith.extui %14 : vector<32x1xi1> to vector<32x1xi32>
      %16 = arith.sitofp %15 : vector<32x1xi32> to vector<32x1xf32>
      %c0_4 = arith.constant 0 : index
      %c0_5 = arith.constant 0 : index
      %17 = vector.load %arg7[%c0_4, %c0_5] : memref<32x32xbf16, #tpu.memory_space<vmem>>, vector<32x32xbf16>
      %c0_6 = arith.constant 0 : index
      %c0_7 = arith.constant 0 : index
      %c0_8 = arith.constant 0 : index
      %18 = vector.load %arg8[%c0_6, %c0_7, %c0_8] : memref<1x32x64xbf16, #tpu.memory_space<vmem>>, vector<1x32x64xbf16>
      %19 = vector.shape_cast %18 : vector<1x32x64xbf16> to vector<32x64xbf16>
      %cst = arith.constant dense<0.000000e+00> : vector<32x64xf32>
      %20 = tpu.matmul %17, %19, %cst {dimension_numbers = #tpu.dot_dimension_numbers<[1], [0], [0], [1], [0, 0, 1, 1], [], []>} : vector<32x32xbf16>, vector<32x64xbf16>, vector<32x64xf32> -> vector<32x64xf32>
      %c0_9 = arith.constant 0 : index
      %c0_10 = arith.constant 0 : index
      %c0_11 = arith.constant 0 : index
      %21 = vector.load %arg9[%c0_9, %c0_10, %c0_11] : memref<1x32x64xbf16, #tpu.memory_space<vmem>>, vector<1x32x64xbf16>
      %22 = vector.shape_cast %21 : vector<1x32x64xbf16> to vector<32x64xbf16>
      %cst_12 = arith.constant dense<0.000000e+00> : vector<32x64xf32>
      %23 = tpu.matmul %17, %22, %cst_12 {dimension_numbers = #tpu.dot_dimension_numbers<[1], [0], [0], [1], [0, 0, 1, 1], [], []>} : vector<32x32xbf16>, vector<32x64xbf16>, vector<32x64xf32> -> vector<32x64xf32>
      %cst_13 = arith.constant 0.000000e+00 : f32
      %24 = vector.broadcast %cst_13 : f32 to vector<32x64xf32>
      %25 = arith.subf %24, %20 : vector<32x64xf32>
      %26 = math.exp %25 : vector<32x64xf32>
      %cst_14 = arith.constant 1.000000e+00 : f32
      %27 = vector.broadcast %cst_14 : f32 to vector<32x64xf32>
      %28 = arith.addf %27, %26 : vector<32x64xf32>
      %29 = tpu.reciprocal %28 {approx = true} : vector<32x64xf32> -> vector<32x64xf32>
      %30 = arith.mulf %20, %29 : vector<32x64xf32>
      %31 = arith.mulf %30, %23 : vector<32x64xf32>
      %32 = arith.truncf %31 : vector<32x64xf32> to vector<32x64xbf16>
      %c0_15 = arith.constant 0 : index
      %c0_16 = arith.constant 0 : index
      %c0_17 = arith.constant 0 : index
      %33 = vector.load %arg10[%c0_15, %c0_16, %c0_17] : memref<1x64x32xbf16, #tpu.memory_space<vmem>>, vector<1x64x32xbf16>
      %34 = vector.shape_cast %33 : vector<1x64x32xbf16> to vector<64x32xbf16>
      %cst_18 = arith.constant dense<0.000000e+00> : vector<32x32xf32>
      %35 = tpu.matmul %32, %34, %cst_18 {dimension_numbers = #tpu.dot_dimension_numbers<[1], [0], [0], [1], [0, 0, 1, 1], [], []>} : vector<32x64xbf16>, vector<64x32xbf16>, vector<32x32xf32> -> vector<32x32xf32>
      %c0_19 = arith.constant 0 : index
      %c0_20 = arith.constant 0 : index
      %36 = vector.load %arg11[%c0_19, %c0_20] : memref<32x32xf32, #tpu.memory_space<vmem>>, vector<32x32xf32>
      %37 = vector.broadcast %16 : vector<32x1xf32> to vector<32x32xf32>
      %38 = arith.mulf %37, %35 : vector<32x32xf32>
      %39 = arith.addf %36, %38 : vector<32x32xf32>
      %c0_21 = arith.constant 0 : index
      %c0_22 = arith.constant 0 : index
      %40 = vector.load %arg11[%c0_21, %c0_22] : memref<32x32xf32, #tpu.memory_space<vmem>>, vector<32x32xf32>
      tpu.vector_store %arg11[%c0_21, %c0_22], %39 {strides = array<i32>} : memref<32x32xf32, #tpu.memory_space<vmem>>, vector<32x32xf32>,
    } else {
    }
    return
  }
  func.func @transform_0(%arg0: i32, %arg1: i32, %arg2: i32, %arg3: memref<8xi32, #tpu.memory_space<smem>>, %arg4: memref<8xi32, #tpu.memory_space<smem>>, %arg5: memref<8xi32, #tpu.memory_space<smem>>) -> (i32, i32) {
    %c0_i32 = arith.constant 0 : i32
    %c0_i32_0 = arith.constant 0 : i32
    return %arg0, %c0_i32 : i32, i32
  }
  func.func @transform_1(%arg0: i32, %arg1: i32, %arg2: i32, %arg3: memref<8xi32, #tpu.memory_space<smem>>, %arg4: memref<8xi32, #tpu.memory_space<smem>>, %arg5: memref<8xi32, #tpu.memory_space<smem>>) -> (i32, i32) {
    %c0_i32 = arith.constant 0 : i32
    %c0_i32_0 = arith.constant 0 : i32
    return %arg0, %c0_i32 : i32, i32
  }
  func.func @transform_2(%arg0: i32, %arg1: i32, %arg2: i32, %arg3: memref<8xi32, #tpu.memory_space<smem>>, %arg4: memref<8xi32, #tpu.memory_space<smem>>, %arg5: memref<8xi32, #tpu.memory_space<smem>>) -> (i32, i32, i32) {
    %c4_i32 = arith.constant 4 : i32
    %0 = arith.muli %arg0, %c4_i32 : i32
    %1 = arith.addi %0, %arg1 : i32
    %c1_i32 = arith.constant 1 : i32
    %2 = arith.muli %1, %c1_i32 : i32
    %3 = arith.addi %2, %arg2 : i32
    %4 = arith.index_cast %3 : i32 to index
    %5 = memref.load %arg3[%4] : memref<8xi32, #tpu.memory_space<smem>>
    %c4_i32_0 = arith.constant 4 : i32
    %6 = arith.muli %arg0, %c4_i32_0 : i32
    %7 = arith.addi %6, %arg1 : i32
    %c1_i32_1 = arith.constant 1 : i32
    %8 = arith.muli %7, %c1_i32_1 : i32
    %9 = arith.addi %8, %arg2 : i32
    %10 = arith.index_cast %9 : i32 to index
    %11 = memref.load %arg4[%10] : memref<8xi32, #tpu.memory_space<smem>>
    %c0_i32 = arith.constant 0 : i32
    %c0_i32_2 = arith.constant 0 : i32
    return %5, %c0_i32, %11 : i32, i32, i32
  }
  func.func @transform_3(%arg0: i32, %arg1: i32, %arg2: i32, %arg3: memref<8xi32, #tpu.memory_space<smem>>, %arg4: memref<8xi32, #tpu.memory_space<smem>>, %arg5: memref<8xi32, #tpu.memory_space<smem>>) -> (i32, i32, i32) {
    %c4_i32 = arith.constant 4 : i32
    %0 = arith.muli %arg0, %c4_i32 : i32
    %1 = arith.addi %0, %arg1 : i32
    %c1_i32 = arith.constant 1 : i32
    %2 = arith.muli %1, %c1_i32 : i32
    %3 = arith.addi %2, %arg2 : i32
    %4 = arith.index_cast %3 : i32 to index
    %5 = memref.load %arg3[%4] : memref<8xi32, #tpu.memory_space<smem>>
    %c4_i32_0 = arith.constant 4 : i32
    %6 = arith.muli %arg0, %c4_i32_0 : i32
    %7 = arith.addi %6, %arg1 : i32
    %c1_i32_1 = arith.constant 1 : i32
    %8 = arith.muli %7, %c1_i32_1 : i32
    %9 = arith.addi %8, %arg2 : i32
    %10 = arith.index_cast %9 : i32 to index
    %11 = memref.load %arg4[%10] : memref<8xi32, #tpu.memory_space<smem>>
    %c0_i32 = arith.constant 0 : i32
    %c0_i32_2 = arith.constant 0 : i32
    return %5, %c0_i32, %11 : i32, i32, i32
  }
  func.func @transform_4(%arg0: i32, %arg1: i32, %arg2: i32, %arg3: memref<8xi32, #tpu.memory_space<smem>>, %arg4: memref<8xi32, #tpu.memory_space<smem>>, %arg5: memref<8xi32, #tpu.memory_space<smem>>) -> (i32, i32, i32) {
    %c4_i32 = arith.constant 4 : i32
    %0 = arith.muli %arg0, %c4_i32 : i32
    %1 = arith.addi %0, %arg1 : i32
    %c1_i32 = arith.constant 1 : i32
    %2 = arith.muli %1, %c1_i32 : i32
    %3 = arith.addi %2, %arg2 : i32
    %4 = arith.index_cast %3 : i32 to index
    %5 = memref.load %arg3[%4] : memref<8xi32, #tpu.memory_space<smem>>
    %c4_i32_0 = arith.constant 4 : i32
    %6 = arith.muli %arg0, %c4_i32_0 : i32
    %7 = arith.addi %6, %arg1 : i32
    %c1_i32_1 = arith.constant 1 : i32
    %8 = arith.muli %7, %c1_i32_1 : i32
    %9 = arith.addi %8, %arg2 : i32
    %10 = arith.index_cast %9 : i32 to index
    %11 = memref.load %arg4[%10] : memref<8xi32, #tpu.memory_space<smem>>
    %c0_i32 = arith.constant 0 : i32
    %c0_i32_2 = arith.constant 0 : i32
    return %5, %11, %c0_i32 : i32, i32, i32
  }
  func.func @transform_5(%arg0: i32, %arg1: i32, %arg2: i32, %arg3: memref<8xi32, #tpu.memory_space<smem>>, %arg4: memref<8xi32, #tpu.memory_space<smem>>, %arg5: memref<8xi32, #tpu.memory_space<smem>>) -> (i32, i32) {
    %c0_i32 = arith.constant 0 : i32
    %c0_i32_0 = arith.constant 0 : i32
    return %arg0, %c0_i32 : i32, i32
  }
}

</mosaic_0001>

<bundles_post_ra>
// kernel: moe_decoder_forward.4
= control target key start
LH: loop header
LB: loop body
LE: loop exit
PB: predicated region body
PF: predicated region fallthrough
CT: control target
= control target key end

     0   :  { %8 = vsyncpa [#allocation4], 0  ;;  %s836_s0 = inlined_call_operand.hbm [shape: f32[64,32], index: 0, kind: input, shape index: {}]   ;;  %s837_s1 = inlined_call_operand.vmem [shape: f32[1,32], index: 1, kind: input, shape index: {}]   ;;  %s838_s2 = inlined_call_operand.vmem [shape: bf16[32,96], index: 2, kind: input, shape index: {}]   ;;  %s839_s3 = inlined_call_operand.vmem [shape: bf16[64,96], index: 3, kind: output, shape index: {}]  }
   0x1   :  { %10 = vsyncpa [#allocation4 + $0x1], 0  ;;  %s696_s12 = smov 0   ;;  %s698_s13 = smov 0  }
   0x2   :  { %s700_s14 = smov 0   ;;  %s702_s15 = smov 0  }
   0x3   :  { %s704_s16 = smov 0   ;;  %s706_s17 = smov 0  }
   0x4 LB: > { %s484_s18 = sadd.s32 4294967295, %s671_s17   ;;  %s28_s19 = sadd.s32 1, %s667_s16  ;;  %s671_s17 = sphi %s706_s17, %s16_s17   ;;  %s667_s16 = sphi %s704_s16, %s847_s16   ;;  %s663_s15 = sphi %s702_s15, %s846_s15   ;;  %s659_s14 = sphi %s700_s14, %s845_s14   ;;  %s655_s13 = sphi %s698_s13, %s844_s13   ;;  %s651_s12 = sphi %s696_s12, %s843_s12  }
   0x5   : > { %p30_p0 = scmp.ge.s32.totalorder %s28_s19, 2  ;;  %s35_s20 = sadd.s32 1, %s659_s14 }
   0x6   : > { %p42_p1 = scmp.ne.s32.totalorder %s659_s14, %s655_s13  ;;  %p43_p2 = scmp.eq.s32.totalorder %s671_s17, 0 }
   0x7   : > { %s849_s19 = smov (%p30_p0, %s28_s19), 0  ;;  %p48_p4 = scmp.ne.s32.totalorder %s655_s13, %s651_s12 }
   0x8   : > { %p732_p3 = por %p43_p2, %p42_p1  ;;  %s32_s22 = ssub.s32 %s667_s16, %s849_s19 }
   0x9   : > { %p49_p5 = scmp.eq.s32.totalorder %s484_s18, 0  ;;  %p33_p6 = scmp.eq.s32.totalorder %s32_s22, 0 }
   0xa   : > { %p530_p8 = scmp.lt.s32.totalorder %s671_s17, 2  ;;  %s157_s25 = sand.u32 1, %s659_s14  }
   0xb   : > { %p739_p7 = por %p49_p5, %p48_p4  ;;  %s507_s26 = sshll.u32 %s667_s16, 9 }
   0xc   : > { %s745_s24 = scalar_select %p33_p6, %s659_s14, %s35_s20  }
   0xd   : > { %s489_s27 = sshll.u32 %s157_s25, 5  ;;  %s752_s30 = scalar_lea.hbm %s836_s0, %s507_s26 }
   0xe   : > { %s161_s4 = scalar_lea.vmem [#allocation3], %s489_s27  ;;  %p756_p9 = pnand %p530_p8, %p732_p3 }
   0xf   : > { %s168_s5 = sshll.u32 %s161_s4, 4  ;;  %s762_s7 = scalar_lea.sflag [#allocation4], %s157_s25  ;;  %s760_s5 = int_to_ptr.vmem [resolvable:$true] %s168_s5 }
  0x10   : > { %s591_s8 = scalar_lea.hbm %s752_s30, 512  ;;  %p593_p11 = pneg %p756_p9 }
  0x11   : > { %p592_p10 = scmp.ne.s32.totalorder %s752_s30, %s591_s8  ;;  %s596_s11 = scalar_lea.hbm %s836_s0, 1024 }
  0x12   : > { %p597_p0 = scmp.lt.u32.totalorder %s752_s30, %s836_s0  ;;  %p598_p1 = scmp.lt.u32.totalorder %s596_s11, %s591_s8 }
  0x13   : > { %p594_p12 = pnand %p593_p11, %p592_p10  ;;  %p600_p3 = scmp.lt.u32.totalorder %s591_s8, %s752_s30 }
  0x14   : > { %p599_p2 = por %p598_p1, %p597_p0 }
  0x15   : > { %p595_p13 = pneg %p594_p12 }
  0x16   : > { %p601_p4 = por %p600_p3, %p599_p2 }
  0x18   : > { %p602_p5 = pnand %p601_p4, %p595_p13 }
  0x1a   : > { %605 = shalt.err (!%p602_p5)
}
  0x1b   : > { %s606_s20 = scalar_lea.vmem %s760_s5, 512  ;;  %s673_s21 = smov [#allocation3]  }
  0x1c   : > { %p607_p6 = scmp.ne.s32.totalorder %s760_s5, %s606_s20  ;;  %s611_s22 = sshll.u32 %s673_s21, 4  ;;  %s612_s22 = int_to_ptr.vmem [resolvable:$false] %s611_s22 }
  0x1d   : > { %s613_s25 = scalar_lea.vmem %s612_s22, 1024  ;;  %p614_p12 = scmp.lt.s32.totalorder %s760_s5, %s612_s22 }
  0x1e   : > { %p609_p8 = pnand %p607_p6, %p593_p11  ;;  %p615_p0 = scmp.lt.s32.totalorder %s613_s25, %s606_s20 }
  0x20   : > { %p610_p10 = pneg %p609_p8  ;;  %p616_p1 = por %p615_p0, %p614_p12 }
  0x22   : > { %p617_p2 = pnand %p616_p1, %p610_p10 }
  0x24   : > { %620 = shalt.err (!%p617_p2)
}
  0x25   : > { %s674_s26 = smov 128   ;;  %s675_s27 = smov 8  }
  0x26   : > { %529 = dma.hbm_to_vmem [thread:$0]  (!%p756_p9), %s752_s30, 512, %s760_s5, %s762_s7, %s674_s26, %s674_s26, %s675_s27  }
  0x27   : > { %p492_p11 = scmp.ge.s32.totalorder %s671_s17, 1  ;;  %p176_p13 = scmp.lt.s32.totalorder %s671_s17, 3 }
  0x29   : > { %p177_p3 = pnand %p492_p11, %p176_p13 }
  0x2a   : > { %s182_s28 = sand.u32 (!%p177_p3), 1, %s655_s13  }
  0x2b   : > { %180 = sbr.rel (%p177_p3) target bundleno = 450 (0x1c2), region = 32  ;;  %s493_s29 = sshll.u32 (!%p177_p3), %s182_s28, 5 }
  0x2c   : > { %s183_s4 = scalar_lea.sflag (!%p177_p3), [#allocation4], %s182_s28  ;;  %s186_s8 = scalar_lea.vmem (!%p177_p3), [#allocation3], %s493_s29 }
  0x32   : > { %646 = dma.done.wait (%p739_p7), %s183_s4, 512  }
  0x33   : > { %648 = vsyncadd (%p739_p7), %s183_s4, 4294966784  ;;  %v237_v0 = vld [vmem:[%s186_s8 + $0x10] sm:$0xff]  ;;  %vm244_vm0 = vcmask 261120   ;;  %v235_v1 = vld [vmem:[%s186_s8] sm:$0xff]  ;;  %s494_s10 = sshll.u32 %s663_s15, 2  ;;  %vm378_vm1 = vcmask 781312  }
  0x34   : > { %v238_v2 = vld [vmem:[%s186_s8 + $0x18] sm:$0xff]  ;;  %v242_v3 = vmul.f32 %v237_v0, %v237_v0  ;;  %v240_v4 = vmul.f32 %v235_v1, %v235_v1  ;;  %v236_v6 = vld [vmem:[%s186_s8 + $0x8] sm:$0xff]  ;;  %v581_v12 = vld [vmem:[%s838_s2] sm:$0xff]   ;;  %p222_p7 = scmp.lt.s32.totalorder %s494_s10, 7 }
  0x35   : > { %v243_v5 = vmul.f32 %v238_v2, %v238_v2  ;;  %v241_v7 = vmul.f32 %v236_v6, %v236_v6  ;;  %v582_v13 = vld [vmem:[%s838_s2 + $0x8] sm:$0xff]   ;;  %516 = vmatprep.subr.bf16.mxu0 %v581_v12  ;;  %v496_v30 = vld [vmem:[%s837_s1] ss:$0 sm:$0xff] }
  0x36   : > { %v251_v8 = vsel %vm244_vm0, %v242_v3, 0.0  ;;  %v245_v9 = vsel %vm244_vm0, %v240_v4, 0.0  ;;  %517 = vmatpush3.bf16.msra.mxu0 %v581_v12  ;;  %s851_s10 = smov (!%p222_p7, %s494_s10), 7 }
  0x37   : > { %252 = vadd.xlane.f32.xlu1 %v251_v8  ;;  %246 = vadd.xlane.f32.xlu0 %v245_v9  ;;  %v254_v10 = vsel %vm244_vm0, %v243_v5, 0.0  ;;  %v248_v11 = vsel %vm244_vm0, %v241_v7, 0.0  ;;  %s495_s11 = sshll.u32 %s851_s10, 2 }
  0x38   : > { %518 = vmatprep.subr.bf16.mxu0 %v582_v13  ;;  %s228_s20 = scalar_lea.vmem %s839_s3, %s495_s11 }
  0x3a   : > { %519 = vmatpush3.bf16.msra.mxu0 %v582_v13 }
  0x3b   : > { %255 = vadd.xlane.f32.xlu1 %v254_v10  ;;  %249 = vadd.xlane.f32.xlu0 %v248_v11 }
  0xc4   : > { %v253_v14 = vpop.xlane.xlu1 %252  ;;  %v247_v15 = vpop.xlane.xlu0 %246 }
  0xc5   : > { %v260_v16 = vmul.f32 0.03125, %v253_v14  ;;  %v258_v17 = vmul.f32 0.03125, %v247_v15 }
  0xc7   : > { %v264_v18 = vadd.f32 1e-06, %v260_v16  ;;  %v262_v19 = vadd.f32 1e-06, %v258_v17 }
  0xc8   : > { %v256_v20 = vpop.xlane.xlu1 %255  ;;  %v250_v21 = vpop.xlane.xlu0 %249 }
  0xc9   : > { %583 = vrsqrt.f32 %v264_v18  ;;  %v261_v22 = vmul.f32 0.03125, %v256_v20  ;;  %v259_v23 = vmul.f32 0.03125, %v250_v21 }
  0xca   : > { %585 = vrsqrt.f32 %v262_v19 }
  0xcb   : > { %v265_v24 = vadd.f32 1e-06, %v261_v22  ;;  %v263_v25 = vadd.f32 1e-06, %v259_v23 }
  0xcd   : > { %587 = vrsqrt.f32 %v265_v24 }
  0xce   : > { %589 = vrsqrt.f32 %v263_v25 }
  0xd3   : > { %v584_v26 = vpop.eup %583 }
  0xd4   : > { %v586_v27 = vpop.eup %585  ;;  %v272_v28 = vmul.f32 %v584_v26, %v237_v0 }
  0xd5   : > { %v270_v31 = vmul.f32 %v586_v27, %v235_v1 }
  0xd6   : > { %v282_v35 = vmul.f32 %v496_v30, %v272_v28 }
  0xd7   : > { %v588_v29 = vpop.eup %587  ;;  %v280_v37 = vmul.f32 %v496_v30, %v270_v31 }
  0xd8   : > { %v590_v32 = vpop.eup %589  ;;  %v273_v33 = vmul.f32 %v588_v29, %v238_v2 }
  0xd9   : > { %v271_v34 = vmul.f32 %v590_v32, %v236_v6 }
  0xda   : > { %v283_v36 = vmul.f32 %v496_v30, %v273_v33 }
  0xdb   : > { %v281_v38 = vmul.f32 %v496_v30, %v271_v34 }
  0xdc   : > { %v285_v39 = vpack.c.bf16 %v283_v36, %v282_v35 }
  0xdd   : > { %v284_v40 = vpack.c.bf16 %v281_v38, %v280_v37 }
  0xde   : > { %287 = vst.msk [vmem:[#allocation2 + $0x8] sm:$0xff] %vm244_vm0, %v285_v39 }
  0xdf   : > { %286 = vst.msk [vmem:[#allocation2] sm:$0xff] %vm244_vm0, %v284_v40 }
  0xe5   : > { %v289_v41 = vld [vmem:[#allocation2 + $0x8] sm:$0xff] }
  0xe6   : > { %v288_v42 = vld [vmem:[#allocation2] sm:$0xff] }
  0xe7   : > { %520 = vmatprep.mubr.msk.bf16.mxu0 %vm244_vm0, %v288_v42 }
  0xe8   : > { %521 = vmatmul.mubr.msk.bf16.vlgmr.msra.gmra.mrb[0].mxu0 %vm244_vm0, %v289_v41 }
 0x1bb   : > { %v522_v43 = vpop.f32.mrb[0].mxu0 }
 0x1bc   : > { %v347_v44 = vpop.f32.mrb[1].mxu0  ;;  %v510_v49 = vpack.c.bf16 %v522_v43, %v522_v43 }
 0x1bd   : > { %v508_v45 = vpack.c.bf16 %v347_v44, %v347_v44  ;;  %v523_v46 = vpop.f32.mrb[2].mxu0 }
 0x1be   : > { %v350_v47 = vpop.f32.mrb[3].mxu0  ;;  %v511_v50 = vpack.c.bf16 %v523_v46, %v523_v46  ;;  %381 = vst.msk [vmem:[%s228_s20 + $0x8] sm:$0xf] %vm378_vm1, %v510_v49 }
 0x1bf   : > { %379 = vst.msk [vmem:[%s228_s20] sm:$0xf] %vm378_vm1, %v508_v45  ;;  %v509_v48 = vpack.c.bf16 %v350_v47, %v350_v47 }
 0x1c0   : > { %382 = vst.msk [vmem:[%s228_s20 + $0xc] sm:$0xf] %vm378_vm1, %v511_v50 }
 0x1c1   : > { %380 = vst.msk [vmem:[%s228_s20 + $0x4] sm:$0xf] %vm378_vm1, %v509_v48 }
 0x1c2 PF: > { %s16_s17 = sadd.s32 1, %s671_s17   ;;  %s843_s12 = smov %s655_s13 }
 0x1c3   : > { %p13_p9 = scmp.ge.s32.totalorder %s16_s17, 4   ;;  %s844_s13 = smov %s659_s14 }
 0x1c4   : > { %s845_s14 = smov %s745_s24  ;;  %s846_s15 = smov %s667_s16 }
 0x1c5   : > { %s847_s16 = smov %s849_s19  ;;  %15 = sbr.rel (!%p13_p9) target bundleno = 4 (0x4), region = 79 }
 0x1cc   :  { %411 = vsyncpa [#allocation4], 1 }
 0x1cd   :  { %413 = vsyncpa [#allocation4 + $0x1], 1 }

// kernel: tile.9
= control target key start
LH: loop header
LB: loop body
LE: loop exit
PB: predicated region body
PF: predicated region fallthrough
CT: control target
= control target key end

     0   :  { %vm7_vm0 = vcmask 31744   ;;  %vm13_vm1 = vcmask 64544   ;;  %s39_s0 = inlined_call_operand.vmem [shape: s32[2,4], index: 0, kind: input, shape index: {}]   ;;  %s40_s1 = inlined_call_operand.vmem [shape: s32[8], index: 1, kind: output, shape index: {}]  }
   0x1   :  { %v4_v0 = vld [vmem:[%s39_s0] sm:$0x3]  ;;  %s22_s0 = smov 4  }
   0x2   :  { %5 = vst [vmem:[#allocation1] sm:$0x3] %v4_v0 }
   0x9   :  { %v10_v1 = vld [vmem:[#allocation1 + $0x1] sm:$0x1]   ;;  %v6_v2 = vld [vmem:[#allocation1] sm:$0x1]  }
   0xa   :  { %11 = vrot.lane.b32.xlu0 %v10_v1, %s22_s0  ;;  %8 = vst.msk [vmem:[#allocation0] sm:$0x1] %vm7_vm0, %v6_v2  }
  0x7c   :  { %v12_v3 = vpop.permute.xlu0 %11  }
  0x7d   :  { %14 = vst.msk [vmem:[#allocation0] sm:$0x1] %vm13_vm1, %v12_v3  }
  0x84   :  { %v18_v4 = vld [vmem:[#allocation0] sm:$0x1] }
  0x85   :  { %20 = vst [vmem:[%s40_s1] sm:$0x1] %v18_v4 }

// kernel: moe_decoder_forward.6
= control target key start
LH: loop header
LB: loop body
LE: loop exit
PB: predicated region body
PF: predicated region fallthrough
CT: control target
= control target key end

     0   :  { %s1319_s30 = smov 0   ;;  %s1321_s10 = smov 0   ;;  %s1515_s0 = inlined_call_operand.vmem [shape: f32[64,32], index: 0, kind: input, shape index: {}]   ;;  %s1516_s1 = inlined_call_operand.vmem [shape: bf16[64,32], index: 1, kind: input, shape index: {}]   ;;  %s1517_s2 = inlined_call_operand.vmem [shape: bf16[32,32], index: 2, kind: input, shape index: {}]   ;;  %s1518_s3 = inlined_call_operand.vmem [shape: f32[1,32], index: 3, kind: input, shape index: {}]   ;;  %s1519_s4 = inlined_call_operand.vmem [shape: f32[32,4], index: 4, kind: input, shape index: {}]   ;;  %s1520_s5 = inlined_call_operand.vmem [shape: f32[1,4], index: 5, kind: input, shape index: {}]   ;;  %s1521_s6 = inlined_call_operand.vmem [shape: f32[64,32], index: 6, kind: output, shape index: {0}]   ;;  %s1522_s7 = inlined_call_operand.vmem [shape: bf16[64,32], index: 7, kind: output, shape index: {1}]   ;;  %s1523_s8 = inlined_call_operand.vmem [shape: s32[64,1], index: 8, kind: output, shape index: {2}]   ;;  %s1524_s9 = inlined_call_operand.vmem [shape: f32[16,128], index: 9, kind: output, shape index: {3}]  }
   0x1   :  { %s1323_s11 = smov 0  }
   0x2 LB: > { %s32_s12 = sadd.s32 1, %s1262_s10  ;;  %p1103_p0 = scmp.ge.s32.totalorder %s1266_s11, 1  ;;  %s1266_s11 = sphi %s1323_s11, %s20_s11   ;;  %s1262_s10 = sphi %s1321_s10, %s1526_s10   ;;  %s1258_s30 = sphi %s1319_s30, %s1525_s30  }
   0x3   : > { %p34_p1 = scmp.ge.s32.totalorder %s32_s12, 2  ;;  %p332_p2 = scmp.lt.s32.totalorder %s1266_s11, 3 }
   0x5   : > { %s1528_s12 = smov (%p34_p1, %s32_s12), 0  ;;  %p333_p3 = pnand %p1103_p0, %p332_p2 }
   0x6   : > { %v1208_v0 = vld [vmem:[%s1517_s2] sm:$0xff] (!%p333_p3)   ;;  %s1104_s15 = sshll.u32 (!%p333_p3), %s1258_s30, 2  ;;  %v1209_v1 = vld [vmem:[%s1517_s2 + $0x8] sm:$0xff] (!%p333_p3)   ;;  %vm466_vm0 = vcmask (!%p333_p3), 261120   ;;  %v609_v30 = vld [vmem:[%s1519_s4 + $0x10] sm:$0xff] (!%p333_p3)  ;;  %vm602_vm1 = vcmask (!%p333_p3), 257024  }
   0x7   : > { %336 = sbr.rel (%p333_p3) target bundleno = 1089 (0x441), region = 44  ;;  %p395_p4 = scmp.lt.s32.totalorder (!%p333_p3), %s1104_s15, 7  ;;  %1153 = vmatprep.subr.bf16.mxu0 (!%p333_p3), %v1208_v0  ;;  %v607_v28 = vld [vmem:[%s1519_s4] sm:$0xff] (!%p333_p3)  ;;  %v608_v29 = vld [vmem:[%s1519_s4 + $0x8] sm:$0xff] (!%p333_p3)  ;;  %v610_v32 = vld [vmem:[%s1519_s4 + $0x18] sm:$0xff] (!%p333_p3)  ;;  %vm715_vm2 = vcmask (!%p333_p3), 31744  }
   0x8   : > { %1154 = vmatpush3.bf16.msra.mxu0 (!%p333_p3), %v1208_v0  ;;  %v1175_v31 = vpack.c.bf16 (!%p333_p3), %v608_v29, %v607_v28  ;;  %v1179_v33 = vpack.c.bf16 (!%p333_p3), %v610_v32, %v609_v30  ;;  %v1121_v48 = vld [vmem:[%s1518_s3] ss:$0 sm:$0xff] (!%p333_p3)  ;;  %p431_p5 = scmp.lt.s32.totalorder (!%p333_p3), %s1258_s30, 1  ;;  %vm873_vm11 = vcmask (!%p333_p3), 24576   ;;  %vm902_vm12 = vcmask (!%p333_p3), 0  }
   0x9   : > { %1155 = vmatprep.subr.bf16.mxu0 (!%p333_p3), %v1209_v1  ;;  %v1126_v63 = vld [vmem:[%s1520_s5] ss:$0 sm:$0xff] (!%p333_p3)  ;;  %vm842_vm13 = vcmask (!%p333_p3), 7168  }
   0xa   : > { %1176 = vmatprep.subr.bf16.mxu1 (!%p333_p3), %v1175_v31 }
   0xb   : > { %1178 = vmatpush3.bf16.msra.mxu1 (!%p333_p3), %v1175_v31 }
   0xc   : > { %1156 = vmatpush3.bf16.msra.mxu0 (!%p333_p3), %v1209_v1  ;;  %1180 = vmatprep.subr.bf16.mxu1 (!%p333_p3), %v1179_v33 }
   0xe   : > { %s1530_s15 = smov (!%p395_p4, %s1104_s15), 7  ;;  %s1532_s30 = smov (!%p431_p5, %s1258_s30), 1 }
   0xf   : > { %s1107_s18 = sshll.u32 %s1530_s15, 2  ;;  %s1357_s22 = sshll.u32 %s1530_s15, 3  ;;  %1182 = vmatpush3.bf16.msra.mxu1 %v1179_v33 }
  0x10   : > { %s407_s21 = scalar_lea.vmem %s1516_s1, %s1107_s18  ;;  %s401_s25 = scalar_lea.vmem %s1515_s0, %s1357_s22 }
  0x11   : > { %v1210_v2 = vld [vmem:[%s407_s21] sm:$0xff]   ;;  %v1211_v3 = vld [vmem:[%s407_s21 + $0x8] sm:$0xff]   ;;  %v524_v4 = vld [vmem:[%s401_s25 + $0x10] sm:$0xff]  ;;  %s417_s28 = scalar_lea.vmem %s1521_s6, %s1357_s22  ;;  %s423_s27 = scalar_lea.vmem %s1522_s7, %s1107_s18 }
  0x12   : > { %1157 = vmatprep.mubr.msk.bf16.mxu0 %vm466_vm0, %v1210_v2  ;;  %v522_v5 = vld [vmem:[%s401_s25] sm:$0xff]  ;;  %v525_v7 = vld [vmem:[%s401_s25 + $0x18] sm:$0xff]  ;;  %v523_v10 = vld [vmem:[%s401_s25 + $0x8] sm:$0xff]  ;;  %s429_s17 = scalar_lea.vmem %s1523_s8, %s1357_s22 }
  0x13   : > { %1158 = vmatmul.mubr.msk.bf16.vlgmr.msra.gmra.mrb[0].mxu0 %vm466_vm0, %v1211_v3 }
  0xe6   : > { %v1159_v6 = vpop.f32.mrb[0].mxu0 }
  0xe7   : > { %v528_v8 = vadd.f32 %v1159_v6, %v524_v4  ;;  %v507_v9 = vpop.f32.mrb[1].mxu0 }
  0xe8   : > { %v526_v11 = vadd.f32 %v522_v5, %v507_v9  ;;  %v1160_v12 = vpop.f32.mrb[2].mxu0 }
  0xe9   : > { %v529_v13 = vadd.f32 %v1160_v12, %v525_v7  ;;  %v510_v14 = vpop.f32.mrb[3].mxu0  ;;  %532 = vst.msk [vmem:[%s417_s28 + $0x10] sm:$0xff] %vm466_vm0, %v528_v8  ;;  %v772_v12 = vlaneseq }
  0xea   : > { %530 = vst.msk [vmem:[%s417_s28] sm:$0xff] %vm466_vm0, %v526_v11  ;;  %v527_v15 = vadd.f32 %v523_v10, %v510_v14 }
  0xeb   : > { %533 = vst.msk [vmem:[%s417_s28 + $0x18] sm:$0xff] %vm466_vm0, %v529_v13  ;;  %v1410_v13 = vand.u32 127, %v772_v12 }
  0xec   : > { %531 = vst.msk [vmem:[%s417_s28 + $0x8] sm:$0xff] %vm466_vm0, %v527_v15 }
  0xf0   : > { %v540_v16 = vld [vmem:[%s417_s28 + $0x10] sm:$0xff] }
  0xf1   : > { %v538_v17 = vld [vmem:[%s417_s28] sm:$0xff]  ;;  %v545_v19 = vmul.f32 %v540_v16, %v540_v16 }
  0xf2   : > { %v541_v18 = vld [vmem:[%s417_s28 + $0x18] sm:$0xff]  ;;  %v543_v20 = vmul.f32 %v538_v17, %v538_v17 }
  0xf3   : > { %v539_v21 = vld [vmem:[%s417_s28 + $0x8] sm:$0xff]  ;;  %v553_v22 = vsel %vm466_vm0, %v545_v19, 0.0  ;;  %v546_v24 = vmul.f32 %v541_v18, %v541_v18  ;;  %s1114_s28 = sshll.u32 %s1532_s30, 3 }
  0xf4   : > { %v547_v23 = vsel %vm466_vm0, %v543_v20, 0.0  ;;  %v544_v25 = vmul.f32 %v539_v21, %v539_v21  ;;  %554 = vadd.xlane.f32.xlu1 %v553_v22  ;;  %s1451_s14 = scalar_lea.vmem %s1524_s9, %s1114_s28 }
  0xf5   : > { %548 = vadd.xlane.f32.xlu0 %v547_v23  ;;  %v556_v26 = vsel %vm466_vm0, %v546_v24, 0.0 }
  0xf6   : > { %v550_v27 = vsel %vm466_vm0, %v544_v25, 0.0 }
  0xf8   : > { %557 = vadd.xlane.f32.xlu1 %v556_v26 }
  0xf9   : > { %551 = vadd.xlane.f32.xlu0 %v550_v27 }
 0x181   : > { %v555_v34 = vpop.xlane.xlu1 %554 }
 0x182   : > { %v549_v35 = vpop.xlane.xlu0 %548  ;;  %v562_v36 = vmul.f32 0.03125, %v555_v34 }
 0x183   : > { %v560_v37 = vmul.f32 0.03125, %v549_v35 }
 0x184   : > { %v566_v38 = vadd.f32 1e-06, %v562_v36 }
 0x185   : > { %v564_v39 = vadd.f32 1e-06, %v560_v37  ;;  %v558_v40 = vpop.xlane.xlu1 %557 }
 0x186   : > { %v552_v41 = vpop.xlane.xlu0 %551  ;;  %1212 = vrsqrt.f32 %v566_v38  ;;  %v563_v42 = vmul.f32 0.03125, %v558_v40 }
 0x187   : > { %v561_v43 = vmul.f32 0.03125, %v552_v41  ;;  %1214 = vrsqrt.f32 %v564_v39 }
 0x188   : > { %v567_v44 = vadd.f32 1e-06, %v563_v42 }
 0x189   : > { %v565_v45 = vadd.f32 1e-06, %v561_v43 }
 0x18a   : > { %1216 = vrsqrt.f32 %v567_v44 }
 0x18b   : > { %1218 = vrsqrt.f32 %v565_v45 }
 0x190   : > { %v1213_v46 = vpop.eup %1212 }
 0x191   : > { %v1215_v47 = vpop.eup %1214  ;;  %v574_v50 = vmul.f32 %v1213_v46, %v540_v16 }
 0x192   : > { %v572_v49 = vmul.f32 %v1215_v47, %v538_v17 }
 0x193   : > { %v584_v57 = vmul.f32 %v1121_v48, %v574_v50  ;;  %v1268_v50 = vmov 0.0  }
 0x194   : > { %v1217_v51 = vpop.eup %1216  ;;  %v582_v52 = vmul.f32 %v1121_v48, %v572_v49  ;;  %859 = vst [vmem:[%s1451_s14] sm:$0xff] %v1268_v50 }
 0x195   : > { %v1219_v53 = vpop.eup %1218  ;;  %v575_v54 = vmul.f32 %v1217_v51, %v541_v18  ;;  %v1139_v61 = vpack.c.bf16 %v584_v57, %v584_v57 }
 0x196   : > { %v1137_v55 = vpack.c.bf16 %v582_v52, %v582_v52  ;;  %1169 = vmatprep.mubr.msk.f32.mxu1 %vm466_vm0, %v582_v52  ;;  %v573_v56 = vmul.f32 %v1219_v53, %v539_v21 }
 0x197   : > { %v585_v59 = vmul.f32 %v1121_v48, %v575_v54  ;;  %605 = vst.msk [vmem:[%s423_s27 + $0x8] sm:$0xf] %vm602_vm1, %v1139_v61 }
 0x198   : > { %603 = vst.msk [vmem:[%s423_s27] sm:$0xf] %vm602_vm1, %v1137_v55  ;;  %v583_v58 = vmul.f32 %v1121_v48, %v573_v56 }
 0x199   : > { %v1140_v62 = vpack.c.bf16 %v585_v59, %v585_v59 }
 0x19a   : > { %v1138_v60 = vpack.c.bf16 %v583_v58, %v583_v58  ;;  %1170 = vmatmul.mubr.msk.f32.vlgmr.msra.gmra.mrb[0].mxu1 %vm466_vm0, %v583_v58 }
 0x19b   : > { %1172 = vmatprep.mubr.msk.f32.mxu1 %vm466_vm0, %v584_v57  ;;  %606 = vst.msk [vmem:[%s423_s27 + $0xc] sm:$0xf] %vm602_vm1, %v1140_v62 }
 0x19c   : > { %604 = vst.msk [vmem:[%s423_s27 + $0x4] sm:$0xf] %vm602_vm1, %v1138_v60 }
 0x19e   : > { %1173 = vmatmul.mubr.msk.f32.gmra.mrb[2].mxu1 %vm466_vm0, %v585_v59 }
 0x26d   : > { %v1171_v0 = vpop.f32.mrb[0].mxu1 }
 0x26e   : > { %v702_v1 = vadd.f32 %v1171_v0, %v1126_v63  ;;  %v696_v2 = vpop.f32.mrb[1].mxu1 }
 0x26f   : > { %v697_v3 = vadd.f32 %v1126_v63, %v696_v2 }
 0x270   : > { %v719_v4 = vsel %vm715_vm2, %v702_v1, -inf }
 0x271   : > { %720 = vmax.xlane.f32.xlu1 %v719_v4  ;;  %v1174_v5 = vpop.f32.mrb[2].mxu1  ;;  %v716_v6 = vsel %vm715_vm2, %v697_v3, -inf }
 0x272   : > { %v712_v7 = vadd.f32 %v1174_v5, %v1126_v63  ;;  %v706_v8 = vpop.f32.mrb[3].mxu1  ;;  %717 = vmax.xlane.f32.xlu0 %v716_v6 }
 0x273   : > { %v707_v9 = vadd.f32 %v1126_v63, %v706_v8 }
 0x274   : > { %v725_v10 = vsel %vm715_vm2, %v712_v7, -inf }
 0x275   : > { %726 = vmax.xlane.f32.xlu1 %v725_v10  ;;  %v722_v11 = vsel %vm715_vm2, %v707_v9, -inf }
 0x276   : > { %723 = vmax.xlane.f32.xlu0 %v722_v11 }
 0x2fe   : > { %v1412_v14 = vpop.xlane.xlu1 %720 }
 0x2ff   : > { %v729_v15 = vsub.f32 %v702_v1, %v1412_v14  ;;  %vm775_vm3 = vcmp.eq.f32.partialorder %v702_v1, %v1412_v14  ;;  %v1416_v16 = vpop.xlane.xlu0 %717 }
 0x300   : > { %v728_v17 = vsub.f32 %v697_v3, %v1416_v16  ;;  %vm774_vm4 = vcmp.eq.f32.partialorder %v697_v3, %v1416_v16  ;;  %v779_v18 = vsel %vm775_vm3, %v1410_v13, 4 }
 0x301   : > { %v734_v19 = vmul.f32 1.442695, %v729_v15  ;;  %v797_v20 = vsel %vm715_vm2, %v779_v18, 2147483647  ;;  %v778_v21 = vsel %vm774_vm4, %v1410_v13, 4 }
 0x302   : > { %v732_v22 = vmul.f32 1.442695, %v728_v17  ;;  %v1423_v23 = vpop.xlane.xlu1 %726  ;;  %v799_v24 = vshra.s32 %v797_v20, 16  ;;  %v782_v25 = vsel %vm715_vm2, %v778_v21, 2147483647  ;;  %v798_v51 = vand.u32 65535, %v797_v20 }
 0x303   : > { %1220 = vpow2.f32 %v734_v19  ;;  %v731_v26 = vsub.f32 %v712_v7, %v1423_v23  ;;  %vm777_vm5 = vcmp.eq.f32.partialorder %v712_v7, %v1423_v23  ;;  %v1428_v27 = vpop.xlane.xlu0 %723  ;;  %v784_v28 = vshra.s32 %v782_v25, 16 }
 0x304   : > { %1222 = vpow2.f32 %v732_v22  ;;  %v730_v29 = vsub.f32 %v707_v9, %v1428_v27  ;;  %vm776_vm6 = vcmp.eq.f32.partialorder %v707_v9, %v1428_v27  ;;  %v801_v30 = vcvt.s32.f32 %v799_v24 }
 0x305   : > { %v738_v31 = vmul.f32 1.442695, %v731_v26  ;;  %v786_v32 = vcvt.s32.f32 %v784_v28  ;;  %v781_v33 = vsel %vm777_vm5, %v1410_v13, 4  ;;  %v780_v34 = vsel %vm776_vm6, %v1410_v13, 4 }
 0x306   : > { %v736_v35 = vmul.f32 1.442695, %v730_v29  ;;  %802 = vmin.xlane.f32.xlu1 %v801_v30  ;;  %v827_v36 = vsel %vm715_vm2, %v781_v33, 2147483647  ;;  %v812_v37 = vsel %vm715_vm2, %v780_v34, 2147483647  ;;  %v800_v54 = vcvt.s32.f32 %v798_v51 }
 0x307   : > { %1224 = vpow2.f32 %v738_v31  ;;  %787 = vmin.xlane.f32.xlu0 %v786_v32  ;;  %v829_v38 = vshra.s32 %v827_v36, 16  ;;  %v814_v39 = vshra.s32 %v812_v37, 16  ;;  %v783_v52 = vand.u32 65535, %v782_v25 }
 0x308   : > { %1226 = vpow2.f32 %v736_v35  ;;  %v828_v57 = vand.u32 65535, %v827_v36  ;;  %v813_v58 = vand.u32 65535, %v812_v37 }
 0x309   : > { %v831_v40 = vcvt.s32.f32 %v829_v38  ;;  %v816_v41 = vcvt.s32.f32 %v814_v39  ;;  %v785_v56 = vcvt.s32.f32 %v783_v52 }
 0x30a   : > { %v830_v63 = vcvt.s32.f32 %v828_v57  ;;  %v815_v0 = vcvt.s32.f32 %v813_v58 }
 0x30b   : > { %832 = vmin.xlane.f32.xlu1 %v831_v40  ;;  %817 = vmin.xlane.f32.xlu0 %v816_v41 }
 0x30d   : > { %v1221_v42 = vpop.eup %1220 }
 0x30e   : > { %v1223_v43 = vpop.eup %1222  ;;  %v743_v44 = vsel %vm715_vm2, %v1221_v42, 0.0 }
 0x30f   : > { %744 = vadd.xlane.f32.xlu1 %v743_v44  ;;  %v740_v45 = vsel %vm715_vm2, %v1223_v43, 0.0 }
 0x310   : > { %741 = vadd.xlane.f32.xlu0 %v740_v45 }
 0x311   : > { %v1438_v46 = vpop.eup %1224 }
 0x312   : > { %v1440_v47 = vpop.eup %1226  ;;  %v749_v48 = vsel %vm715_vm2, %v1438_v46, 0.0 }
 0x313   : > { %750 = vadd.xlane.f32.xlu1 %v749_v48  ;;  %v746_v49 = vsel %vm715_vm2, %v1440_v47, 0.0 }
 0x314   : > { %747 = vadd.xlane.f32.xlu0 %v746_v49 }
 0x393   : > { %v1455_v53 = vpop.xlane.xlu1 %802 }
 0x394   : > { %v1457_v55 = vpop.xlane.xlu0 %787  ;;  %vm804_vm7 = vcmp.eq.f32.partialorder %v801_v30, %v1455_v53  ;;  %v809_v57 = vcvt.f32.s32 %v1455_v53 }
 0x395   : > { %v805_v59 = vsel %vm804_vm7, %v800_v54, inf  ;;  %vm789_vm8 = vcmp.eq.f32.partialorder %v786_v32, %v1457_v55  ;;  %v794_v58 = vcvt.f32.s32 %v1457_v55 }
 0x396   : > { %806 = vmin.xlane.f32.xlu1 %v805_v59  ;;  %v790_v60 = vsel %vm789_vm8, %v785_v56, inf }
 0x397   : > { %791 = vmin.xlane.f32.xlu0 %v790_v60  ;;  %v810_v60 = vshll.u32 %v809_v57, 16 }
 0x398   : > { %v1461_v61 = vpop.xlane.xlu1 %832  ;;  %v1463_v62 = vpop.xlane.xlu0 %817 }
 0x399   : > { %vm834_vm9 = vcmp.eq.f32.partialorder %v831_v40, %v1461_v61  ;;  %vm819_vm10 = vcmp.eq.f32.partialorder %v816_v41, %v1463_v62 }
 0x39a   : > { %v835_v1 = vsel %vm834_vm9, %v830_v63, inf  ;;  %v820_v2 = vsel %vm819_vm10, %v815_v0, inf  ;;  %v839_v63 = vcvt.f32.s32 %v1461_v61  ;;  %v824_v0 = vcvt.f32.s32 %v1463_v62 }
 0x39b   : > { %836 = vmin.xlane.f32.xlu1 %v835_v1  ;;  %821 = vmin.xlane.f32.xlu0 %v820_v2 }
 0x39c   : > { %v745_v3 = vpop.xlane.xlu1 %744  ;;  %v840_v53 = vshll.u32 %v839_v63, 16 }
 0x39d   : > { %1228 = vrcp.f32 %v745_v3  ;;  %v742_v4 = vpop.xlane.xlu0 %741 }
 0x39e   : > { %1230 = vlog2.f32 %v745_v3  ;;  %v795_v3 = vshll.u32 %v794_v58, 16 }
 0x39f   : > { %1232 = vrcp.f32 %v742_v4 }
 0x3a0   : > { %1234 = vlog2.f32 %v742_v4  ;;  %v751_v5 = vpop.xlane.xlu1 %750 }
 0x3a1   : > { %1236 = vrcp.f32 %v751_v5  ;;  %v748_v6 = vpop.xlane.xlu0 %747 }
 0x3a2   : > { %1238 = vlog2.f32 %v751_v5 }
 0x3a3   : > { %1240 = vrcp.f32 %v748_v6 }
 0x3a4   : > { %1242 = vlog2.f32 %v748_v6 }
 0x3a7   : > { %v1229_v7 = vpop.eup %1228 }
 0x3a8   : > { %v1231_v8 = vpop.eup %1230  ;;  %v755_v9 = vmul.f32 %v1229_v7, %v1221_v42  ;;  %v825_v7 = vshll.u32 %v824_v0, 16 }
 0x3a9   : > { %v1233_v10 = vpop.eup %1232  ;;  %v763_v11 = vmul.f32 0.6931472, %v1231_v8 }
 0x3aa   : > { %v1235_v12 = vpop.eup %1234  ;;  %v753_v15 = vmul.f32 %v1233_v10, %v1223_v43  ;;  %v876_v21 = vsel %vm715_vm2, %v755_v9, 0.0 }
 0x3ab   : > { %v1237_v17 = vpop.eup %1236  ;;  %v769_v18 = vadd.f32 %v763_v11, %v1412_v14  ;;  %v761_v19 = vmul.f32 0.6931472, %v1235_v12 }
 0x3ac   : > { %v1239_v20 = vpop.eup %1238  ;;  %v875_v22 = vsel %vm715_vm2, %v753_v15, 0.0  ;;  %v759_v29 = vmul.f32 %v1237_v17, %v1438_v46 }
 0x3ad   : > { %v1241_v24 = vpop.eup %1240  ;;  %v768_v25 = vadd.f32 %v761_v19, %v1416_v16  ;;  %v767_v26 = vmul.f32 0.6931472, %v1239_v20  ;;  %v890_v31 = vmul.f32 %v769_v18, %v769_v18  ;;  %v877_v32 = vadd.f32 %v876_v21, %v875_v22 }
 0x3ae   : > { %v1243_v28 = vpop.eup %1242  ;;  %v757_v30 = vmul.f32 %v1241_v24, %v1440_v47  ;;  %v880_v38 = vsel %vm715_vm2, %v759_v29, 0.0 }
 0x3af   : > { %v889_v33 = vmul.f32 %v768_v25, %v768_v25  ;;  %v765_v34 = vmul.f32 0.6931472, %v1243_v28  ;;  %v771_v35 = vadd.f32 %v767_v26, %v1423_v23 }
 0x3b0   : > { %v878_v14 = vsel %vm715_vm2, %v757_v30, 0.0 }
 0x3b1   : > { %v770_v36 = vadd.f32 %v765_v34, %v1428_v27  ;;  %v879_v37 = vadd.f32 %v878_v14, %v877_v32  ;;  %v893_v16 = vadd.f32 %v890_v31, %v889_v33  ;;  %v892_v41 = vmul.f32 %v771_v35, %v771_v35 }
 0x3b3   : > { %v881_v39 = vadd.f32 %v880_v38, %v879_v37  ;;  %v891_v40 = vmul.f32 %v770_v36, %v770_v36 }
 0x3b5   : > { %v882_v42 = vrot.slane %v881_v39, 4  ;;  %v894_v43 = vadd.f32 %v893_v16, %v891_v40 }
 0x3b7   : > { %v883_v44 = vadd.f32 %v882_v42, %v881_v39  ;;  %v895_v45 = vadd.f32 %v894_v43, %v892_v41 }
 0x3b9   : > { %v884_v46 = vrot.slane %v883_v44, 2  ;;  %v896_v47 = vrot.slane %v895_v45, 4 }
 0x3bb   : > { %v885_v48 = vadd.f32 %v884_v46, %v883_v44  ;;  %v897_v49 = vadd.f32 %v896_v47, %v895_v45 }
 0x3bd   : > { %v886_v23 = vrot.slane %v885_v48, 1  ;;  %v898_v51 = vrot.slane %v897_v49, 2 }
 0x3bf   : > { %v887_v27 = vadd.f32 %v886_v23, %v885_v48  ;;  %v899_v52 = vadd.f32 %v898_v51, %v897_v49 }
 0x3c1   : > { %v900_v54 = vrot.slane %v899_v52, 1  ;;  %888 = vst.msk [vmem:[%s1451_s14 + $0x1] sm:$0x1] %vm873_vm11, %v887_v27 }
 0x3c3   : > { %v901_v56 = vadd.f32 %v900_v54, %v899_v52 }
 0x3c5   : > { %903 = vst.msk [vmem:[%s1451_s14 + $0x2] sm:$0x1] %vm902_vm12, %v901_v56 }
 0x423   : > { %v807_v59 = vpop.xlane.xlu1 %806 }
 0x424   : > { %v808_v1 = vcvt.f32.s32 %v807_v59  ;;  %v792_v2 = vpop.xlane.xlu0 %791 }
 0x425   : > { %v793_v4 = vcvt.f32.s32 %v792_v2 }
 0x426   : > { %v811_v5 = vadd.s32 %v810_v60, %v808_v1 }
 0x427   : > { %v796_v6 = vadd.s32 %v795_v3, %v793_v4 }
 0x428   : > { %vm848_vm14 = vcmp.eq.s32.totalorder %v811_v5, %v1410_v13  ;;  %v837_v55 = vpop.xlane.xlu1 %836  ;;  %v822_v8 = vpop.xlane.xlu0 %821  ;;  %844 = vst.msk [vmem:[%s429_s17 + $0x8] sm:$0xff] %vm842_vm13, %v811_v5 }
 0x429   : > { %v1132_v61 = vsel %vm848_vm14, 1.0, %v1268_v50  ;;  %843 = vst.msk [vmem:[%s429_s17] sm:$0xff] %vm842_vm13, %v796_v6  ;;  %vm847_vm15 = vcmp.eq.s32.totalorder %v796_v6, %v1410_v13  ;;  %v838_v62 = vcvt.f32.s32 %v837_v55  ;;  %v823_v9 = vcvt.f32.s32 %v822_v8 }
 0x42a   : > { %v861_v10 = vsel %vm715_vm2, %v1132_v61, 0.0  ;;  %v1131_v11 = vsel %vm847_vm15, 1.0, %v1268_v50 }
 0x42b   : > { %v860_v12 = vsel %vm715_vm2, %v1131_v11, 0.0  ;;  %v841_v15 = vadd.s32 %v840_v53, %v838_v62  ;;  %v826_v17 = vadd.s32 %v825_v7, %v823_v9 }
 0x42c   : > { %v862_v18 = vadd.f32 %v861_v10, %v860_v12 }
 0x42d   : > { %vm850_vm0 = vcmp.eq.s32.totalorder %v841_v15, %v1410_v13  ;;  %845 = vst.msk [vmem:[%s429_s17 + $0x10] sm:$0xff] %vm842_vm13, %v826_v17  ;;  %vm849_vm1 = vcmp.eq.s32.totalorder %v826_v17, %v1410_v13  ;;  %846 = vst.msk [vmem:[%s429_s17 + $0x18] sm:$0xff] %vm842_vm13, %v841_v15 }
 0x42e   : > { %v1134_v19 = vsel %vm850_vm0, 1.0, %v1268_v50  ;;  %v1133_v20 = vsel %vm849_vm1, 1.0, %v1268_v50 }
 0x42f   : > { %v863_v21 = vsel %vm715_vm2, %v1133_v20, 0.0  ;;  %v865_v24 = vsel %vm715_vm2, %v1134_v19, 0.0 }
 0x430   : > { %v864_v22 = vadd.f32 %v863_v21, %v862_v18 }
 0x432   : > { %v866_v25 = vadd.f32 %v865_v24, %v864_v22 }
 0x434   : > { %v867_v26 = vrot.slane %v866_v25, 4 }
 0x436   : > { %v868_v28 = vadd.f32 %v867_v26, %v866_v25 }
 0x438   : > { %v869_v29 = vrot.slane %v868_v28, 2 }
 0x43a   : > { %v870_v30 = vadd.f32 %v869_v29, %v868_v28 }
 0x43c   : > { %v871_v31 = vrot.slane %v870_v30, 1 }
 0x43e   : > { %v872_v32 = vadd.f32 %v871_v31, %v870_v30 }
 0x440   : > { %874 = vst.msk [vmem:[%s1451_s14] sm:$0x1] %vm873_vm11, %v872_v32 }
 0x441 PF: > { %s20_s11 = sadd.s32 1, %s1266_s11   ;;  %s1525_s30 = smov %s1262_s10 }
 0x442   : > { %p17_p6 = scmp.ge.s32.totalorder %s20_s11, 4   ;;  %s1526_s10 = smov %s1528_s12 }
 0x444   :  { %19 = sbr.rel (!%p17_p6) target bundleno = 2 (0x2), region = 120 }

// kernel: moe_decoder_forward.5
= control target key start
LH: loop header
LB: loop body
LE: loop exit
PB: predicated region body
PF: predicated region fallthrough
CT: control target
= control target key end

     0   :  { %s7111_s0 = inlined_call_operand.vmem [shape: bf16[2,32,3,4,8], index: 0, kind: input, shape index: {}, may-alias: {0,1,2}]   ;;  %s7112_s1 = inlined_call_operand.vmem [shape: bf16[2,32,3,4,8], index: 1, kind: input, shape index: {}, may-alias: {0,1,2}]   ;;  %s7113_s2 = inlined_call_operand.vmem [shape: bf16[2,32,3,4,8], index: 2, kind: input, shape index: {}, may-alias: {0,1,2}]   ;;  %s7114_s3 = inlined_call_operand.vmem [shape: bf16[2,32,4,8], index: 3, kind: output, shape index: {}]  }
   0x1   :  { %7153 = sst [smem:[#allocation9_spill]] %s7111_s0 }
   0x2   :  { %s5415_s12 = smov 0   ;;  %s5417_s13 = smov 0  }
   0x3   :  { %s5419_s14 = smov 0   ;;  %s5421_s15 = smov 0  }
   0x4   :  { %s5423_s16 = smov 0   ;;  %s5425_s17 = smov 0  }
   0x5   :  { %s5427_s18 = smov 0   ;;  %s5429_s19 = smov 0  }
   0x6   :  { %s5431_s20 = smov 0   ;;  %s5433_s21 = smov 0  }
   0x7   :  { %s5435_s22 = smov 0  }
   0x8 LB: > { %s25_s23 = sadd.s32 1, %s5373_s19  ;;  %s28_s24 = sadd.s32 1, %s5377_s20  ;;  %s5385_s22 = sphi %s5435_s22, %s13_s22   ;;  %s5381_s21 = sphi %s5433_s21, %s7215_s21   ;;  %s5377_s20 = sphi %s5431_s20, %s7214_s20   ;;  %s5373_s19 = sphi %s5429_s19, %s7213_s19   ;;  %s5369_s18 = sphi %s5427_s18, %s7212_s18   ;;  %s5365_s17 = sphi %s5425_s17, %s7211_s17   ;;  %s5361_s16 = sphi %s5423_s16, %s7210_s16   ;;  %s5357_s15 = sphi %s5421_s15, %s7209_s15   ;;  %s5353_s14 = sphi %s5419_s14, %s7208_s14   ;;  %s5349_s13 = sphi %s5417_s13, %s7207_s13   ;;  %s5345_s12 = sphi %s5415_s12, %s7206_s12  }
   0x9   : > { %p26_p0 = scmp.ge.s32.totalorder %s25_s23, 2  ;;  %p48_p1 = scmp.ne.s32.totalorder %s5357_s15, %s5353_s14 }
   0xa   : > { %p49_p2 = scmp.eq.s32.totalorder %s5385_s22, 0  ;;  %s32_s25 = sadd.s32 1, %s5381_s21 }
   0xb   : > { %s7217_s23 = smov (%p26_p0, %s25_s23), 0  ;;  %s7219_s24 = smov (!%p26_p0, %s28_s24), %s5377_s20 }
   0xc   : > { %p30_p3 = scmp.ge.s32.totalorder %s7219_s24, 2  ;;  %p5479_p4 = por %p49_p2, %p48_p1 }
   0xd   : > { %p76_p5 = scmp.ne.s32.totalorder %s5349_s13, %s5345_s12  ;;  %s65_s29 = ssub.s32 %s5373_s19, %s7217_s23 }
   0xe   : > { %s7221_s24 = smov (%p30_p3, %s7219_s24), 0  ;;  %s7223_s25 = smov (!%p30_p3, %s32_s25), %s5381_s21 }
   0xf   : > { %p5488_p6 = por %p76_p5, %p49_p2  ;;  %p34_p7 = scmp.ge.s32.totalorder %s7223_s25, 2 }
  0x10   : > { %s37_s28 = ssub.s32 %s5377_s20, %s7221_s24  ;;  %s41_s30 = sadd.s32 1, %s5357_s15 }
  0x11   : > { %s7225_s25 = smov (%p34_p7, %s7223_s25), 0  ;;  %s69_s5 = sadd.s32 1, %s5349_s13 }
  0x12   : > { %7156 = sst [smem:[#allocation8_spill]] %s7225_s25  ;;  %s36_s4 = ssub.s32 %s5381_s21, %s7225_s25 }
  0x13   : > { %s38_s6 = sor.u32 %s37_s28, %s36_s4  ;;  %s66_s7 = sor.u32 %s65_s29, %s36_s4 }
  0x14   : > { %p39_p8 = scmp.eq.s32.totalorder %s38_s6, 0  ;;  %p67_p9 = scmp.eq.s32.totalorder %s66_s7, 0 }
  0x15   : > { %p4797_p10 = scmp.ge.s32.totalorder %s5385_s22, 8 }
  0x16   : > { %s5503_s8 = scalar_select %p39_p8, %s5357_s15, %s41_s30  }
  0x17   : > { %s5506_s9 = scalar_select %p67_p9, %s5349_s13, %s69_s5  }
  0x18   : > { %158 = sbr.rel (%p4797_p10) target bundleno = 87 (0x57), region = 16 }
  0x1f   : > { %161 = sbr.rel (!%p5479_p4) target bundleno = 51 (0x33), region = 20  ;;  %s163_s10 = sand.u32 (%p5479_p4), 1, %s5357_s15  }
  0x20   : > { %s5149_s11 = smul.u32 (%p5479_p4), 48, %s5377_s20  ;;  %s4798_s25 = sshll.u32 (%p5479_p4), %s163_s10, 5 }
  0x21   : > { %s5150_s28 = smul.u32 (%p5479_p4), 96, %s5381_s21  ;;  %s7157_s0 = sld [smem:[#allocation9_spill]] (%p5479_p4) }
  0x22   : > { %s165_s26 = scalar_lea.vmem (%p5479_p4), [#allocation5], %s4798_s25 }
  0x23   : > { %s169_s29 = sadd.s32 (%p5479_p4), %s5150_s28, %s5149_s11 }
  0x24   : > { %s4801_s4 = sshll.u32 (%p5479_p4), %s169_s29, 1 }
  0x27   : > { %s5517_s5 = scalar_lea.vmem %s7157_s0, %s4801_s4 }
  0x28   : > { %v187_v0 = vld [vmem:[%s5517_s5] sm:$0x3]  ;;  %v189_v1 = vld [vmem:[%s5517_s5 + $0x6] sm:$0x3]  ;;  %v191_v2 = vld [vmem:[%s5517_s5 + $0xc] sm:$0x3] }
  0x29   : > { %188 = vst [vmem:[%s165_s26] sm:$0x3] %v187_v0  ;;  %190 = vst [vmem:[%s165_s26 + $0x2] sm:$0x3] %v189_v1  ;;  %v193_v3 = vld [vmem:[%s5517_s5 + $0x12] sm:$0x3] }
  0x2a   : > { %192 = vst [vmem:[%s165_s26 + $0x4] sm:$0x3] %v191_v2  ;;  %v195_v4 = vld [vmem:[%s5517_s5 + $0x18] sm:$0x3]  ;;  %v197_v5 = vld [vmem:[%s5517_s5 + $0x1e] sm:$0x3] }
  0x2b   : > { %194 = vst [vmem:[%s165_s26 + $0x6] sm:$0x3] %v193_v3  ;;  %196 = vst [vmem:[%s165_s26 + $0x8] sm:$0x3] %v195_v4  ;;  %v199_v6 = vld [vmem:[%s5517_s5 + $0x24] sm:$0x3] }
  0x2c   : > { %198 = vst [vmem:[%s165_s26 + $0xa] sm:$0x3] %v197_v5  ;;  %v201_v7 = vld [vmem:[%s5517_s5 + $0x2a] sm:$0x3]  ;;  %v203_v8 = vld [vmem:[%s5517_s5 + $0x30] sm:$0x3] }
  0x2d   : > { %200 = vst [vmem:[%s165_s26 + $0xc] sm:$0x3] %v199_v6  ;;  %202 = vst [vmem:[%s165_s26 + $0xe] sm:$0x3] %v201_v7  ;;  %v205_v9 = vld [vmem:[%s5517_s5 + $0x36] sm:$0x3] }
  0x2e   : > { %204 = vst [vmem:[%s165_s26 + $0x10] sm:$0x3] %v203_v8  ;;  %v207_v10 = vld [vmem:[%s5517_s5 + $0x3c] sm:$0x3]  ;;  %v209_v11 = vld [vmem:[%s5517_s5 + $0x42] sm:$0x3] }
  0x2f   : > { %206 = vst [vmem:[%s165_s26 + $0x12] sm:$0x3] %v205_v9  ;;  %208 = vst [vmem:[%s165_s26 + $0x14] sm:$0x3] %v207_v10  ;;  %v211_v12 = vld [vmem:[%s5517_s5 + $0x48] sm:$0x3] }
  0x30   : > { %210 = vst [vmem:[%s165_s26 + $0x16] sm:$0x3] %v209_v11  ;;  %v213_v13 = vld [vmem:[%s5517_s5 + $0x4e] sm:$0x3]  ;;  %v215_v14 = vld [vmem:[%s5517_s5 + $0x54] sm:$0x3] }
  0x31   : > { %212 = vst [vmem:[%s165_s26 + $0x18] sm:$0x3] %v211_v12  ;;  %214 = vst [vmem:[%s165_s26 + $0x1a] sm:$0x3] %v213_v13  ;;  %v217_v15 = vld [vmem:[%s5517_s5 + $0x5a] sm:$0x3] }
  0x32   : > { %216 = vst [vmem:[%s165_s26 + $0x1c] sm:$0x3] %v215_v14  ;;  %218 = vst [vmem:[%s165_s26 + $0x1e] sm:$0x3] %v217_v15 }
  0x33 PF: > { %273 = sbr.rel (!%p5488_p6) target bundleno = 69 (0x45), region = 61  ;;  %s275_s25 = sand.u32 (%p5488_p6), 1, %s5349_s13  }
  0x34   : > { %s4690_s7 = smul.u32 (%p5488_p6), 48, %s5373_s19  ;;  %s4802_s10 = sshll.u32 (%p5488_p6), %s275_s25, 5 }
  0x35   : > { %s4691_s11 = smul.u32 (%p5488_p6), 96, %s5381_s21  ;;  %s277_s5 = scalar_lea.vmem (%p5488_p6), [#allocation6], %s4802_s10 }
  0x37   : > { %s4692_s28 = sadd.s32 (%p5488_p6), %s4691_s11, %s4690_s7 }
  0x38   : > { %s4803_s29 = sshll.u32 (%p5488_p6), %s4692_s28, 1 }
  0x39   : > { %s5543_s30 = scalar_lea.vmem (%p5488_p6), %s7112_s1, %s4803_s29 }
  0x3a   : > { %v4804_v16 = vld [vmem:[%s5543_s30 + $0x2] sm:$0x3]  ;;  %v4805_v17 = vld [vmem:[%s5543_s30 + $0x8] sm:$0x3]  ;;  %v4806_v18 = vld [vmem:[%s5543_s30 + $0xe] sm:$0x3] }
  0x3b   : > { %301 = vst [vmem:[%s277_s5] sm:$0x3] %v4804_v16  ;;  %303 = vst [vmem:[%s277_s5 + $0x2] sm:$0x3] %v4805_v17  ;;  %v4807_v19 = vld [vmem:[%s5543_s30 + $0x14] sm:$0x3] }
  0x3c   : > { %305 = vst [vmem:[%s277_s5 + $0x4] sm:$0x3] %v4806_v18  ;;  %v4808_v20 = vld [vmem:[%s5543_s30 + $0x1a] sm:$0x3]  ;;  %v4809_v21 = vld [vmem:[%s5543_s30 + $0x20] sm:$0x3] }
  0x3d   : > { %307 = vst [vmem:[%s277_s5 + $0x6] sm:$0x3] %v4807_v19  ;;  %309 = vst [vmem:[%s277_s5 + $0x8] sm:$0x3] %v4808_v20  ;;  %v4810_v22 = vld [vmem:[%s5543_s30 + $0x26] sm:$0x3] }
  0x3e   : > { %311 = vst [vmem:[%s277_s5 + $0xa] sm:$0x3] %v4809_v21  ;;  %v4811_v23 = vld [vmem:[%s5543_s30 + $0x2c] sm:$0x3]  ;;  %v4812_v24 = vld [vmem:[%s5543_s30 + $0x32] sm:$0x3] }
  0x3f   : > { %313 = vst [vmem:[%s277_s5 + $0xc] sm:$0x3] %v4810_v22  ;;  %315 = vst [vmem:[%s277_s5 + $0xe] sm:$0x3] %v4811_v23  ;;  %v4813_v25 = vld [vmem:[%s5543_s30 + $0x38] sm:$0x3] }
  0x40   : > { %317 = vst [vmem:[%s277_s5 + $0x10] sm:$0x3] %v4812_v24  ;;  %v4814_v26 = vld [vmem:[%s5543_s30 + $0x3e] sm:$0x3]  ;;  %v4815_v27 = vld [vmem:[%s5543_s30 + $0x44] sm:$0x3] }
  0x41   : > { %319 = vst [vmem:[%s277_s5 + $0x12] sm:$0x3] %v4813_v25  ;;  %321 = vst [vmem:[%s277_s5 + $0x14] sm:$0x3] %v4814_v26  ;;  %v4816_v28 = vld [vmem:[%s5543_s30 + $0x4a] sm:$0x3] }
  0x42   : > { %323 = vst [vmem:[%s277_s5 + $0x16] sm:$0x3] %v4815_v27  ;;  %v4817_v29 = vld [vmem:[%s5543_s30 + $0x50] sm:$0x3]  ;;  %v4818_v30 = vld [vmem:[%s5543_s30 + $0x56] sm:$0x3] }
  0x43   : > { %325 = vst [vmem:[%s277_s5 + $0x18] sm:$0x3] %v4816_v28  ;;  %327 = vst [vmem:[%s277_s5 + $0x1a] sm:$0x3] %v4817_v29  ;;  %v4819_v31 = vld [vmem:[%s5543_s30 + $0x5c] sm:$0x3] }
  0x44   : > { %329 = vst [vmem:[%s277_s5 + $0x1c] sm:$0x3] %v4818_v30  ;;  %331 = vst [vmem:[%s277_s5 + $0x1e] sm:$0x3] %v4819_v31 }
  0x45 PF: > { %386 = sbr.rel (!%p5488_p6) target bundleno = 87 (0x57), region = 102  ;;  %s388_s26 = sand.u32 (%p5488_p6), 1, %s5349_s13  }
  0x46   : > { %s4698_s25 = smul.u32 (%p5488_p6), 48, %s5373_s19  ;;  %s4820_s7 = sshll.u32 (%p5488_p6), %s388_s26, 5 }
  0x47   : > { %s4699_s10 = smul.u32 (%p5488_p6), 96, %s5381_s21  ;;  %s390_s27 = scalar_lea.vmem (%p5488_p6), [#allocation7], %s4820_s7 }
  0x49   : > { %s4700_s11 = sadd.s32 (%p5488_p6), %s4699_s10, %s4698_s25 }
  0x4a   : > { %s4821_s28 = sshll.u32 (%p5488_p6), %s4700_s11, 1 }
  0x4b   : > { %s5569_s6 = scalar_lea.vmem (%p5488_p6), %s7113_s2, %s4821_s28 }
  0x4c   : > { %v4822_v32 = vld [vmem:[%s5569_s6 + $0x4] sm:$0x3]  ;;  %v4823_v33 = vld [vmem:[%s5569_s6 + $0xa] sm:$0x3]  ;;  %v4824_v34 = vld [vmem:[%s5569_s6 + $0x10] sm:$0x3] }
  0x4d   : > { %414 = vst [vmem:[%s390_s27] sm:$0x3] %v4822_v32  ;;  %416 = vst [vmem:[%s390_s27 + $0x2] sm:$0x3] %v4823_v33  ;;  %v4825_v35 = vld [vmem:[%s5569_s6 + $0x16] sm:$0x3] }
  0x4e   : > { %418 = vst [vmem:[%s390_s27 + $0x4] sm:$0x3] %v4824_v34  ;;  %v4826_v36 = vld [vmem:[%s5569_s6 + $0x1c] sm:$0x3]  ;;  %v4827_v37 = vld [vmem:[%s5569_s6 + $0x22] sm:$0x3] }
  0x4f   : > { %420 = vst [vmem:[%s390_s27 + $0x6] sm:$0x3] %v4825_v35  ;;  %422 = vst [vmem:[%s390_s27 + $0x8] sm:$0x3] %v4826_v36  ;;  %v4828_v38 = vld [vmem:[%s5569_s6 + $0x28] sm:$0x3] }
  0x50   : > { %424 = vst [vmem:[%s390_s27 + $0xa] sm:$0x3] %v4827_v37  ;;  %v4829_v39 = vld [vmem:[%s5569_s6 + $0x2e] sm:$0x3]  ;;  %v4830_v40 = vld [vmem:[%s5569_s6 + $0x34] sm:$0x3] }
  0x51   : > { %426 = vst [vmem:[%s390_s27 + $0xc] sm:$0x3] %v4828_v38  ;;  %428 = vst [vmem:[%s390_s27 + $0xe] sm:$0x3] %v4829_v39  ;;  %v4831_v41 = vld [vmem:[%s5569_s6 + $0x3a] sm:$0x3] }
  0x52   : > { %430 = vst [vmem:[%s390_s27 + $0x10] sm:$0x3] %v4830_v40  ;;  %v4832_v42 = vld [vmem:[%s5569_s6 + $0x40] sm:$0x3]  ;;  %v4833_v43 = vld [vmem:[%s5569_s6 + $0x46] sm:$0x3] }
  0x53   : > { %432 = vst [vmem:[%s390_s27 + $0x12] sm:$0x3] %v4831_v41  ;;  %434 = vst [vmem:[%s390_s27 + $0x14] sm:$0x3] %v4832_v42  ;;  %v4834_v44 = vld [vmem:[%s5569_s6 + $0x4c] sm:$0x3] }
  0x54   : > { %436 = vst [vmem:[%s390_s27 + $0x16] sm:$0x3] %v4833_v43  ;;  %v4835_v45 = vld [vmem:[%s5569_s6 + $0x52] sm:$0x3]  ;;  %v4836_v46 = vld [vmem:[%s5569_s6 + $0x58] sm:$0x3] }
  0x55   : > { %438 = vst [vmem:[%s390_s27 + $0x18] sm:$0x3] %v4834_v44  ;;  %440 = vst [vmem:[%s390_s27 + $0x1a] sm:$0x3] %v4835_v45  ;;  %v4837_v47 = vld [vmem:[%s5569_s6 + $0x5e] sm:$0x3] }
  0x56   : > { %442 = vst [vmem:[%s390_s27 + $0x1c] sm:$0x3] %v4836_v46  ;;  %444 = vst [vmem:[%s390_s27 + $0x1e] sm:$0x3] %v4837_v47 }
  0x57 PF: > { %p4838_p11 = scmp.ge.s32.totalorder %s5385_s22, 1  ;;  %p498_p12 = scmp.lt.s32.totalorder %s5385_s22, 9 }
  0x59   : > { %p499_p13 = pnand %p4838_p11, %p498_p12 }
  0x5a   : > { %s505_s30 = sand.u32 (!%p499_p13), 1, %s5353_s14   ;;  %s512_s5 = sand.u32 (!%p499_p13), 1, %s5345_s12  }
  0x5b   : > { %502 = sbr.rel (%p499_p13) target bundleno = 1557 (0x615), region = 143  ;;  %s4839_s26 = sshll.u32 (!%p499_p13), %s505_s30, 5 }
  0x5c   : > { %s4840_s25 = sshll.u32 (!%p499_p13), %s512_s5, 5  ;;  %s4842_s7 = sshll.u32 (!%p499_p13), %s5365_s17, 4 }
  0x5d   : > { %p558_p0 = scmp.lt.s32.totalorder (!%p499_p13), %s5369_s18, 1  ;;  %p560_p1 = scmp.lt.s32.totalorder (!%p499_p13), %s4842_s7, 31 }
  0x5e   : > { %s5599_s27 = scalar_lea.vmem (!%p499_p13), [#allocation5], %s4839_s26  ;;  %s5601_s0 = scalar_lea.vmem (!%p499_p13), [#allocation6], %s4840_s25 }
  0x5f   : > { %s5603_s12 = scalar_lea.vmem (!%p499_p13), [#allocation7], %s4840_s25  ;;  %p4845_p2 = scmp.ne.s32.totalorder (!%p499_p13), %s5361_s16, 0 }
  0x62   : > { %s7227_s18 = smov (!%p558_p0, %s5369_s18), 1  ;;  %s7229_s7 = smov (!%p560_p1, %s4842_s7), 31 }
  0x63   : > { %s4843_s10 = sshll.u32 %s7227_s18, 5  ;;  %571 = sbr.rel (%p4845_p2) target bundleno = 112 (0x70), region = 159  ;;  %vm572_vm0 = vcmask (!%p4845_p2), 7168   ;;  %vm589_vm1 = vcmask (!%p4845_p2), 64512   ;;  %v5387_v48 = vmov (!%p4845_p2), -inf   ;;  %v5388_v49 = vmov (!%p4845_p2), 0.0  }
  0x64   : > { %s563_s11 = sadd.s32 %s4843_s10, %s7229_s7  ;;  %573 = vst.msk [vmem:[#allocation2] sm:$0xff] (!%p4845_p2), %vm572_vm0, %v5387_v48  ;;  %574 = vst.msk [vmem:[#allocation2 + $0x8] sm:$0xff] (!%p4845_p2), %vm572_vm0, %v5387_v48 }
  0x65   : > { %s4844_s28 = sshll.u32 %s563_s11, 1  ;;  %575 = vst.msk [vmem:[#allocation2 + $0x10] sm:$0xff] (!%p4845_p2), %vm572_vm0, %v5387_v48  ;;  %576 = vst.msk [vmem:[#allocation2 + $0x18] sm:$0xff] (!%p4845_p2), %vm572_vm0, %v5387_v48 }
  0x66   : > { %s5597_s6 = scalar_lea.vmem %s7114_s3, %s4844_s28  ;;  %577 = vst.msk [vmem:[#allocation2 + $0x20] sm:$0xff] (!%p4845_p2), %vm572_vm0, %v5387_v48  ;;  %578 = vst.msk [vmem:[#allocation2 + $0x28] sm:$0xff] (!%p4845_p2), %vm572_vm0, %v5387_v48 }
  0x67   : > { %579 = vst.msk [vmem:[#allocation2 + $0x30] sm:$0xff] (!%p4845_p2), %vm572_vm0, %v5387_v48  ;;  %580 = vst.msk [vmem:[#allocation2 + $0x38] sm:$0xff] (!%p4845_p2), %vm572_vm0, %v5387_v48 }
  0x68   : > { %581 = vst.msk [vmem:[#allocation3] sm:$0xff] (!%p4845_p2), %vm572_vm0, %v5388_v49  ;;  %582 = vst.msk [vmem:[#allocation3 + $0x8] sm:$0xff] (!%p4845_p2), %vm572_vm0, %v5388_v49 }
  0x69   : > { %583 = vst.msk [vmem:[#allocation3 + $0x10] sm:$0xff] (!%p4845_p2), %vm572_vm0, %v5388_v49  ;;  %584 = vst.msk [vmem:[#allocation3 + $0x18] sm:$0xff] (!%p4845_p2), %vm572_vm0, %v5388_v49 }
  0x6a   : > { %585 = vst.msk [vmem:[#allocation3 + $0x20] sm:$0xff] %vm572_vm0, %v5388_v49  ;;  %586 = vst.msk [vmem:[#allocation3 + $0x28] sm:$0xff] %vm572_vm0, %v5388_v49 }
  0x6b   : > { %587 = vst.msk [vmem:[#allocation3 + $0x30] sm:$0xff] %vm572_vm0, %v5388_v49  ;;  %588 = vst.msk [vmem:[#allocation3 + $0x38] sm:$0xff] %vm572_vm0, %v5388_v49 }
  0x6c   : > { %590 = vst.msk [vmem:[#allocation4] sm:$0xff] %vm589_vm1, %v5388_v49  ;;  %591 = vst.msk [vmem:[#allocation4 + $0x8] sm:$0xff] %vm589_vm1, %v5388_v49 }
  0x6d   : > { %592 = vst.msk [vmem:[#allocation4 + $0x10] sm:$0xff] %vm589_vm1, %v5388_v49  ;;  %593 = vst.msk [vmem:[#allocation4 + $0x18] sm:$0xff] %vm589_vm1, %v5388_v49 }
  0x6e   : > { %594 = vst.msk [vmem:[#allocation4 + $0x20] sm:$0xff] %vm589_vm1, %v5388_v49  ;;  %595 = vst.msk [vmem:[#allocation4 + $0x28] sm:$0xff] %vm589_vm1, %v5388_v49 }
  0x6f   : > { %596 = vst.msk [vmem:[#allocation4 + $0x30] sm:$0xff] %vm589_vm1, %v5388_v49  ;;  %597 = vst.msk [vmem:[#allocation4 + $0x38] sm:$0xff] %vm589_vm1, %v5388_v49 }
  0x70 PF: > { %v5631_v50 = vld.sshfl [vmem:[%s5601_s0] sm:$0x1 pattern:$0x76325410]  ;;  %v7149_v51 = vmov 0.0   ;;  %vm791_vm2 = vcmask 1041409  }
  0x71   : > { %5101 = vmatprep.subr.bf16.mxu0 %v7149_v51  ;;  %v5635_v52 = vld.sshfl [vmem:[%s5601_s0 + $0x2] sm:$0x1 pattern:$0x76325410]  ;;  %5107 = vmatprep.subr.bf16.mxu1 %v7149_v51  ;;  %v7147_v54 = vunpack.c.l.b16 %v5631_v50  ;;  %vm794_vm3 = vcmask 1042434   ;;  %vm797_vm4 = vcmask 1043459  }
  0x72   : > { %v5639_v53 = vld.sshfl [vmem:[%s5601_s0 + $0x4] sm:$0x1 pattern:$0x76325410]  ;;  %v7144_v55 = vunpack.c.l.b16 %v5635_v52  ;;  %vm800_vm5 = vcmask 1044484   ;;  %vm5390_vm6 = vmmov 0  }
  0x73   : > { %v5644_v56 = vld.sshfl [vmem:[%s5601_s0 + $0x6] sm:$0x1 pattern:$0x76325410]  ;;  %v7146_v57 = vunpack.c.l.b16 %v5639_v53  ;;  %5103 = vmatprep.mubr.msk.bf16.mxu0 %vm5390_vm6, %v7149_v51  ;;  %5109 = vmatprep.mubr.msk.bf16.mxu1 %vm5390_vm6, %v7149_v51  ;;  %vm803_vm7 = vcmask 1045509   ;;  %vm806_vm8 = vcmask 1046534  }
  0x74   : > { %v5648_v58 = vld.sshfl [vmem:[%s5601_s0 + $0x8] sm:$0x1 pattern:$0x76325410]  ;;  %v7143_v59 = vunpack.c.l.b16 %v5644_v56  ;;  %v970_v60 = vrot.slane %v7144_v55, 7  ;;  %vm809_vm9 = vcmask 1047559  }
  0x75   : > { %v5654_v61 = vld.sshfl [vmem:[%s5601_s0 + $0xa] sm:$0x1 pattern:$0x76325410]  ;;  %v7138_v62 = vunpack.c.l.b16 %v5648_v58  ;;  %v972_v63 = vrot.slane %v7146_v57, 6  ;;  %vm999_vm10 = vcmask 64512  }
  0x76   : > { %v5660_v0 = vld.sshfl [vmem:[%s5601_s0 + $0xc] sm:$0x1 pattern:$0x76325410]  ;;  %v7127_v1 = vunpack.c.l.b16 %v5654_v61  ;;  %v971_v2 = vsel %vm791_vm2, %v970_v60, %v7147_v54  ;;  %v974_v3 = vrot.slane %v7143_v59, 5  ;;  %vm1051_vm11 = vcmask 130048  }
  0x77   : > { %v5673_v4 = vld.sshfl [vmem:[%s5601_s0 + $0xe] sm:$0x1 pattern:$0x76325410]  ;;  %v7122_v5 = vunpack.c.l.b16 %v5660_v0  ;;  %v973_v6 = vsel %vm794_vm3, %v972_v63, %v971_v2  ;;  %v976_v7 = vrot.slane %v7138_v62, 4  ;;  %vm1094_vm12 = vcmask 7168  }
  0x78   : > { %v5680_v8 = vld.sshfl [vmem:[%s5601_s0 + $0x10] sm:$0x1 pattern:$0x76325410]  ;;  %v975_v9 = vsel %vm797_vm4, %v974_v3, %v973_v6  ;;  %v978_v10 = vrot.slane %v7127_v1, 3  ;;  %v7118_v12 = vunpack.c.l.b16 %v5673_v4  ;;  %p5046_p3 = scmp.ne.s32.totalorder %s5361_s16, 1 }
  0x79   : > { %v5686_v11 = vld.sshfl [vmem:[%s5601_s0 + $0x12] sm:$0x1 pattern:$0x76325410]  ;;  %v977_v13 = vsel %vm800_vm5, %v976_v7, %v975_v9  ;;  %v7145_v15 = vunpack.c.l.b16 %v5680_v8  ;;  %v980_v17 = vrot.slane %v7122_v5, 2  ;;  %vm4321_vm13 = vcmask (!%p5046_p3), 58369  }
  0x7a   : > { %v5691_v14 = vld.sshfl [vmem:[%s5601_s0 + $0x14] sm:$0x1 pattern:$0x76325410]  ;;  %v7141_v16 = vunpack.c.l.b16 %v5686_v11  ;;  %v979_v20 = vsel %vm803_vm7, %v978_v10, %v977_v13  ;;  %v982_v26 = vrot.slane %v7118_v12, 1  ;;  %vm3762_vm0 = vcmask (!%p5046_p3), 57344  }
  0x7b   : > { %v5698_v18 = vld.sshfl [vmem:[%s5601_s0 + $0x16] sm:$0x1 pattern:$0x76325410]  ;;  %v7142_v19 = vunpack.c.l.b16 %v5691_v14  ;;  %v981_v30 = vsel %vm806_vm8, %v980_v17, %v979_v20  ;;  %vm4322_vm14 = vsmask.f32 (!%p5046_p3), 1280 }
  0x7c   : > { %v5703_v21 = vld.sshfl [vmem:[%s5601_s0 + $0x18] sm:$0x1 pattern:$0x76325410]  ;;  %v7137_v22 = vunpack.c.l.b16 %v5698_v18  ;;  %v984_v23 = vrot.slane %v7141_v16, 7  ;;  %v983_v41 = vsel %vm809_vm9, %v982_v26, %v981_v30  ;;  %vm6639_vm15 = vmand (!%p5046_p3), %vm4321_vm13, %vm4322_vm14 }
  0x7d   : > { %v5709_v24 = vld.sshfl [vmem:[%s5601_s0 + $0x1a] sm:$0x1 pattern:$0x76325410]  ;;  %v7125_v25 = vunpack.c.l.b16 %v5703_v21  ;;  %v986_v27 = vrot.slane %v7142_v19, 6 }
  0x7e   : > { %v5717_v28 = vld.sshfl [vmem:[%s5601_s0 + $0x1c] sm:$0x1 pattern:$0x76325410]  ;;  %v7123_v29 = vunpack.c.l.b16 %v5709_v24  ;;  %v985_v31 = vsel %vm791_vm2, %v984_v23, %v7145_v15  ;;  %v988_v32 = vrot.slane %v7137_v22, 5 }
  0x7f   : > { %v5727_v33 = vld.sshfl [vmem:[%s5601_s0 + $0x1e] sm:$0x1 pattern:$0x76325410]  ;;  %v7121_v34 = vunpack.c.l.b16 %v5717_v28  ;;  %v987_v35 = vsel %vm794_vm3, %v986_v27, %v985_v31  ;;  %v990_v36 = vrot.slane %v7125_v25, 4 }
  0x80   : > { %v7116_v37 = vunpack.c.l.b16 %v5727_v33  ;;  %v989_v38 = vsel %vm797_vm4, %v988_v32, %v987_v35  ;;  %v992_v39 = vrot.slane %v7123_v29, 3  ;;  %v5738_v40 = vld.sshfl [vmem:[%s5599_s27] sm:$0x1 pattern:$0x76325410] }
  0x81   : > { %v991_v42 = vsel %vm800_vm5, %v990_v36, %v989_v38  ;;  %v994_v43 = vrot.slane %v7121_v34, 2  ;;  %v5745_v44 = vld.sshfl [vmem:[%s5599_s27 + $0x2] sm:$0x1 pattern:$0x76325410]  ;;  %v7140_v48 = vunpack.c.l.b16 %v5738_v40 }
  0x82   : > { %v993_v45 = vsel %vm803_vm7, %v992_v39, %v991_v42  ;;  %v996_v46 = vrot.slane %v7116_v37, 1  ;;  %v5751_v47 = vld.sshfl [vmem:[%s5599_s27 + $0x4] sm:$0x1 pattern:$0x76325410]  ;;  %v7130_v49 = vunpack.c.l.b16 %v5745_v44 }
  0x83   : > { %v995_v60 = vsel %vm806_vm8, %v994_v43, %v993_v45  ;;  %v5757_v63 = vld.sshfl [vmem:[%s5599_s27 + $0x6] sm:$0x1 pattern:$0x76325410]  ;;  %v7136_v2 = vunpack.c.l.b16 %v5751_v47  ;;  %vm3763_vm1 = vsmask.f32 (!%p5046_p3), 256 }
  0x84   : > { %v997_v3 = vsel %vm809_vm9, %v996_v46, %v995_v60  ;;  %v5762_v6 = vld.sshfl [vmem:[%s5599_s27 + $0x8] sm:$0x1 pattern:$0x76325410]  ;;  %v7124_v7 = vunpack.c.l.b16 %v5757_v63  ;;  %v790_v9 = vrot.slane %v7130_v49, 7 }
  0x85   : > { %v998_v10 = vpack.c.b16 %v997_v3, %v983_v41  ;;  %v5768_v13 = vld.sshfl [vmem:[%s5599_s27 + $0xa] sm:$0x1 pattern:$0x76325410]  ;;  %v7120_v17 = vunpack.c.l.b16 %v5762_v6  ;;  %v793_v20 = vrot.slane %v7136_v2, 6 }
  0x86   : > { %v5774_v23 = vld.sshfl [vmem:[%s5599_s27 + $0xc] sm:$0x1 pattern:$0x76325410]  ;;  %v7117_v26 = vunpack.c.l.b16 %v5768_v13  ;;  %v792_v27 = vsel %vm791_vm2, %v790_v9, %v7140_v48  ;;  %v796_v30 = vrot.slane %v7124_v7, 5 }
  0x87   : > { %v1004_v31 = vsel %vm999_vm10, %v998_v10, 0  ;;  %v5784_v32 = vld.sshfl [vmem:[%s5599_s27 + $0xe] sm:$0x1 pattern:$0x76325410]  ;;  %v7119_v35 = vunpack.c.l.b16 %v5774_v23  ;;  %v795_v36 = vsel %vm794_vm3, %v793_v20, %v792_v27  ;;  %v799_v38 = vrot.slane %v7120_v17, 4 }
  0x88   : > { %5102 = vmatpush3.bf16.xpose.msra.mxu0 %v1004_v31  ;;  %v5791_v39 = vld.sshfl [vmem:[%s5599_s27 + $0x10] sm:$0x1 pattern:$0x76325410]  ;;  %v798_v41 = vsel %vm797_vm4, %v796_v30, %v795_v36  ;;  %v802_v42 = vrot.slane %v7117_v26, 3  ;;  %v7126_v60 = vunpack.c.l.b16 %v5784_v32 }
  0x89   : > { %v5797_v43 = vld.sshfl [vmem:[%s5599_s27 + $0x12] sm:$0x1 pattern:$0x76325410]  ;;  %v801_v45 = vsel %vm800_vm5, %v799_v38, %v798_v41  ;;  %5119 = vmatprep.subr.bf16.mxu0 %v7149_v51  ;;  %v7139_v3 = vunpack.c.l.b16 %v5791_v39  ;;  %v805_v27 = vrot.slane %v7119_v35, 2 }
  0x8a   : > { %v5802_v46 = vld.sshfl [vmem:[%s5599_s27 + $0x14] sm:$0x1 pattern:$0x76325410]  ;;  %v7129_v9 = vunpack.c.l.b16 %v5797_v43  ;;  %v804_v36 = vsel %vm803_vm7, %v802_v42, %v801_v45  ;;  %v808_v17 = vrot.slane %v7126_v60, 1 }
  0x8b   : > { %v5808_v10 = vld.sshfl [vmem:[%s5599_s27 + $0x16] sm:$0x1 pattern:$0x76325410]  ;;  %v7135_v20 = vunpack.c.l.b16 %v5802_v46  ;;  %v807_v29 = vsel %vm806_vm8, %v805_v27, %v804_v36 }
  0x8c   : > { %v5814_v30 = vld.sshfl [vmem:[%s5599_s27 + $0x18] sm:$0x1 pattern:$0x76325410]  ;;  %v7128_v31 = vunpack.c.l.b16 %v5808_v10  ;;  %v811_v38 = vrot.slane %v7129_v9, 7  ;;  %v810_v49 = vsel %vm809_vm9, %v808_v17, %v807_v29 }
  0x8d   : > { %v5821_v41 = vld.sshfl [vmem:[%s5599_s27 + $0x1a] sm:$0x1 pattern:$0x76325410]  ;;  %v7134_v37 = vunpack.c.l.b16 %v5814_v30  ;;  %v813_v26 = vrot.slane %v7135_v20, 6 }
  0x8e   : > { %v5827_v12 = vld.sshfl [vmem:[%s5599_s27 + $0x1c] sm:$0x1 pattern:$0x76325410]  ;;  %v7133_v35 = vunpack.c.l.b16 %v5821_v41  ;;  %v812_v42 = vsel %vm791_vm2, %v811_v38, %v7139_v3  ;;  %v815_v45 = vrot.slane %v7128_v31, 5 }
  0x8f   : > { %v5838_v34 = vld.sshfl [vmem:[%s5599_s27 + $0x1e] sm:$0x1 pattern:$0x76325410]  ;;  %v7132_v5 = vunpack.c.l.b16 %v5827_v12  ;;  %v814_v7 = vsel %vm794_vm3, %v813_v26, %v812_v42  ;;  %v817_v25 = vrot.slane %v7134_v37, 4 }
  0x90   : > { %v7131_v60 = vunpack.c.l.b16 %v5838_v34  ;;  %v816_v1 = vsel %vm797_vm4, %v815_v45, %v814_v7  ;;  %v819_v38 = vrot.slane %v7133_v35, 3  ;;  %v4887_v22 = vld.sshfl [vmem:[%s5603_s12 + $0x10] sm:$0x1 pattern:$0x76325410] }
  0x91   : > { %v818_v31 = vsel %vm800_vm5, %v817_v25, %v816_v1  ;;  %v821_v9 = vrot.slane %v7132_v5, 2  ;;  %v4883_v5 = vld.sshfl [vmem:[%s5603_s12 + $0x8] sm:$0x1 pattern:$0x76325410] }
  0x92   : > { %v820_v27 = vsel %vm803_vm7, %v819_v38, %v818_v31  ;;  %v823_v26 = vrot.slane %v7131_v60, 1  ;;  %v5391_v38 = vmov 0   ;;  %v4888_v16 = vld.sshfl [vmem:[%s5603_s12 + $0x12] sm:$0x1 pattern:$0x76325410] }
  0x93   : > { %v822_v36 = vsel %vm806_vm8, %v821_v9, %v820_v27  ;;  %5247 = vset.pattern.permute.xlu1 %v5391_v38  ;;  %5248 = vset.pattern.permute.xlu0 %v5391_v38  ;;  %v5869_v27 = vld [vmem:[#allocation2] sm:$0xff]  ;;  %v1249_v59 = vunpack.c.l.b16 %v4888_v16  ;;  %v4891_v55 = vld.sshfl [vmem:[%s5603_s12 + $0x18] sm:$0x1 pattern:$0x76325410] }
  0x94   : > { %v824_v42 = vsel %vm809_vm9, %v823_v26, %v822_v36  ;;  %v4893_v15 = vld.sshfl [vmem:[%s5603_s12 + $0x1c] sm:$0x1 pattern:$0x76325410] }
  0x95   : > { %v825_v7 = vpack.c.b16 %v824_v42, %v810_v49  ;;  %v5874_v42 = vld [vmem:[#allocation2 + $0x8] sm:$0xff] }
  0x97   : > { %5104 = vmatmul.mubr.msk.bf16.vlgmr.msra.gmra.mrb[0].mxu0 %vm999_vm10, %v825_v7  ;;  %v4880_v7 = vld.sshfl [vmem:[%s5603_s12 + $0x2] sm:$0x1 pattern:$0x76325410] }
  0x98   : > { %5121 = vmatprep.mubr.msk.bf16.mxu0 %vm5390_vm6, %v7149_v51 }
 0x16a   : > { %v1040_v1 = vpop.f32.mrb[0].mxu0 }
 0x16b   : > { %v5861_v25 = vmul.f32 0.35355338, %v1040_v1  ;;  %v5105_v29 = vpop.f32.mrb[1].mxu0 }
 0x16c   : > { %v1043_v17 = vpop.f32.mrb[2].mxu0  ;;  %v4881_v29 = vld.sshfl [vmem:[%s5603_s12 + $0x4] sm:$0x1 pattern:$0x76325410] }
 0x16d   : > { %v5863_v31 = vmul.f32 0.35355338, %v1043_v17  ;;  %v5106_v45 = vpop.f32.mrb[3].mxu0  ;;  %v1052_v9 = vsel %vm1051_vm11, %v5861_v25, -inf  ;;  %v1241_v17 = vunpack.c.l.b16 %v4880_v7 }
 0x16e   : > { %1053 = vmax.xlane.f32.xlu0 %v1052_v9  ;;  %v4879_v9 = vld.sshfl [vmem:[%s5603_s12] sm:$0x1 pattern:$0x76325410] }
 0x16f   : > { %v1055_v49 = vsel %vm1051_vm11, %v5863_v31, -inf  ;;  %v1240_v60 = vunpack.c.l.b16 %v4879_v9  ;;  %v1256_v35 = vrot.slane %v1241_v17, 7  ;;  %v4884_v7 = vld.sshfl [vmem:[%s5603_s12 + $0xa] sm:$0x1 pattern:$0x76325410] }
 0x170   : > { %v1245_v2 = vunpack.c.l.b16 %v4884_v7  ;;  %v4886_v17 = vld.sshfl [vmem:[%s5603_s12 + $0xe] sm:$0x1 pattern:$0x76325410]  ;;  %v1248_v7 = vunpack.c.l.b16 %v4887_v22 }
 0x171   : > { %v1257_v9 = vsel %vm791_vm2, %v1256_v35, %v1240_v60  ;;  %v1247_v19 = vunpack.c.l.b16 %v4886_v17  ;;  %v4890_v60 = vld.sshfl [vmem:[%s5603_s12 + $0x16] sm:$0x1 pattern:$0x76325410] }
 0x172   : > { %1056 = vmax.xlane.f32.xlu0 %v1055_v49  ;;  %v1242_v49 = vunpack.c.l.b16 %v4881_v29  ;;  %v1244_v29 = vunpack.c.l.b16 %v4883_v5  ;;  %v1264_v48 = vrot.slane %v1245_v2, 3  ;;  %v4889_v5 = vld.sshfl [vmem:[%s5603_s12 + $0x14] sm:$0x1 pattern:$0x76325410] }
 0x173   : > { %v1268_v54 = vrot.slane %v1247_v19, 1  ;;  %v4894_v17 = vld.sshfl [vmem:[%s5603_s12 + $0x1e] sm:$0x1 pattern:$0x76325410] }
 0x174   : > { %v1258_v37 = vrot.slane %v1242_v49, 6  ;;  %v1262_v3 = vrot.slane %v1244_v29, 4  ;;  %v1252_v29 = vunpack.c.l.b16 %v4891_v55 }
 0x176   : > { %v1259_v20 = vsel %vm794_vm3, %v1258_v37, %v1257_v9  ;;  %v1251_v37 = vunpack.c.l.b16 %v4890_v60  ;;  %v1255_v60 = vunpack.c.l.b16 %v4894_v17 }
 0x178   : > { %v1274_v16 = vrot.slane %v1251_v37, 5 }
 0x1fb   : > { %v1054_v26 = vpop.xlane.xlu0 %1053 }
 0x1fc   : > { %v5872_v36 = vmax.f32 %v5869_v27, %v1054_v26  ;;  %v4882_v26 = vld.sshfl [vmem:[%s5603_s12 + $0x6] sm:$0x1 pattern:$0x76325410] }
 0x1fd   : > { %v1243_v1 = vunpack.c.l.b16 %v4882_v26 }
 0x1fe   : > { %1334 = vst.msk [vmem:[#allocation2] sm:$0xff] %vm1094_vm12, %v5872_v36  ;;  %1068 = vperm.xlu1 %5247, %v5872_v36  }
 0x1ff   : > { %v1057_v45 = vpop.xlane.xlu0 %1056  ;;  %v1260_v26 = vrot.slane %v1243_v1, 5  ;;  %v1250_v1 = vunpack.c.l.b16 %v4889_v5  ;;  %v1276_v5 = vrot.slane %v1252_v29, 4 }
 0x200   : > { %v5885_v38 = vmax.f32 %v5874_v42, %v1057_v45  ;;  %v4885_v45 = vld.sshfl [vmem:[%s5603_s12 + $0xc] sm:$0x1 pattern:$0x76325410] }
 0x201   : > { %v1246_v49 = vunpack.c.l.b16 %v4885_v45  ;;  %v1261_v62 = vsel %vm797_vm4, %v1260_v26, %v1259_v20  ;;  %v1270_v20 = vrot.slane %v1249_v59, 7  ;;  %v4892_v26 = vld.sshfl [vmem:[%s5603_s12 + $0x1a] sm:$0x1 pattern:$0x76325410]  ;;  %v1272_v2 = vrot.slane %v1250_v1, 6 }
 0x202   : > { %1335 = vst.msk [vmem:[#allocation2 + $0x8] sm:$0xff] %vm1094_vm12, %v5885_v38  ;;  %1073 = vperm.xlu1 %5247, %v5885_v38   ;;  %v1263_v35 = vsel %vm800_vm5, %v1262_v3, %v1261_v62  ;;  %v1253_v57 = vunpack.c.l.b16 %v4892_v26  ;;  %v1254_v62 = vunpack.c.l.b16 %v4893_v15 }
 0x203   : > { %v1266_v45 = vrot.slane %v1246_v49, 2  ;;  %v1265_v9 = vsel %vm803_vm7, %v1264_v48, %v1263_v35  ;;  %v1271_v22 = vsel %vm791_vm2, %v1270_v20, %v1248_v7  ;;  %v1282_v7 = vrot.slane %v1255_v60, 1 }
 0x204   : > { %v1273_v49 = vsel %vm794_vm3, %v1272_v2, %v1271_v22  ;;  %v1278_v59 = vrot.slane %v1253_v57, 3  ;;  %v1280_v35 = vrot.slane %v1254_v62, 2  ;;  %v7159_v57 = vunpack.c.l.b16 %v5639_v53 }
 0x205   : > { %v1267_v3 = vsel %vm806_vm8, %v1266_v45, %v1265_v9  ;;  %v1275_v48 = vsel %vm797_vm4, %v1274_v16, %v1273_v49  ;;  %v7158_v9 = vunpack.c.l.b16 %v5631_v50  ;;  %v7161_v2 = vunpack.c.l.b16 %v5635_v52 }
 0x206   : > { %v1277_v55 = vsel %vm800_vm5, %v1276_v5, %v1275_v48  ;;  %v1269_v1 = vsel %vm809_vm9, %v1268_v54, %v1267_v3  ;;  %v1703_v26 = vrot.slane %v7159_v57, 7  ;;  %v7160_v54 = vunpack.c.l.b16 %v5680_v8 }
 0x207   : > { %v1279_v19 = vsel %vm803_vm7, %v1278_v59, %v1277_v55  ;;  %v1701_v20 = vrot.slane %v7158_v9, 1  ;;  %v7162_v16 = vunpack.c.l.b16 %v5644_v56  ;;  %v7163_v62 = vunpack.c.l.b16 %v5691_v14 }
 0x208   : > { %v1281_v37 = vsel %vm806_vm8, %v1280_v35, %v1279_v19  ;;  %v1715_v29 = vrot.slane %v7160_v54, 1  ;;  %v7164_v53 = vunpack.c.l.b16 %v5686_v11  ;;  %v7165_v8 = vunpack.c.l.b16 %v5738_v40 }
 0x209   : > { %v1283_v15 = vsel %vm809_vm9, %v1282_v7, %v1281_v37  ;;  %v1702_v22 = vsel %vm791_vm2, %v7161_v2, %v1701_v20  ;;  %v1705_v17 = vrot.slane %v7162_v16, 6  ;;  %v1717_v3 = vrot.slane %v7163_v62, 7  ;;  %v5952_v7 = vld.sshfl [vmem:[%s5601_s0] sm:$0x2 pattern:$0x76325410] }
 0x20a   : > { %v1284_v45 = vpack.c.b16 %v1283_v15, %v1269_v1  ;;  %v1704_v50 = vsel %vm794_vm3, %v1703_v26, %v1702_v22  ;;  %v1716_v49 = vsel %vm791_vm2, %v7164_v53, %v1715_v29  ;;  %v1528_v5 = vrot.slane %v7165_v8, 1  ;;  %v5961_v15 = vld.sshfl [vmem:[%s5601_s0 + $0x2] sm:$0x2 pattern:$0x76325410] }
 0x20b   : > { %v7166_v52 = vunpack.c.l.b16 %v5791_v39  ;;  %v7167_v48 = vunpack.c.l.b16 %v5648_v58  ;;  %v7168_v59 = vunpack.c.l.b16 %v5698_v18  ;;  %v1706_v14 = vsel %vm797_vm4, %v1705_v17, %v1704_v50  ;;  %v5976_v2 = vld.sshfl [vmem:[%s5601_s0 + $0x10] sm:$0x2 pattern:$0x76325410] }
 0x20c   : > { %5108 = vmatpush3.bf16.msra.mxu1 %v1284_v45  ;;  %v1718_v35 = vsel %vm794_vm3, %v1717_v3, %v1716_v49  ;;  %v7169_v11 = vunpack.c.l.b16 %v5751_v47  ;;  %v7170_v40 = vunpack.c.l.b16 %v5802_v46  ;;  %v7171_v39 = vunpack.c.l.b16 %v5745_v44 }
 0x20d   : > { %5113 = vmatprep.subr.bf16.mxu1 %v7149_v51  ;;  %v1542_v60 = vrot.slane %v7166_v52, 1  ;;  %v1707_v56 = vrot.slane %v7167_v48, 5  ;;  %v1719_v55 = vrot.slane %v7168_v59, 6  ;;  %v7172_v18 = vunpack.c.l.b16 %v5797_v43 }
 0x20e   : > { %v1530_v1 = vrot.slane %v7169_v11, 7  ;;  %v1544_v19 = vrot.slane %v7170_v40, 7  ;;  %v1529_v58 = vsel %vm791_vm2, %v7171_v39, %v1528_v5  ;;  %v7173_v45 = vunpack.c.l.b16 %v5654_v61 }
 0x20f   : > { %v1543_v37 = vsel %vm791_vm2, %v7172_v18, %v1542_v60  ;;  %v7174_v9 = vunpack.c.l.b16 %v5703_v21  ;;  %v1708_v20 = vsel %vm800_vm5, %v1707_v56, %v1706_v14  ;;  %v1720_v57 = vsel %vm797_vm4, %v1719_v55, %v1718_v35  ;;  %v5998_v56 = vld.sshfl [vmem:[%s5601_s0 + $0x6] sm:$0x2 pattern:$0x76325410] }
 0x210   : > { %v1709_v47 = vrot.slane %v7173_v45, 4  ;;  %v7175_v44 = vunpack.c.l.b16 %v5757_v63  ;;  %v7176_v54 = vunpack.c.l.b16 %v5808_v10  ;;  %v1531_v29 = vsel %vm794_vm3, %v1530_v1, %v1529_v58  ;;  %v5983_v63 = vld.sshfl [vmem:[%s5601_s0 + $0x12] sm:$0x2 pattern:$0x76325410] }
 0x211   : > { %v1721_v46 = vrot.slane %v7174_v9, 5  ;;  %v1545_v61 = vsel %vm794_vm3, %v1544_v19, %v1543_v37  ;;  %v2416_v21 = vunpack.c.l.b16 %v5952_v7  ;;  %v2417_v22 = vunpack.c.l.b16 %v5961_v15  ;;  %v6018_v58 = vld.sshfl [vmem:[%s5601_s0 + $0x8] sm:$0x2 pattern:$0x76325410] }
 0x212   : > { %v1532_v26 = vrot.slane %v7175_v44, 6  ;;  %v1546_v43 = vrot.slane %v7176_v54, 6  ;;  %v7177_v16 = vunpack.c.l.b16 %v5709_v24  ;;  %v1710_v10 = vsel %vm803_vm7, %v1709_v47, %v1708_v20  ;;  %v6026_v9 = vld.sshfl [vmem:[%s5601_s0 + $0xa] sm:$0x2 pattern:$0x76325410] }
 0x213   : > { %v7178_v62 = vunpack.c.l.b16 %v5660_v0  ;;  %v1722_v50 = vsel %vm800_vm5, %v1721_v46, %v1720_v57  ;;  %v7179_v53 = vunpack.c.l.b16 %v5717_v28  ;;  %v7180_v5 = vunpack.c.l.b16 %v5762_v6  ;;  %v6001_v0 = vld.sshfl [vmem:[%s5601_s0 + $0x4] sm:$0x2 pattern:$0x76325410] }
 0x214   : > { %v1723_v17 = vrot.slane %v7177_v16, 4  ;;  %v1533_v8 = vsel %vm797_vm4, %v1532_v26, %v1531_v29  ;;  %v1547_v24 = vsel %vm797_vm4, %v1546_v43, %v1545_v61  ;;  %v7181_v60 = vunpack.c.l.b16 %v5814_v30  ;;  %v6034_v20 = vld.sshfl [vmem:[%s5601_s0 + $0x14] sm:$0x2 pattern:$0x76325410] }
 0x215   : > { %v1711_v3 = vrot.slane %v7178_v62, 3  ;;  %v1725_v49 = vrot.slane %v7179_v53, 3  ;;  %v1534_v52 = vrot.slane %v7180_v5, 5  ;;  %v2424_v28 = vunpack.c.l.b16 %v5976_v2 }
 0x216   : > { %v1548_v48 = vrot.slane %v7181_v60, 5  ;;  %v2425_v59 = vunpack.c.l.b16 %v5983_v63  ;;  %v2432_v55 = vrot.slane %v2416_v21, 2  ;;  %v2433_v6 = vrot.slane %v2417_v22, 1 }
 0x217   : > { %v7182_v30 = vunpack.c.l.b16 %v5673_v4  ;;  %v1724_v35 = vsel %vm803_vm7, %v1723_v17, %v1722_v50  ;;  %v1712_v11 = vsel %vm806_vm8, %v1711_v3, %v1710_v10  ;;  %v7183_v1 = vunpack.c.l.b16 %v5768_v13  ;;  %v6029_v13 = vld.sshfl [vmem:[%s5601_s0 + $0x16] sm:$0x2 pattern:$0x76325410] }
 0x218   : > { %v7184_v19 = vunpack.c.l.b16 %v5821_v41  ;;  %v2419_v18 = vunpack.c.l.b16 %v5998_v56  ;;  %v7185_v37 = vunpack.c.l.b16 %v5727_v33  ;;  %v1535_v4 = vsel %vm800_vm5, %v1534_v52, %v1533_v8  ;;  %v6046_v61 = vld.sshfl [vmem:[%s5601_s0 + $0xc] sm:$0x2 pattern:$0x76325410] }
 0x219   : > { %v1713_v14 = vrot.slane %v7182_v30, 2  ;;  %v1536_v40 = vrot.slane %v7183_v1, 4  ;;  %v1549_v47 = vsel %vm800_vm5, %v1548_v48, %v1547_v24  ;;  %v2418_v41 = vunpack.c.l.b16 %v6001_v0  ;;  %v6052_v62 = vld.sshfl [vmem:[%s5601_s0 + $0x18] sm:$0x2 pattern:$0x76325410] }
 0x21a   : > { %v1550_v39 = vrot.slane %v7184_v19, 4  ;;  %v1727_v45 = vrot.slane %v7185_v37, 2  ;;  %v1726_v46 = vsel %vm806_vm8, %v1725_v49, %v1724_v35  ;;  %v2434_v57 = vsel %vm791_vm2, %v2433_v6, %v2432_v55  ;;  %v6060_v53 = vld.sshfl [vmem:[%s5601_s0 + $0xe] sm:$0x2 pattern:$0x76325410] }
 0x21b   : > { %v2446_v33 = vrot.slane %v2424_v28, 2  ;;  %v2447_v44 = vrot.slane %v2425_v59, 1  ;;  %v7186_v26 = vunpack.c.l.b16 %v5774_v23  ;;  %v7187_v43 = vunpack.c.l.b16 %v5827_v12  ;;  %v6071_v48 = vld.sshfl [vmem:[%s5601_s0 + $0x1a] sm:$0x2 pattern:$0x76325410] }
 0x21c   : > { %v2420_v16 = vunpack.c.l.b16 %v6018_v58  ;;  %v1537_v17 = vsel %vm803_vm7, %v1536_v40, %v1535_v4  ;;  %v1551_v10 = vsel %vm803_vm7, %v1550_v39, %v1549_v47  ;;  %v2427_v3 = vunpack.c.l.b16 %v6029_v13  ;;  %v6078_v35 = vld.sshfl [vmem:[%s5601_s0 + $0x1c] sm:$0x2 pattern:$0x76325410] }
 0x21d   : > { %v1538_v54 = vrot.slane %v7186_v26, 3  ;;  %v1552_v29 = vrot.slane %v7187_v43, 3  ;;  %v2436_v23 = vrot.slane %v2419_v18, 7  ;;  %v1714_v12 = vsel %vm809_vm9, %v1713_v14, %v1712_v11 }
 0x21e   : > { %v1728_v50 = vsel %vm809_vm9, %v1727_v45, %v1726_v46  ;;  %v2426_v49 = vunpack.c.l.b16 %v6034_v20  ;;  %v2435_v8 = vsel %vm794_vm3, %v2418_v41, %v2434_v57  ;;  %v7188_v5 = vunpack.c.l.b16 %v5784_v32  ;;  %v6093_v4 = vld.sshfl [vmem:[%s5599_s27] sm:$0x2 pattern:$0x76325410] }
 0x21f   : > { %v7189_v24 = vunpack.c.l.b16 %v5838_v34  ;;  %v2421_v55 = vunpack.c.l.b16 %v6026_v9  ;;  %v2448_v6 = vsel %vm791_vm2, %v2447_v44, %v2446_v33  ;;  %v1539_v30 = vsel %vm806_vm8, %v1538_v54, %v1537_v17  ;;  %v6105_v26 = vld.sshfl [vmem:[%s5599_s27 + $0x2] sm:$0x2 pattern:$0x76325410] }
 0x220   : > { %v1540_v52 = vrot.slane %v7188_v5, 2  ;;  %v1553_v14 = vsel %vm806_vm8, %v1552_v29, %v1551_v10  ;;  %v2428_v32 = vunpack.c.l.b16 %v6052_v62  ;;  %v2438_v34 = vrot.slane %v2420_v16, 6  ;;  %v6109_v43 = vld.sshfl [vmem:[%s5601_s0 + $0x1e] sm:$0x2 pattern:$0x76325410] }
 0x221   : > { %v1554_v60 = vrot.slane %v7189_v24, 2  ;;  %v1729_v11 = vpack.c.b16 %v1728_v50, %v1714_v12  ;;  %v2422_v1 = vunpack.c.l.b16 %v6046_v61  ;;  %v2437_v40 = vsel %vm797_vm4, %v2436_v23, %v2435_v8  ;;  %v6115_v10 = vld.sshfl [vmem:[%s5599_s27 + $0x10] sm:$0x2 pattern:$0x76325410] }
 0x222   : > { %v2450_v19 = vrot.slane %v2427_v3, 7  ;;  %v7148_v39 = vunpack.c.l.b16 %v6060_v53  ;;  %v2429_v37 = vunpack.c.l.b16 %v6071_v48  ;;  %v2449_v45 = vsel %vm794_vm3, %v2426_v49, %v2448_v6  ;;  %v6124_v8 = vld.sshfl [vmem:[%s5599_s27 + $0x12] sm:$0x2 pattern:$0x76325410] }
 0x223   : > { %v6096_v46 = vsel %vm809_vm9, %v1540_v52, %v1539_v30  ;;  %v6099_v57 = vsel %vm809_vm9, %v1554_v60, %v1553_v14  ;;  %v7151_v33 = vunpack.c.l.b16 %v6078_v35  ;;  %v2440_v44 = vrot.slane %v2421_v55, 5  ;;  %v6133_v24 = vld.sshfl [vmem:[%s5599_s27 + $0x6] sm:$0x2 pattern:$0x76325410] }
 0x224   : > { %v2439_v29 = vsel %vm800_vm5, %v2438_v34, %v2437_v40  ;;  %v2452_v17 = vrot.slane %v2428_v32, 6  ;;  %v6118_v23 = vsel %vm999_vm10, %v1729_v11, 0  ;;  %v2442_v12 = vrot.slane %v2422_v1, 4 }
 0x225   : > { %v2451_v50 = vsel %vm797_vm4, %v2450_v19, %v2449_v45  ;;  %v2444_v5 = vrot.slane %v7148_v39, 3  ;;  %v2454_v52 = vrot.slane %v2429_v37, 5  ;;  %v2243_v60 = vunpack.c.l.b16 %v6093_v4  ;;  %v6143_v45 = vld.sshfl [vmem:[%s5599_s27 + $0x4] sm:$0x2 pattern:$0x76325410] }
 0x226   : > { %v2441_v14 = vsel %vm803_vm7, %v2440_v44, %v2439_v29  ;;  %v2456_v34 = vrot.slane %v7151_v33, 4  ;;  %v2244_v11 = vunpack.c.l.b16 %v6105_v26  ;;  %v2453_v19 = vsel %vm800_vm5, %v2452_v17, %v2451_v50  ;;  %v6149_v44 = vld.sshfl [vmem:[%s5599_s27 + $0x8] sm:$0x2 pattern:$0x76325410] }
 0x227   : > { %v2246_v29 = vunpack.c.l.b16 %v6133_v24  ;;  %v3163_v26 = vrot.slane %v2416_v21, 3  ;;  %v6157_v50 = vld.sshfl [vmem:[%s5599_s27 + $0xa] sm:$0x2 pattern:$0x76325410]  ;;  %v3178_v39 = vrot.slane %v2425_v59, 2  ;;  %v2443_v7 = vsel %vm806_vm8, %v2442_v12, %v2441_v14 }
 0x228   : > { %v2455_v15 = vsel %vm803_vm7, %v2454_v52, %v2453_v19  ;;  %v6171_v21 = vld.sshfl [vmem:[%s5599_s27 + $0xc] sm:$0x2 pattern:$0x76325410]  ;;  %v3166_v2 = vrot.slane %v2418_v41, 1  ;;  %v2245_v59 = vunpack.c.l.b16 %v6143_v45  ;;  %v3180_v52 = vrot.slane %v2426_v49, 1 }
 0x229   : > { %v6189_v14 = vld.sshfl [vmem:[%s5599_s27 + $0x18] sm:$0x2 pattern:$0x76325410]  ;;  %v2247_v19 = vunpack.c.l.b16 %v6149_v44 }
 0x22a   : > { %v6198_v45 = vld.sshfl [vmem:[%s5599_s27 + $0x1a] sm:$0x2 pattern:$0x76325410] }
 0x22b   : > { %v2265_v62 = vrot.slane %v2247_v19, 6 }
 0x27d   : > { %v1069_v47 = vpop.permute.xlu1 %1068 }
 0x27e   : > { %v1076_v54 = vsub.f32 %v5861_v25, %v1069_v47  ;;  %v2251_v47 = vunpack.c.l.b16 %v6115_v10  ;;  %v7152_v25 = vunpack.c.l.b16 %v6109_v43  ;;  %v6160_v10 = vld.sshfl [vmem:[%s5599_s27 + $0x14] sm:$0x2 pattern:$0x76325410] }
 0x27f   : > { %v2253_v20 = vunpack.c.l.b16 %v6160_v10 }
 0x280   : > { %v1078_v6 = vmul.f32 1.442695, %v1076_v54  ;;  %v2252_v54 = vunpack.c.l.b16 %v6124_v8  ;;  %v2259_v8 = vrot.slane %v2243_v60, 2  ;;  %v2273_v51 = vrot.slane %v2251_v47, 2 }
 0x281   : > { %v1074_v30 = vpop.permute.xlu1 %1073  ;;  %v2458_v63 = vrot.slane %v7152_v25, 3  ;;  %v6215_v25 = vld.sshfl [vmem:[%s5599_s27 + $0x1c] sm:$0x2 pattern:$0x76325410]  ;;  %v3004_v58 = vrot.slane %v2251_v47, 3 }
 0x282   : > { %v1077_v40 = vsub.f32 %v5863_v31, %v1074_v30  ;;  %v3164_v31 = vrot.slane %v2417_v22, 2  ;;  %v3177_v30 = vrot.slane %v2424_v28, 3  ;;  %5249 = vpow2.f32 %v1078_v6  ;;  %v6174_v22 = vld.sshfl [vmem:[%s5599_s27 + $0x16] sm:$0x2 pattern:$0x76325410] }
 0x283   : > { %v2274_v33 = vrot.slane %v2252_v54, 1  ;;  %v6181_v28 = vld.sshfl [vmem:[%s5599_s27 + $0xe] sm:$0x2 pattern:$0x76325410]  ;;  %v2457_v6 = vsel %vm806_vm8, %v2456_v34, %v2455_v15  ;;  %v2254_v0 = vunpack.c.l.b16 %v6174_v22  ;;  %v2249_v34 = vunpack.c.l.b16 %v6171_v21 }
 0x284   : > { %v1080_v17 = vmul.f32 1.442695, %v1077_v40  ;;  %v2260_v40 = vrot.slane %v2244_v11, 1  ;;  %v3165_v12 = vsel %vm791_vm2, %v3164_v31, %v3163_v26  ;;  %v3179_v41 = vsel %vm791_vm2, %v3178_v39, %v3177_v30 }
 0x285   : > { %v2248_v26 = vunpack.c.l.b16 %v6157_v50  ;;  %v2263_v31 = vrot.slane %v2246_v29, 7  ;;  %v2275_v15 = vsel %vm791_vm2, %v2274_v33, %v2273_v51  ;;  %v3167_v39 = vsel %vm794_vm3, %v3166_v2, %v3165_v12  ;;  %v4961_v47 = vld.sshfl [vmem:[%s5599_s27 + $0x1e] sm:$0x2 pattern:$0x76325410] }
 0x286   : > { %5251 = vpow2.f32 %v1080_v17  ;;  %v6195_v17 = vsel %vm809_vm9, %v2444_v5, %v2443_v7  ;;  %v2261_v49 = vsel %vm791_vm2, %v2260_v40, %v2259_v8  ;;  %v6209_v5 = vsel %vm809_vm9, %v2458_v63, %v2457_v6 }
 0x287   : > { %v2250_v30 = vunpack.c.l.b16 %v6181_v28  ;;  %v2255_v7 = vunpack.c.l.b16 %v6189_v14  ;;  %v3181_v10 = vsel %vm794_vm3, %v3180_v52, %v3179_v41  ;;  %v2256_v8 = vunpack.c.l.b16 %v6198_v45 }
 0x288   : > { %v2262_v40 = vsel %vm794_vm3, %v2245_v59, %v2261_v49  ;;  %v2277_v51 = vrot.slane %v2254_v0, 7  ;;  %v3169_v33 = vrot.slane %v2420_v16, 7  ;;  %v2276_v2 = vsel %vm794_vm3, %v2253_v20, %v2275_v15 }
 0x289   : > { %v3168_v63 = vsel %vm797_vm4, %v2419_v18, %v3167_v39  ;;  %v3183_v12 = vrot.slane %v2428_v32, 7  ;;  %v2990_v52 = vrot.slane %v2243_v60, 3  ;;  %v3182_v6 = vsel %vm797_vm4, %v2427_v3, %v3181_v10 }
 0x28a   : > { %v2991_v14 = vrot.slane %v2244_v11, 2  ;;  %v3005_v16 = vrot.slane %v2252_v54, 2  ;;  %v2257_v56 = vunpack.c.l.b16 %v6215_v25  ;;  %v2264_v18 = vsel %vm797_vm4, %v2263_v31, %v2262_v40 }
 0x28b   : > { %v2279_v32 = vrot.slane %v2255_v7, 6  ;;  %v2278_v13 = vsel %vm797_vm4, %v2277_v51, %v2276_v2  ;;  %v3170_v60 = vsel %vm800_vm5, %v3169_v33, %v3168_v63  ;;  %v3171_v3 = vrot.slane %v2421_v55, 6 }
 0x28c   : > { %v6234_v41 = vpop.eup %5249  ;;  %v3185_v11 = vrot.slane %v2429_v37, 6  ;;  %v3184_v54 = vsel %vm800_vm5, %v3183_v12, %v3182_v6  ;;  %v2993_v49 = vrot.slane %v2245_v59, 1  ;;  %v3007_v31 = vrot.slane %v2253_v20, 1 }
 0x28d   : > { %v2267_v15 = vrot.slane %v2248_v26, 5  ;;  %v2281_v39 = vrot.slane %v2256_v8, 5  ;;  %v2992_v9 = vsel %vm791_vm2, %v2991_v14, %v2990_v52  ;;  %v3006_v55 = vsel %vm791_vm2, %v3005_v16, %v3004_v58 }
 0x28e   : > { %v2266_v48 = vsel %vm800_vm5, %v2265_v62, %v2264_v18  ;;  %v2280_v37 = vsel %vm800_vm5, %v2279_v32, %v2278_v13  ;;  %v3173_v59 = vrot.slane %v2422_v1, 5  ;;  %v7190_v20 = vunpack.c.l.b16 %v6078_v35 }
 0x28f   : > { %v7191_v40 = vmov 0.0   ;;  %v2460_v51 = vpack.c.b16 %v6209_v5, %v6195_v17  ;;  %v2258_v33 = vunpack.c.l.b16 %v4961_v47  ;;  %v3172_v2 = vsel %vm803_vm7, %v3171_v3, %v3170_v60 }
 0x290   : > { %v6240_v4 = vpop.eup %5251  ;;  %v3187_v10 = vrot.slane %v7190_v20, 5  ;;  %v3186_v63 = vsel %vm803_vm7, %v3185_v11, %v3184_v54  ;;  %v2269_v61 = vrot.slane %v2249_v34, 4  ;;  %v2283_v35 = vrot.slane %v2257_v56, 4 }
 0x291   : > { %v1111_v25 = vpack.c.bf16 %v6240_v4, %v6234_v41  ;;  %v2994_v1 = vsel %vm794_vm3, %v2993_v49, %v2992_v9  ;;  %v2268_v12 = vsel %vm803_vm7, %v2267_v15, %v2266_v48  ;;  %v2282_v52 = vsel %vm803_vm7, %v2281_v39, %v2280_v37 }
 0x292   : > { %v7192_v17 = vunpack.c.l.b16 %v6060_v53  ;;  %v7193_v6 = vunpack.c.l.b16 %v6109_v43  ;;  %v3174_v58 = vsel %vm806_vm8, %v3173_v59, %v3172_v2  ;;  %v3188_v16 = vsel %vm806_vm8, %v3187_v10, %v3186_v63 }
 0x293   : > { %5110 = vmatmul.mubr.msk.bf16.vlgmr.msra.gmra.mrb[0].mxu1 %vm1051_vm11, %v1111_v25  ;;  %v2996_v18 = vrot.slane %v2247_v19, 7  ;;  %v3010_v62 = vrot.slane %v2255_v7, 7  ;;  %v2271_v32 = vrot.slane %v2250_v30, 3  ;;  %v2285_v13 = vrot.slane %v2258_v33, 3 }
 0x294   : > { %5114 = vmatpush3.bf16.xpose.msra.mxu1 %v6118_v23  ;;  %5115 = vmatprep.mubr.msk.bf16.mxu1 %vm5390_vm6, %v7191_v40  ;;  %v3008_v23 = vsel %vm794_vm3, %v3007_v31, %v3006_v55  ;;  %v3175_v5 = vrot.slane %v7192_v17, 4  ;;  %v3189_v14 = vrot.slane %v7193_v6, 4  ;;  %v2995_v53 = vsel %vm797_vm4, %v2246_v29, %v2994_v1 }
 0x295   : > { %5125 = vmatprep.subr.bf16.mxu1 %v7191_v40  ;;  %v3009_v43 = vsel %vm797_vm4, %v2254_v0, %v3008_v23  ;;  %v2465_v60 = vsel %vm999_vm10, %v2460_v51, 0  ;;  %v2270_v3 = vsel %vm806_vm8, %v2269_v61, %v2268_v12  ;;  %v2284_v44 = vsel %vm806_vm8, %v2283_v35, %v2282_v52 }
 0x296   : > { %v3176_v19 = vsel %vm809_vm9, %v3175_v5, %v3174_v58  ;;  %v3190_v7 = vsel %vm809_vm9, %v3189_v14, %v3188_v16  ;;  %v2998_v11 = vrot.slane %v2248_v26, 6  ;;  %v3012_v24 = vrot.slane %v2256_v8, 6 }
 0x297   : > { %v7194_v29 = vpack.c.b16 %v6099_v57, %v6096_v46  ;;  %v2997_v22 = vsel %vm800_vm5, %v2996_v18, %v2995_v53  ;;  %v3011_v0 = vsel %vm800_vm5, %v3010_v62, %v3009_v43  ;;  %v2272_v25 = vsel %vm809_vm9, %v2271_v32, %v2270_v3  ;;  %v6360_v43 = vld [vmem:[#allocation2 + $0x18] sm:$0xff] }
 0x298   : > { %v2286_v50 = vsel %vm809_vm9, %v2285_v13, %v2284_v44  ;;  %v3191_v45 = vpack.c.b16 %v3190_v7, %v3176_v19  ;;  %v3000_v46 = vrot.slane %v2249_v34, 5  ;;  %v3014_v57 = vrot.slane %v2257_v56, 5  ;;  %v6358_v13 = vld [vmem:[#allocation2 + $0x10] sm:$0xff]  ;;  %v6375_v7 = vld [vmem:[#allocation2 + $0x20] sm:$0xff] }
 0x299   : > { %v2999_v26 = vsel %vm803_vm7, %v2998_v11, %v2997_v22  ;;  %v3013_v8 = vsel %vm803_vm7, %v3012_v24, %v3011_v0  ;;  %v2287_v47 = vpack.c.b16 %v2286_v50, %v2272_v25  ;;  %v3002_v54 = vrot.slane %v2250_v30, 4  ;;  %v4929_v19 = vld.sshfl [vmem:[%s5603_s12] sm:$0x1 pattern:$0x76325410] }
 0x29a   : > { %v3016_v49 = vrot.slane %v2258_v33, 4  ;;  %v3196_v31 = vsel %vm999_vm10, %v3191_v45, 0  ;;  %v3001_v15 = vsel %vm806_vm8, %v3000_v46, %v2999_v26  ;;  %v3015_v39 = vsel %vm806_vm8, %v3014_v57, %v3013_v8  ;;  %v4931_v11 = vld.sshfl [vmem:[%s5603_s12 + $0x4] sm:$0x1 pattern:$0x76325410] }
 0x29b   : > { %5116 = vmatmul.mubr.msk.bf16.vlgmr.msra.gmra.mrb[4].mxu1 %vm999_vm10, %v7194_v29  ;;  %v3003_v21 = vsel %vm809_vm9, %v3002_v54, %v3001_v15  ;;  %v1971_v24 = vunpack.c.l.b16 %v4929_v19  ;;  %v4930_v29 = vld.sshfl [vmem:[%s5603_s12 + $0x2] sm:$0x1 pattern:$0x76325410]  ;;  %v1973_v22 = vunpack.c.l.b16 %v4931_v11  ;;  %v6412_v19 = vld [vmem:[#allocation2 + $0x38] sm:$0xff] }
 0x29c   : > { %5126 = vmatpush3.bf16.xpose.msra.mxu1 %v2465_v60  ;;  %5127 = vmatprep.mubr.msk.bf16.mxu1 %vm5390_vm6, %v7191_v40  ;;  %v3017_v34 = vsel %vm809_vm9, %v3016_v49, %v3015_v39  ;;  %v4932_v25 = vld.sshfl [vmem:[%s5603_s12 + $0x6] sm:$0x1 pattern:$0x76325410]  ;;  %v1972_v50 = vunpack.c.l.b16 %v4930_v29 }
 0x29d   : > { %5137 = vmatprep.subr.bf16.mxu1 %v7191_v40  ;;  %v3018_v56 = vpack.c.b16 %v3017_v34, %v3003_v21  ;;  %v1987_v45 = vrot.slane %v1971_v24, 1  ;;  %v4933_v57 = vld.sshfl [vmem:[%s5603_s12 + $0x8] sm:$0x1 pattern:$0x76325410]  ;;  %v1974_v26 = vunpack.c.l.b16 %v4932_v25  ;;  %v1989_v8 = vrot.slane %v1973_v22, 7 }
 0x29e   : > { %v4934_v54 = vld.sshfl [vmem:[%s5603_s12 + $0xa] sm:$0x1 pattern:$0x76325410]  ;;  %v1975_v49 = vunpack.c.l.b16 %v4933_v57 }
 0x29f   : > { %v4935_v15 = vld.sshfl [vmem:[%s5603_s12 + $0xc] sm:$0x1 pattern:$0x76325410]  ;;  %v1976_v39 = vunpack.c.l.b16 %v4934_v54  ;;  %v1991_v34 = vrot.slane %v1974_v26, 6 }
 0x2a0   : > { %v4942_v11 = vld.sshfl [vmem:[%s5603_s12 + $0x1a] sm:$0x1 pattern:$0x76325410] }
 0x2a3   : > { %5128 = vmatmul.mubr.msk.bf16.vlgmr.msra.gmra.mrb[8].mxu1 %vm999_vm10, %v2287_v47  ;;  %v6384_v47 = vld [vmem:[#allocation2 + $0x28] sm:$0xff] }
 0x2a4   : > { %5138 = vmatpush3.bf16.xpose.msra.mxu1 %v3196_v31  ;;  %5139 = vmatprep.mubr.msk.bf16.mxu1 %vm5390_vm6, %v7191_v40  ;;  %v1988_v31 = vsel %vm791_vm2, %v1972_v50, %v1987_v45  ;;  %v4943_v50 = vld.sshfl [vmem:[%s5603_s12 + $0x1c] sm:$0x1 pattern:$0x76325410]  ;;  %v1984_v45 = vunpack.c.l.b16 %v4942_v11 }
 0x2a5   : > { %v1990_v21 = vsel %vm794_vm3, %v1989_v8, %v1988_v31  ;;  %v4944_v8 = vld.sshfl [vmem:[%s5603_s12 + $0x1e] sm:$0x1 pattern:$0x76325410]  ;;  %v1985_v54 = vunpack.c.l.b16 %v4943_v50 }
 0x2a6   : > { %v4988_v11 = vld.sshfl [vmem:[%s5603_s12 + $0x12] sm:$0x2 pattern:$0x76325410] }
 0x2a7   : > { %v4981_v50 = vld.sshfl [vmem:[%s5603_s12 + $0x4] sm:$0x2 pattern:$0x76325410] }
 0x2ab   : > { %5140 = vmatmul.mubr.msk.bf16.vlgmr.msra.gmra.mrb[12].mxu1 %vm999_vm10, %v3018_v56 }
 0x366   : > { %v6330_v28 = vpop.f32.mrb[0].mxu1 }
 0x367   : > { %v5111_v30 = vpop.f32.mrb[1].mxu1 }
 0x368   : > { %v6332_v9 = vpop.f32.mrb[2].mxu1  ;;  %v4936_v30 = vld.sshfl [vmem:[%s5603_s12 + $0xe] sm:$0x1 pattern:$0x76325410] }
 0x369   : > { %v5112_v55 = vpop.f32.mrb[3].mxu1 }
 0x36a   : > { %v1993_v55 = vrot.slane %v1975_v49, 5 }
 0x36e   : > { %v1770_v48 = vpop.f32.mrb[4].mxu1 }
 0x36f   : > { %v6334_v37 = vmul.f32 0.35355338, %v1770_v48  ;;  %v5117_v59 = vpop.f32.mrb[5].mxu1 }
 0x370   : > { %v1773_v20 = vpop.f32.mrb[6].mxu1  ;;  %v4937_v59 = vld.sshfl [vmem:[%s5603_s12 + $0x10] sm:$0x1 pattern:$0x76325410] }
 0x371   : > { %v6336_v10 = vmul.f32 0.35355338, %v1773_v20  ;;  %v5118_v51 = vpop.f32.mrb[7].mxu1  ;;  %v1782_v33 = vsel %vm1051_vm11, %v6334_v37, -inf  ;;  %v1977_v20 = vunpack.c.l.b16 %v4935_v15 }
 0x372   : > { %1783 = vmax.xlane.f32.xlu0 %v1782_v33  ;;  %v1992_v51 = vsel %vm797_vm4, %v1991_v34, %v1990_v21  ;;  %v6399_v33 = vld [vmem:[#allocation2 + $0x30] sm:$0xff]  ;;  %v1986_v21 = vunpack.c.l.b16 %v4944_v8 }
 0x373   : > { %v1785_v2 = vsel %vm1051_vm11, %v6336_v10, -inf }
 0x374   : > { %1786 = vmax.xlane.f32.xlu1 %v1785_v2  ;;  %v4938_v2 = vld.sshfl [vmem:[%s5603_s12 + $0x12] sm:$0x1 pattern:$0x76325410] }
 0x376   : > { %v2501_v63 = vpop.f32.mrb[8].mxu1 }
 0x377   : > { %v6342_v61 = vmul.f32 0.35355338, %v2501_v63  ;;  %v5129_v35 = vpop.f32.mrb[9].mxu1  ;;  %v1979_v63 = vunpack.c.l.b16 %v4937_v59  ;;  %v2011_v59 = vrot.slane %v1985_v54, 3 }
 0x378   : > { %v2504_v1 = vpop.f32.mrb[10].mxu1  ;;  %v1995_v35 = vrot.slane %v1976_v39, 4  ;;  %v4989_v54 = vld.sshfl [vmem:[%s5603_s12 + $0x14] sm:$0x2 pattern:$0x76325410] }
 0x379   : > { %v6344_v23 = vmul.f32 0.35355338, %v2504_v1  ;;  %v5130_v12 = vpop.f32.mrb[11].mxu1  ;;  %v2513_v52 = vsel %vm1051_vm11, %v6342_v61, -inf }
 0x37a   : > { %2514 = vmax.xlane.f32.xlu0 %v2513_v52  ;;  %v4939_v1 = vld.sshfl [vmem:[%s5603_s12 + $0x14] sm:$0x1 pattern:$0x76325410]  ;;  %v1980_v12 = vunpack.c.l.b16 %v4938_v2  ;;  %v1994_v52 = vsel %vm800_vm5, %v1993_v55, %v1992_v51  ;;  %v2009_v55 = vrot.slane %v1984_v45, 4  ;;  %v2013_v51 = vrot.slane %v1986_v21, 2 }
 0x37b   : > { %v2516_v17 = vsel %vm1051_vm11, %v6344_v23, -inf  ;;  %v1996_v29 = vsel %vm803_vm7, %v1995_v35, %v1994_v52  ;;  %v1089_v52 = vsel %vm1051_vm11, %v6240_v4, 0.0  ;;  %v6483_v45 = vld.sshfl [vmem:[%s5603_s12 + $0x6] sm:$0x2 pattern:$0x76325410] }
 0x37c   : > { %v2705_v21 = vunpack.c.l.b16 %v6483_v45 }
 0x37e   : > { %2517 = vmax.xlane.f32.xlu0 %v2516_v17  ;;  %v3232_v5 = vpop.f32.mrb[12].mxu1 }
 0x37f   : > { %v6350_v6 = vmul.f32 0.35355338, %v3232_v5  ;;  %v5141_v14 = vpop.f32.mrb[13].mxu1 }
 0x380   : > { %v3235_v58 = vpop.f32.mrb[14].mxu1  ;;  %v4940_v5 = vld.sshfl [vmem:[%s5603_s12 + $0x16] sm:$0x1 pattern:$0x76325410]  ;;  %v1978_v14 = vunpack.c.l.b16 %v4936_v30 }
 0x381   : > { %v6352_v16 = vmul.f32 0.35355338, %v3235_v58  ;;  %v5142_v18 = vpop.f32.mrb[15].mxu1  ;;  %v3244_v62 = vsel %vm1051_vm11, %v6350_v6, -inf  ;;  %v1981_v58 = vunpack.c.l.b16 %v4939_v1 }
 0x382   : > { %3245 = vmax.xlane.f32.xlu0 %v3244_v62  ;;  %v2001_v18 = vrot.slane %v1979_v63, 1  ;;  %v1999_v49 = vrot.slane %v1978_v14, 2 }
 0x383   : > { %v3247_v32 = vsel %vm1051_vm11, %v6352_v16, -inf }
 0x384   : > { %v2002_v22 = vsel %vm791_vm2, %v1980_v12, %v2001_v18  ;;  %v7196_v18 = vsub.f32 %v5869_v27, %v5872_v36 }
 0x386   : > { %3248 = vmax.xlane.f32.xlu0 %v3247_v32  ;;  %v4941_v32 = vld.sshfl [vmem:[%s5603_s12 + $0x18] sm:$0x1 pattern:$0x76325410] }
 0x387   : > { %v1983_v24 = vunpack.c.l.b16 %v4941_v32  ;;  %v1062_v32 = vmul.f32 1.442695, %v7196_v18 }
 0x389   : > { %v2007_v15 = vrot.slane %v1983_v24, 5 }
 0x3ff   : > { %v1784_v53 = vpop.xlane.xlu0 %1783 }
 0x400   : > { %v6363_v60 = vmax.f32 %v6358_v13, %v1784_v53  ;;  %v1982_v53 = vunpack.c.l.b16 %v4940_v5  ;;  %v7195_v5 = vsub.f32 %v5874_v42, %v5885_v38 }
 0x401   : > { %v1787_v3 = vpop.xlane.xlu1 %1786 }
 0x402   : > { %2065 = vst.msk [vmem:[#allocation2 + $0x10] sm:$0xff] %vm1094_vm12, %v6363_v60  ;;  %v6368_v44 = vmax.f32 %v6360_v43, %v1787_v3  ;;  %1798 = vperm.xlu0 %5248, %v6363_v60   ;;  %v1997_v3 = vrot.slane %v1977_v20, 3  ;;  %v2005_v57 = vrot.slane %v1982_v53, 6  ;;  %v1064_v14 = vmul.f32 1.442695, %v7195_v5 }
 0x403   : > { %v1790_v53 = vsub.f32 %v6358_v13, %v6363_v60 }
 0x404   : > { %2066 = vst.msk [vmem:[#allocation2 + $0x18] sm:$0xff] %vm1094_vm12, %v6368_v44  ;;  %1803 = vperm.xlu1 %5247, %v6368_v44   ;;  %v1998_v34 = vsel %vm806_vm8, %v1997_v3, %v1996_v29  ;;  %5253 = vpow2.f32 %v1064_v14 }
 0x405   : > { %v2000_v2 = vsel %vm809_vm9, %v1999_v49, %v1998_v34  ;;  %5255 = vpow2.f32 %v1062_v32  ;;  %v1792_v3 = vmul.f32 1.442695, %v1790_v53  ;;  %v4991_v34 = vld.sshfl [vmem:[%s5603_s12 + $0x18] sm:$0x2 pattern:$0x76325410] }
 0x406   : > { %v6513_v32 = vld.sshfl [vmem:[%s5603_s12 + $0x1c] sm:$0x2 pattern:$0x76325410] }
 0x407   : > { %v2515_v0 = vpop.xlane.xlu0 %2514 }
 0x408   : > { %v6381_v46 = vmax.f32 %v6375_v7, %v2515_v0  ;;  %v2003_v0 = vrot.slane %v1981_v58, 7  ;;  %v1791_v58 = vsub.f32 %v6360_v43, %v6368_v44 }
 0x40a   : > { %2796 = vst.msk [vmem:[#allocation2 + $0x20] sm:$0xff] %vm1094_vm12, %v6381_v46  ;;  %2529 = vperm.xlu1 %5247, %v6381_v46   ;;  %v2004_v31 = vsel %vm794_vm3, %v2003_v0, %v2002_v22  ;;  %v1794_v4 = vmul.f32 1.442695, %v1791_v58  ;;  %v2521_v42 = vsub.f32 %v6375_v7, %v6381_v46  ;;  %v2711_v0 = vunpack.c.l.b16 %v4988_v11 }
 0x40b   : > { %v2518_v56 = vpop.xlane.xlu0 %2517  ;;  %v4979_v46 = vld.sshfl [vmem:[%s5603_s12] sm:$0x2 pattern:$0x76325410] }
 0x40c   : > { %v6395_v48 = vmax.f32 %v6384_v47, %v2518_v56  ;;  %v2006_v56 = vsel %vm797_vm4, %v2005_v57, %v2004_v31  ;;  %5257 = vpow2.f32 %v1794_v4  ;;  %v2523_v43 = vmul.f32 1.442695, %v2521_v42  ;;  %v6486_v57 = vld.sshfl [vmem:[%s5603_s12 + $0x16] sm:$0x2 pattern:$0x76325410] }
 0x40d   : > { %v2008_v30 = vsel %vm800_vm5, %v2007_v15, %v2006_v56  ;;  %5259 = vpow2.f32 %v1792_v3  ;;  %v2702_v24 = vunpack.c.l.b16 %v4979_v46  ;;  %v2733_v31 = vrot.slane %v2711_v0, 1  ;;  %v6490_v15 = vld.sshfl [vmem:[%s5603_s12 + $0x8] sm:$0x2 pattern:$0x76325410] }
 0x40e   : > { %2797 = vst.msk [vmem:[#allocation2 + $0x28] sm:$0xff] %vm1094_vm12, %v6395_v48  ;;  %2534 = vperm.xlu1 %5247, %v6395_v48   ;;  %v2010_v63 = vsel %vm803_vm7, %v2009_v55, %v2008_v30  ;;  %v6459_v27 = vpop.eup %5253  ;;  %v2704_v56 = vunpack.c.l.b16 %v4981_v50  ;;  %v2713_v30 = vunpack.c.l.b16 %v6486_v57  ;;  %v6496_v55 = vld.sshfl [vmem:[%s5603_s12 + $0xa] sm:$0x2 pattern:$0x76325410] }
 0x40f   : > { %v3246_v17 = vpop.xlane.xlu0 %3245  ;;  %v2012_v35 = vsel %vm806_vm8, %v2011_v59, %v2010_v63  ;;  %v6462_v36 = vpop.eup %5255  ;;  %v2712_v59 = vunpack.c.l.b16 %v4989_v54  ;;  %v2706_v63 = vunpack.c.l.b16 %v6490_v15  ;;  %v3449_v3 = vrot.slane %v2702_v24, 3 }
 0x410   : > { %v6409_v62 = vmax.f32 %v6399_v33, %v3246_v17  ;;  %v2014_v1 = vsel %vm809_vm9, %v2013_v51, %v2012_v35  ;;  %v1086_v17 = vsel %vm1051_vm11, %v6234_v41, 0.0  ;;  %v2522_v41 = vsub.f32 %v6384_v47, %v6395_v48  ;;  %v4980_v47 = vld.sshfl [vmem:[%s5603_s12 + $0x2] sm:$0x2 pattern:$0x76325410] }
 0x411   : > { %v2015_v12 = vpack.c.b16 %v2014_v1, %v2000_v2  ;;  %v4987_v48 = vld.sshfl [vmem:[%s5603_s12 + $0x10] sm:$0x2 pattern:$0x76325410]  ;;  %v2703_v29 = vunpack.c.l.b16 %v4980_v47  ;;  %v2736_v14 = vrot.slane %v2713_v30, 7 }
 0x412   : > { %v3252_v25 = vsub.f32 %v6399_v33, %v6409_v62  ;;  %3527 = vst.msk [vmem:[#allocation2 + $0x30] sm:$0xff] %vm1094_vm12, %v6409_v62  ;;  %3260 = vperm.xlu1 %5247, %v6409_v62   ;;  %v2525_v38 = vmul.f32 1.442695, %v2522_v41  ;;  %v2710_v22 = vunpack.c.l.b16 %v4987_v48  ;;  %v2724_v41 = vrot.slane %v2706_v63, 6 }
 0x413   : > { %v3249_v26 = vpop.xlane.xlu0 %3248  ;;  %5120 = vmatpush3.bf16.msra.mxu0 %v2015_v12  ;;  %v2719_v8 = vrot.slane %v2703_v29, 1  ;;  %v6500_v2 = vld.sshfl [vmem:[%s5603_s12 + $0xc] sm:$0x2 pattern:$0x76325410]  ;;  %v2714_v12 = vunpack.c.l.b16 %v4991_v34  ;;  %v3450_v47 = vrot.slane %v2703_v29, 2 }
 0x414   : > { %v6426_v39 = vmax.f32 %v6412_v19, %v3249_v26  ;;  %5131 = vmatprep.subr.bf16.mxu0 %v7191_v40  ;;  %5261 = vpow2.f32 %v2525_v38  ;;  %v2718_v26 = vrot.slane %v2702_v24, 2  ;;  %v2732_v49 = vrot.slane %v2710_v22, 2  ;;  %v4992_v1 = vld.sshfl [vmem:[%s5603_s12 + $0x1a] sm:$0x2 pattern:$0x76325410] }
 0x415   : > { %5263 = vpow2.f32 %v2523_v43  ;;  %v2708_v53 = vunpack.c.l.b16 %v6500_v2  ;;  %v2715_v4 = vunpack.c.l.b16 %v4992_v1  ;;  %v6518_v38 = vld.sshfl [vmem:[%s5603_s12 + $0xe] sm:$0x2 pattern:$0x76325410]  ;;  %v2738_v46 = vrot.slane %v2714_v12, 6 }
 0x416   : > { %v3253_v20 = vsub.f32 %v6412_v19, %v6426_v39  ;;  %3528 = vst.msk [vmem:[#allocation2 + $0x38] sm:$0xff] %vm1094_vm12, %v6426_v39  ;;  %3265 = vperm.xlu0 %5248, %v6426_v39   ;;  %v6464_v13 = vpop.eup %5257  ;;  %v2720_v51 = vsel %vm791_vm2, %v2719_v8, %v2718_v26  ;;  %v2734_v35 = vsel %vm791_vm2, %v2733_v31, %v2732_v49  ;;  %v3463_v26 = vrot.slane %v2710_v22, 3  ;;  %v4994_v31 = vld.sshfl [vmem:[%s5603_s12 + $0x1e] sm:$0x2 pattern:$0x76325410] }
 0x417   : > { %v6468_v60 = vpop.eup %5259  ;;  %v2721_v5 = vsel %vm794_vm3, %v2704_v56, %v2720_v51  ;;  %v2735_v58 = vsel %vm794_vm3, %v2712_v59, %v2734_v35  ;;  %v3464_v8 = vrot.slane %v2711_v0, 2  ;;  %v2716_v24 = vunpack.c.l.b16 %v6513_v32 }
 0x418   : > { %v2737_v50 = vsel %vm797_vm4, %v2736_v14, %v2735_v58  ;;  %v2740_v34 = vrot.slane %v2715_v4, 5  ;;  %v3466_v2 = vrot.slane %v2712_v59, 1  ;;  %v2717_v35 = vunpack.c.l.b16 %v4994_v31 }
 0x419   : > { %v2739_v51 = vsel %vm800_vm5, %v2738_v46, %v2737_v50  ;;  %v2728_v22 = vrot.slane %v2708_v53, 4  ;;  %v3451_v0 = vsel %vm791_vm2, %v3450_v47, %v3449_v3 }
 0x41a   : > { %v2741_v14 = vsel %vm803_vm7, %v2740_v34, %v2739_v51 }
 0x41e   : > { %v6470_v44 = vpop.eup %5261 }
 0x41f   : > { %v6474_v7 = vpop.eup %5263 }
 0x435   : > { %1090 = vadd.xlane.f32.xlu0 %v1089_v52  ;;  %v2722_v52 = vrot.slane %v2705_v21, 7 }
 0x436   : > { %1087 = vadd.xlane.f32.xlu1 %v1086_v17  ;;  %v2707_v17 = vunpack.c.l.b16 %v6496_v55  ;;  %v3452_v55 = vrot.slane %v2704_v56, 1 }
 0x437   : > { %v2723_v43 = vsel %vm797_vm4, %v2722_v52, %v2721_v5  ;;  %v2742_v52 = vrot.slane %v2716_v24, 4 }
 0x438   : > { %v2726_v11 = vrot.slane %v2707_v17, 5  ;;  %v2725_v15 = vsel %vm800_vm5, %v2724_v41, %v2723_v43  ;;  %v3453_v58 = vsel %vm794_vm3, %v3452_v55, %v3451_v0  ;;  %v2744_v41 = vrot.slane %v2717_v35, 3 }
 0x439   : > { %v3469_v43 = vrot.slane %v2714_v12, 7  ;;  %v3454_v47 = vsel %vm797_vm4, %v2705_v21, %v3453_v58 }
 0x43a   : > { %v2727_v1 = vsel %vm803_vm7, %v2726_v11, %v2725_v15  ;;  %v3473_v15 = vrot.slane %v2716_v24, 5 }
 0x43b   : > { %v2729_v59 = vsel %vm806_vm8, %v2728_v22, %v2727_v1 }
 0x447   : > { %1106 = vperm.xlu1 %5247, %v6459_v27  }
 0x44b   : > { %1101 = vperm.xlu0 %5248, %v6462_v36   ;;  %1837 = vperm.xlu1 %5247, %v6464_v13  }
 0x44f   : > { %1832 = vperm.xlu0 %5248, %v6468_v60   ;;  %2568 = vperm.xlu1 %5247, %v6470_v44  }
 0x453   : > { %2563 = vperm.xlu0 %5248, %v6474_v7  }
 0x481   : > { %v1799_v18 = vpop.permute.xlu0 %1798 }
 0x482   : > { %v1806_v42 = vsub.f32 %v6334_v37, %v1799_v18  ;;  %v2709_v37 = vunpack.c.l.b16 %v6518_v38  ;;  %v3455_v38 = vrot.slane %v2706_v63, 7 }
 0x483   : > { %v1804_v48 = vpop.permute.xlu1 %1803 }
 0x484   : > { %v1808_v54 = vmul.f32 1.442695, %v1806_v42  ;;  %v1807_v49 = vsub.f32 %v6336_v10, %v1804_v48  ;;  %v3465_v10 = vsel %vm791_vm2, %v3464_v8, %v3463_v26  ;;  %v2730_v32 = vrot.slane %v2709_v37, 3  ;;  %vm6752_vm2 = vmand (!%p5046_p3), %vm3762_vm0, %vm3763_vm1 }
 0x485   : > { %v3467_v18 = vsel %vm794_vm3, %v3466_v2, %v3465_v10  ;;  %v2743_v42 = vsel %vm806_vm8, %v2742_v52, %v2741_v14  ;;  %v3457_v26 = vrot.slane %v2707_v17, 6  ;;  %v3471_v8 = vrot.slane %v2715_v4, 6 }
 0x486   : > { %5265 = vpow2.f32 %v1808_v54  ;;  %v1810_v29 = vmul.f32 1.442695, %v1807_v49  ;;  %v2731_v11 = vsel %vm809_vm9, %v2730_v32, %v2729_v59  ;;  %v2745_v50 = vsel %vm809_vm9, %v2744_v41, %v2743_v42 }
 0x487   : > { %v3456_v54 = vsel %vm800_vm5, %v3455_v38, %v3454_v47  ;;  %v3459_v49 = vrot.slane %v2708_v53, 5  ;;  %v2746_v31 = vpack.c.b16 %v2745_v50, %v2731_v11  ;;  %v3461_v53 = vrot.slane %v2709_v37, 4  ;;  %v1083_v38 = vld [vmem:[#allocation3 + $0x8] sm:$0xff] }
 0x488   : > { %5267 = vpow2.f32 %v1810_v29  ;;  %v3458_v34 = vsel %vm803_vm7, %v3457_v26, %v3456_v54  ;;  %v3475_v2 = vrot.slane %v2717_v35, 4  ;;  %v3256_v59 = vmul.f32 1.442695, %v3253_v20 }
 0x489   : > { %v2530_v5 = vpop.permute.xlu1 %2529  ;;  %v3460_v24 = vsel %vm806_vm8, %v3459_v49, %v3458_v34  ;;  %v1085_v19 = vmul.f32 %v6459_v27, %v1083_v38  ;;  %v3290_v38 = vld [vmem:[#allocation4 + $0x30] sm:$0xff]  ;;  %vm4042_vm3 = vsmask.f32 (!%p5046_p3), 7938 }
 0x48a   : > { %v2537_v56 = vsub.f32 %v6342_v61, %v2530_v5  ;;  %v3468_v61 = vsel %vm797_vm4, %v2713_v30, %v3467_v18  ;;  %v3462_v37 = vsel %vm809_vm9, %v3461_v53, %v3460_v24  ;;  %v3276_v53 = vld [vmem:[#allocation3 + $0x38] sm:$0xff]  ;;  %vm6872_vm4 = vmand (!%p5046_p3), %vm3762_vm0, %vm4042_vm3 }
 0x48b   : > { %v3470_v45 = vsel %vm800_vm5, %v3469_v43, %v3468_v61  ;;  %v1082_v43 = vld [vmem:[#allocation3] sm:$0xff]  ;;  %vm4601_vm5 = vsmask.f32 (!%p5046_p3), 7942 }
 0x48c   : > { %v2539_v3 = vmul.f32 1.442695, %v2537_v56  ;;  %v3472_v55 = vsel %vm803_vm7, %v3471_v8, %v3470_v45  ;;  %v1084_v20 = vmul.f32 %v6462_v36, %v1082_v43  ;;  %v1814_v45 = vld [vmem:[#allocation3 + $0x18] sm:$0xff] }
 0x48d   : > { %v2535_v46 = vpop.permute.xlu1 %2534  ;;  %v3474_v22 = vsel %vm806_vm8, %v3473_v15, %v3472_v55  ;;  %v3275_v55 = vld [vmem:[#allocation3 + $0x30] sm:$0xff] }
 0x48e   : > { %5269 = vpow2.f32 %v2539_v3  ;;  %v2538_v48 = vsub.f32 %v6344_v23, %v2535_v46  ;;  %v3476_v35 = vsel %vm809_vm9, %v3475_v2, %v3474_v22  ;;  %v3254_v3 = vmul.f32 1.442695, %v3252_v25  ;;  %v1097_v25 = vld [vmem:[#allocation4] sm:$0xff]  ;;  %v1828_v22 = vld [vmem:[#allocation4 + $0x10] sm:$0xff] }
 0x48f   : > { %v3477_v52 = vpack.c.b16 %v3476_v35, %v3462_v37 }
 0x490   : > { %v5266_v63 = vpop.eup %5265  ;;  %v2541_v12 = vmul.f32 1.442695, %v2538_v48  ;;  %v1098_v48 = vld [vmem:[#allocation4 + $0x8] sm:$0xff] }
 0x491   : > { %v3261_v21 = vpop.permute.xlu1 %3260  ;;  %v1817_v57 = vsel %vm1051_vm11, %v5266_v63, 0.0 }
 0x492   : > { %v5268_v30 = vpop.eup %5267  ;;  %5271 = vpow2.f32 %v2541_v12  ;;  %v3268_v23 = vsub.f32 %v6350_v6, %v3261_v21  ;;  %1818 = vadd.xlane.f32.xlu1 %v1817_v57  ;;  %v1813_v12 = vld [vmem:[#allocation3 + $0x10] sm:$0xff] }
 0x493   : > { %v1820_v17 = vsel %vm1051_vm11, %v5268_v30, 0.0  ;;  %v1842_v4 = vpack.c.bf16 %v5268_v30, %v5266_v63  ;;  %v1815_v21 = vmul.f32 %v6468_v60, %v1813_v12 }
 0x494   : > { %v3270_v29 = vmul.f32 1.442695, %v3268_v23  ;;  %1821 = vadd.xlane.f32.xlu0 %v1820_v17  ;;  %v2545_v17 = vld [vmem:[#allocation3 + $0x28] sm:$0xff] }
 0x495   : > { %5122 = vmatmul.mubr.msk.bf16.vlgmr.msra.gmra.mrb[4].mxu0 %vm1051_vm11, %v1842_v4  ;;  %v3266_v51 = vpop.permute.xlu0 %3265  ;;  %v2547_v60 = vmul.f32 %v6470_v44, %v2545_v17  ;;  %v3557_v17 = vlaneseq (!%p5046_p3) }
 0x496   : > { %5273 = vpow2.f32 %v3270_v29  ;;  %v3269_v6 = vsub.f32 %v6352_v16, %v3266_v51  ;;  %5132 = vmatpush3.bf16.msra.mxu0 %v2746_v31  ;;  %5133 = vmatprep.mubr.msk.bf16.mxu0 %vm5390_vm6, %v7191_v40  ;;  %v2544_v31 = vld [vmem:[#allocation3 + $0x20] sm:$0xff] }
 0x497   : > { %5143 = vmatprep.subr.bf16.mxu0 %v7191_v40 }
 0x498   : > { %v5270_v0 = vpop.eup %5269  ;;  %v3272_v10 = vmul.f32 1.442695, %v3269_v6 }
 0x499   : > { %v2548_v1 = vsel %vm1051_vm11, %v5270_v0, 0.0 }
 0x49a   : > { %5275 = vpow2.f32 %v3272_v10  ;;  %2549 = vadd.xlane.f32.xlu1 %v2548_v1 }
 0x49b   : > { %5277 = vpow2.f32 %v3256_v59 }
 0x49c   : > { %v5272_v16 = vpop.eup %5271  ;;  %5279 = vpow2.f32 %v3254_v3 }
 0x49d   : > { %v2551_v5 = vsel %vm1051_vm11, %v5272_v16, 0.0  ;;  %v2573_v14 = vpack.c.bf16 %v5272_v16, %v5270_v0  ;;  %v1829_v0 = vld [vmem:[#allocation4 + $0x18] sm:$0xff] }
 0x49e   : > { %2552 = vadd.xlane.f32.xlu0 %v2551_v5 }
 0x49f   : > { %5134 = vmatmul.mubr.msk.bf16.vlgmr.msra.gmra.mrb[8].mxu0 %vm1051_vm11, %v2573_v14  ;;  %v2559_v14 = vld [vmem:[#allocation4 + $0x20] sm:$0xff] }
 0x4a0   : > { %v5274_v56 = vpop.eup %5273  ;;  %5144 = vmatpush3.bf16.msra.mxu0 %v3477_v52  ;;  %5145 = vmatprep.mubr.msk.bf16.mxu0 %vm5390_vm6, %v7191_v40  ;;  %vm6986_vm6 = vmand (!%p5046_p3), %vm4321_vm13, %vm4601_vm5 }
 0x4a1   : > { %v3279_v58 = vsel %vm1051_vm11, %v5274_v56, 0.0 }
 0x4a2   : > { %3280 = vadd.xlane.f32.xlu1 %v3279_v58 }
 0x4a4   : > { %v5276_v18 = vpop.eup %5275 }
 0x4a5   : > { %v3282_v32 = vsel %vm1051_vm11, %v5276_v18, 0.0  ;;  %v3304_v41 = vpack.c.bf16 %v5276_v18, %v5274_v56  ;;  %v5278_v40 = vpop.eup %5277  ;;  %v2560_v56 = vld [vmem:[#allocation4 + $0x28] sm:$0xff] }
 0x4a6   : > { %3283 = vadd.xlane.f32.xlu0 %v3282_v32  ;;  %v5280_v42 = vpop.eup %5279  ;;  %v3278_v6 = vmul.f32 %v5278_v40, %v3276_v53 }
 0x4a7   : > { %5146 = vmatmul.mubr.msk.bf16.vlgmr.msra.gmra.mrb[12].mxu0 %vm1051_vm11, %v3304_v41 }
 0x4b3   : > { %3299 = vperm.xlu1 %5247, %v5278_v40  }
 0x4bc   : > { %3294 = vperm.xlu0 %5248, %v5280_v42  }
 0x4c2   : > { %v1091_v39 = vpop.xlane.xlu0 %1090 }
 0x4c3   : > { %v1093_v46 = vadd.f32 %v1091_v39, %v1085_v19  ;;  %v1088_v47 = vpop.xlane.xlu1 %1087  ;;  %v3291_v19 = vld [vmem:[#allocation4 + $0x38] sm:$0xff] }
 0x4c4   : > { %v1092_v61 = vadd.f32 %v1088_v47, %v1084_v20 }
 0x4c5   : > { %1096 = vst.msk [vmem:[#allocation3 + $0x8] sm:$0xff] %vm1094_vm12, %v1093_v46 }
 0x4c6   : > { %1095 = vst.msk [vmem:[#allocation3] sm:$0xff] %vm1094_vm12, %v1092_v61 }
 0x4c7   : > { %v1107_v33 = vpop.permute.xlu1 %1106 }
 0x4c8   : > { %v1110_v62 = vmul.f32 %v1107_v33, %v1098_v48 }
 0x4ca   : > { %v1331_v11 = vadd.f32 %v6332_v9, %v1110_v62  ;;  %v1102_v50 = vpop.permute.xlu0 %1101  ;;  %v1816_v9 = vmul.f32 %v6464_v13, %v1814_v45  ;;  %v3277_v13 = vmul.f32 %v5280_v42, %v3275_v55  ;;  %v3558_v55 = vshrl.u32 (!%p5046_p3), %v3557_v17, 7 }
 0x4cb   : > { %v1109_v26 = vmul.f32 %v1102_v50, %v1097_v25  ;;  %v1838_v36 = vpop.permute.xlu1 %1837 }
 0x4cc   : > { %1333 = vst.msk [vmem:[#allocation4 + $0x8] sm:$0xff] %vm999_vm10, %v1331_v11  ;;  %v1841_v1 = vmul.f32 %v1838_v36, %v1829_v0  ;;  %v3536_v36 = vld [vmem:[#allocation3 + $0x8] sm:$0xff] (!%p5046_p3) }
 0x4cd   : > { %v1330_v27 = vadd.f32 %v6330_v28, %v1109_v26  ;;  %v2546_v28 = vmul.f32 %v6474_v7, %v2544_v31  ;;  %v3535_v50 = vld [vmem:[#allocation3] sm:$0xff] (!%p5046_p3) }
 0x4ce   : > { %v1833_v8 = vpop.permute.xlu0 %1832 }
 0x4cf   : > { %1332 = vst.msk [vmem:[#allocation4] sm:$0xff] %vm999_vm10, %v1330_v27  ;;  %v2569_v63 = vpop.permute.xlu1 %2568  ;;  %v1840_v10 = vmul.f32 %v1833_v8, %v1828_v22  ;;  %v5392_v27 = vmov (!%p5046_p3), 0  }
 0x4d0   : > { %v2572_v59 = vmul.f32 %v2569_v63, %v2560_v56  ;;  %5282 = vset.pattern.permute.xlu1 (!%p5046_p3), %v5392_v27  ;;  %5281 = vset.pattern.permute.xlu0 (!%p5046_p3), %v5392_v27 }
 0x4d2   : > { %v2564_v54 = vpop.permute.xlu0 %2563 }
 0x4d3   : > { %v2571_v58 = vmul.f32 %v2564_v54, %v2559_v14 }
 0x51f   : > { %v1819_v57 = vpop.xlane.xlu1 %1818 }
 0x520   : > { %v1823_v49 = vadd.f32 %v1819_v57, %v1815_v21 }
 0x521   : > { %v1822_v30 = vpop.xlane.xlu0 %1821 }
 0x522   : > { %1825 = vst.msk [vmem:[#allocation3 + $0x10] sm:$0xff] %vm1094_vm12, %v1823_v49  ;;  %v1824_v23 = vadd.f32 %v1822_v30, %v1816_v9 }
 0x524   : > { %1826 = vst.msk [vmem:[#allocation3 + $0x18] sm:$0xff] %vm1094_vm12, %v1824_v23 }
 0x527   : > { %v2550_v15 = vpop.xlane.xlu1 %2549 }
 0x528   : > { %v2554_v4 = vadd.f32 %v2550_v15, %v2546_v28  ;;  %v5393_v28 = vmov (!%p5046_p3), 1966171168  }
 0x529   : > { %v3815_v63 = vld [vmem:[#allocation3 + $0x10] sm:$0xff] (!%p5046_p3)  ;;  %v3555_v15 = vunpack.c.l.s4 (!%p5046_p3), %v5393_v28 }
 0x52a   : > { %2556 = vst.msk [vmem:[#allocation3 + $0x20] sm:$0xff] %vm1094_vm12, %v2554_v4 }
 0x52b   : > { %v2553_v34 = vpop.xlane.xlu0 %2552  ;;  %v3816_v8 = vld [vmem:[#allocation3 + $0x18] sm:$0xff] (!%p5046_p3) }
 0x52c   : > { %v2555_v29 = vadd.f32 %v2553_v34, %v2547_v60  ;;  %v3556_v34 = vunpack.c.0.s8 (!%p5046_p3), %v3555_v15 }
 0x52e   : > { %2557 = vst.msk [vmem:[#allocation3 + $0x28] sm:$0xff] %vm1094_vm12, %v2555_v29  ;;  %v5394_v29 = vmov (!%p5046_p3), 857870592   ;;  %v6601_v22 = vsub.s32 (!%p5046_p3), %v3556_v34, %v3558_v55 }
 0x52f   : > { %v3281_v51 = vpop.xlane.xlu1 %3280 }
 0x530   : > { %v3285_v2 = vadd.f32 %v3281_v51, %v3277_v13  ;;  %v3635_v13 = vunpack.c.l.s4 (!%p5046_p3), %v5394_v29 }
 0x531   : > { %v4094_v11 = vld [vmem:[#allocation3 + $0x20] sm:$0xff] (!%p5046_p3) }
 0x532   : > { %3287 = vst.msk [vmem:[#allocation3 + $0x30] sm:$0xff] %vm1094_vm12, %v3285_v2  ;;  %5283 = vrcp.f32 (!%p5046_p3), %v4094_v11  ;;  %v3533_v2 = vld [vmem:[#allocation4] sm:$0xff] (!%p5046_p3)  ;;  %v3636_v0 = vunpack.c.0.s8 (!%p5046_p3), %v3635_v13 }
 0x533   : > { %v3284_v7 = vpop.xlane.xlu0 %3283  ;;  %v3300_v39 = vpop.permute.xlu1 %3299  ;;  %5285 = vrcp.f32 (!%p5046_p3), %v3535_v50 }
 0x534   : > { %v3286_v24 = vadd.f32 %v3284_v7, %v3278_v6  ;;  %v3303_v47 = vmul.f32 %v3300_v39, %v3291_v19  ;;  %v3534_v6 = vld [vmem:[#allocation4 + $0x8] sm:$0xff] (!%p5046_p3) }
 0x535   : > { %v4095_v26 = vld [vmem:[#allocation3 + $0x28] sm:$0xff] (!%p5046_p3) }
 0x536   : > { %3288 = vst.msk [vmem:[#allocation3 + $0x38] sm:$0xff] %vm1094_vm12, %v3286_v24  ;;  %5287 = vrcp.f32 (!%p5046_p3), %v4095_v26 }
 0x537   : > { %5289 = vrcp.f32 (!%p5046_p3), %v3536_v36 }
 0x538   : > { %5291 = vrcp.f32 (!%p5046_p3), %v3816_v8 }
 0x539   : > { %5293 = vrcp.f32 (!%p5046_p3), %v3815_v63  ;;  %v4374_v54 = vld [vmem:[#allocation3 + $0x30] sm:$0xff] (!%p5046_p3) }
 0x53b   : > { %v3295_v43 = vpop.permute.xlu0 %3294 }
 0x53c   : > { %v3302_v20 = vmul.f32 %v3295_v43, %v3290_v38  ;;  %v5284_v45 = vpop.eup (!%p5046_p3), %5283 }
 0x53d   : > { %v4375_v12 = vld [vmem:[#allocation3 + $0x38] sm:$0xff] (!%p5046_p3)  ;;  %v5286_v21 = vpop.eup (!%p5046_p3), %5285  ;;  %4100 = vperm.xlu1 (!%p5046_p3), %5282, %v5284_v45  }
 0x53e   : > { %5295 = vrcp.f32 (!%p5046_p3), %v4375_v12  ;;  %3541 = vperm.xlu0 (!%p5046_p3), %5281, %v5286_v21  }
 0x53f   : > { %5297 = vrcp.f32 (!%p5046_p3), %v4374_v54 }
 0x540   : > { %v5288_v57 = vpop.eup (!%p5046_p3), %5287 }
 0x541   : > { %v5290_v49 = vpop.eup (!%p5046_p3), %5289  ;;  %4105 = vperm.xlu1 (!%p5046_p3), %5282, %v5288_v57  }
 0x542   : > { %v5292_v9 = vpop.eup (!%p5046_p3), %5291  ;;  %3546 = vperm.xlu0 (!%p5046_p3), %5281, %v5290_v49  }
 0x543   : > { %v5294_v30 = vpop.eup (!%p5046_p3), %5293 }
 0x545   : > { %3826 = vperm.xlu1 (!%p5046_p3), %5282, %v5292_v9  }
 0x546   : > { %3821 = vperm.xlu0 (!%p5046_p3), %5281, %v5294_v30  }
 0x548   : > { %v5296_v23 = vpop.eup (!%p5046_p3), %5295 }
 0x549   : > { %v5298_v31 = vpop.eup (!%p5046_p3), %5297  ;;  %4385 = vperm.xlu1 (!%p5046_p3), %5282, %v5296_v23  }
 0x54a   : > { %4380 = vperm.xlu0 (!%p5046_p3), %5281, %v5298_v31  }
 0x568   : > { %v2054_v44 = vpop.f32.mrb[4].mxu0 }
 0x569   : > { %v2061_v37 = vadd.f32 %v2054_v44, %v1840_v10  ;;  %v5123_v35 = vpop.f32.mrb[5].mxu0 }
 0x56a   : > { %v2057_v16 = vpop.f32.mrb[6].mxu0 }
 0x56b   : > { %2063 = vst.msk [vmem:[#allocation4 + $0x10] sm:$0xff] %vm999_vm10, %v2061_v37  ;;  %v2062_v52 = vadd.f32 %v2057_v16, %v1841_v1  ;;  %v5124_v5 = vpop.f32.mrb[7].mxu0 }
 0x56d   : > { %2064 = vst.msk [vmem:[#allocation4 + $0x18] sm:$0xff] %vm999_vm10, %v2062_v52 }
 0x572   : > { %v2785_v18 = vpop.f32.mrb[8].mxu0  ;;  %v3813_v5 = vld [vmem:[#allocation4 + $0x10] sm:$0xff] (!%p5046_p3) }
 0x573   : > { %v2792_v32 = vadd.f32 %v2785_v18, %v2571_v58  ;;  %v5135_v41 = vpop.f32.mrb[9].mxu0  ;;  %v6603_v18 = vsub.s32 (!%p5046_p3), %v3636_v0, %v3558_v55  ;;  %v4330_v0 = vld [vmem:[%s5597_s6 + $0x4] sm:$0x2] (!%p5046_p3) }
 0x574   : > { %v2788_v3 = vpop.f32.mrb[10].mxu0  ;;  %v3814_v52 = vld [vmem:[#allocation4 + $0x18] sm:$0xff] (!%p5046_p3) }
 0x575   : > { %2794 = vst.msk [vmem:[#allocation4 + $0x20] sm:$0xff] %vm999_vm10, %v2792_v32  ;;  %v2793_v40 = vadd.f32 %v2788_v3, %v2572_v59  ;;  %v5136_v42 = vpop.f32.mrb[11].mxu0 }
 0x577   : > { %2795 = vst.msk [vmem:[#allocation4 + $0x28] sm:$0xff] %vm999_vm10, %v2793_v40 }
 0x579   : > { %3532 = sbr.rel (%p5046_p3) target bundleno = 1557 (0x615), region = 163 }
 0x57a   : > { %v3516_v46 = vpop.f32.mrb[12].mxu0 }
 0x57b   : > { %v3523_v61 = vadd.f32 %v3516_v46, %v3302_v20  ;;  %v5147_v48 = vpop.f32.mrb[13].mxu0 }
 0x57c   : > { %v3519_v33 = vpop.f32.mrb[14].mxu0  ;;  %v4092_v51 = vld [vmem:[#allocation4 + $0x20] sm:$0xff] (!%p5046_p3) }
 0x57d   : > { %3525 = vst.msk [vmem:[#allocation4 + $0x30] sm:$0xff] %vm999_vm10, %v3523_v61  ;;  %v3524_v62 = vadd.f32 %v3519_v33, %v3303_v47  ;;  %v5148_v25 = vpop.f32.mrb[15].mxu0 }
 0x57e   : > { %v4093_v53 = vld [vmem:[#allocation4 + $0x28] sm:$0xff] (!%p5046_p3) }
 0x57f   : > { %3526 = vst.msk [vmem:[#allocation4 + $0x38] sm:$0xff] %vm999_vm10, %v3524_v62 }
 0x5bc   : > { %v4101_v4 = vpop.permute.xlu1 %4100 }
 0x5bd   : > { %v3542_v60 = vpop.permute.xlu0 %3541  ;;  %v4108_v24 = vmul.f32 %v4101_v4, %v4092_v51  ;;  %v4324_v51 = vld [vmem:[%s5597_s6] sm:$0x2] }
 0x5be   : > { %v3549_v1 = vmul.f32 %v3542_v60, %v3533_v2 }
 0x5c0   : > { %v4106_v7 = vpop.permute.xlu1 %4105 }
 0x5c1   : > { %v4109_v10 = vmul.f32 %v4106_v7, %v4093_v53  ;;  %v3547_v44 = vpop.permute.xlu0 %3546  ;;  %v4327_v53 = vld [vmem:[%s5597_s6 + $0x2] sm:$0x2] }
 0x5c2   : > { %v3550_v37 = vmul.f32 %v3547_v44, %v3534_v6  ;;  %v4336_v44 = vld [vmem:[%s5597_s6 + $0x8] sm:$0x2] }
 0x5c3   : > { %v4110_v35 = vpack.c.bf16 %v4109_v10, %v4108_v24  ;;  %v5065_v16 = vpack.c.bf16 %v4109_v10, %v4109_v10  ;;  %v4333_v10 = vld [vmem:[%s5597_s6 + $0x6] sm:$0x2] }
 0x5c4   : > { %v3551_v14 = vpack.c.bf16 %v3550_v37, %v3549_v1  ;;  %v5047_v56 = vpack.c.bf16 %v3550_v37, %v3550_v37  ;;  %v3827_v58 = vpop.permute.xlu1 %3826 }
 0x5c5   : > { %v4119_v59 = vrot.slane %v4110_v35, %v6601_v22  ;;  %v4126_v32 = vrot.slane %v5065_v16, %v6601_v22  ;;  %v3822_v41 = vpop.permute.xlu0 %3821  ;;  %v6613_v42 = vmul.f32 %v3827_v58, %v3814_v52  ;;  %v4339_v52 = vld [vmem:[%s5597_s6 + $0xa] sm:$0x2] }
 0x5c6   : > { %v6608_v3 = vrot.slane %v3551_v14, %v6601_v22  ;;  %v6611_v40 = vrot.slane %v5047_v56, %v6601_v22  ;;  %v6615_v38 = vmul.f32 %v3822_v41, %v3813_v5  ;;  %v4342_v5 = vld [vmem:[%s5597_s6 + $0xc] sm:$0x2]  ;;  %v4345_v14 = vld [vmem:[%s5597_s6 + $0xe] sm:$0x2]  ;;  %v4348_v41 = vld [vmem:[%s5597_s6 + $0x10] sm:$0x2] }
 0x5c7   : > { %v4127_v43 = vcombine.high %v4119_v59, %v4119_v59  ;;  %v4128_v19 = vcombine.high %v4126_v32, %v4126_v32  ;;  %v4135_v39 = vrot.slane %v4119_v59, %v6601_v22  ;;  %v4142_v20 = vrot.slane %v4126_v32, %v6601_v22 }
 0x5c8   : > { %v3568_v46 = vcombine.high %v6608_v3, %v6608_v3  ;;  %v3569_v47 = vcombine.high %v6611_v40, %v6611_v40  ;;  %v6625_v61 = vrot.slane %v6608_v3, %v6601_v22  ;;  %v6629_v48 = vrot.slane %v6611_v40, %v6601_v22 }
 0x5c9   : > { %v4149_v33 = vrot.slane %v4127_v43, %v6601_v22  ;;  %v4156_v62 = vrot.slane %v4128_v19, %v6601_v22  ;;  %v4157_v25 = vcombine.high %v4135_v39, %v4135_v39  ;;  %v4158_v11 = vcombine.high %v4142_v20, %v4142_v20  ;;  %v4351_v43 = vld [vmem:[%s5597_s6 + $0x12] sm:$0x2]  ;;  %v4354_v19 = vld [vmem:[%s5597_s6 + $0x14] sm:$0x2] }
 0x5ca   : > { %v4162_v50 = vunpack.i.h.s16 %v4135_v39  ;;  %v4170_v26 = vunpack.i.h.s16 %v4142_v20  ;;  %v5066_v27 = vpack.i.b16 %v4135_v39, %v4135_v39  ;;  %v5070_v36 = vpack.i.b16 %v4142_v20, %v4142_v20 }
 0x5cb   : > { %v4159_v8 = vcombine.high %v4149_v33, %v4149_v33  ;;  %v4160_v63 = vcombine.high %v4156_v62, %v4156_v62  ;;  %v4164_v12 = vunpack.i.h.s16 %v4149_v33  ;;  %v4166_v54 = vunpack.i.h.s16 %v4157_v25 }
 0x5cc   : > { %v4172_v45 = vunpack.i.h.s16 %v4156_v62  ;;  %v4174_v21 = vunpack.i.h.s16 %v4158_v11  ;;  %v4178_v57 = vpack.i.b16 %v4162_v50, %v4162_v50  ;;  %v5067_v49 = vpack.i.b16 %v4149_v33, %v4149_v33  ;;  %v4363_v50 = vld [vmem:[%s5597_s6 + $0x1a] sm:$0x2] }
 0x5cd   : > { %v4168_v9 = vunpack.i.h.s16 %v4159_v8  ;;  %v4176_v30 = vunpack.i.h.s16 %v4160_v63  ;;  %v4180_v23 = vpack.i.b16 %v4164_v12, %v4164_v12  ;;  %v5068_v31 = vpack.i.b16 %v4157_v25, %v4157_v25  ;;  %v4357_v25 = vld [vmem:[%s5597_s6 + $0x16] sm:$0x2]  ;;  %v4369_v12 = vld [vmem:[%s5597_s6 + $0x1e] sm:$0x2] }
 0x5ce   : > { %v4182_v28 = vpack.i.b16 %v4166_v54, %v4166_v54  ;;  %v5069_v15 = vpack.i.b16 %v4159_v8, %v4159_v8  ;;  %v4186_v17 = vpack.i.b16 %v4170_v26, %v4170_v26  ;;  %v5071_v4 = vpack.i.b16 %v4156_v62, %v4156_v62 }
 0x5cf   : > { %v4184_v60 = vpack.i.b16 %v4168_v9, %v4168_v9  ;;  %v6633_v34 = vpack.i.b16 %v4172_v45, %v4172_v45  ;;  %v5072_v55 = vpack.i.b16 %v4158_v11, %v4158_v11  ;;  %v6635_v29 = vpack.i.b16 %v4174_v21, %v4174_v21  ;;  %v4360_v11 = vld [vmem:[%s5597_s6 + $0x18] sm:$0x2] }
 0x5d0   : > { %v5073_v2 = vpack.i.b16 %v4160_v63, %v4160_v63  ;;  %v6645_v6 = vpack.i.b16 %v4176_v30, %v4176_v30  ;;  %v4199_v7 = vrot.slane %v5066_v27, %v6603_v18  ;;  %v4206_v24 = vrot.slane %v4178_v57, %v6603_v18  ;;  %v4366_v63 = vld [vmem:[%s5597_s6 + $0x1c] sm:$0x2] }
 0x5d1   : > { %v4213_v1 = vrot.slane %v5067_v49, %v6603_v18  ;;  %v4220_v37 = vrot.slane %v4180_v23, %v6603_v18  ;;  %v4227_v35 = vrot.slane %v5068_v31, %v6603_v18  ;;  %v4234_v16 = vrot.slane %v4182_v28, %v6603_v18 }
 0x5d2   : > { %v4241_v56 = vrot.slane %v5069_v15, %v6603_v18  ;;  %v4248_v58 = vrot.slane %v4184_v60, %v6603_v18  ;;  %v4255_v59 = vrot.slane %v5070_v36, %v6603_v18  ;;  %v4262_v32 = vrot.slane %v4186_v17, %v6603_v18 }
 0x5d3   : > { %v4269_v39 = vrot.slane %v5071_v4, %v6603_v18  ;;  %v4276_v20 = vrot.slane %v6633_v34, %v6603_v18  ;;  %v4283_v33 = vrot.slane %v5072_v55, %v6603_v18  ;;  %v4290_v62 = vrot.slane %v6635_v29, %v6603_v18 }
 0x5d4   : > { %v4297_v26 = vrot.slane %v5073_v2, %v6603_v18  ;;  %v4304_v27 = vrot.slane %v6645_v6, %v6603_v18  ;;  %v4325_v36 = vsel %vm6639_vm15, %v4199_v7, %v4324_v51  ;;  %v4328_v8 = vsel %vm6639_vm15, %v4206_v24, %v4327_v53 }
 0x5d5   : > { %4326 = vst [vmem:[%s5597_s6] sm:$0x2] %v4325_v36  ;;  %4329 = vst [vmem:[%s5597_s6 + $0x2] sm:$0x2] %v4328_v8  ;;  %v4331_v54 = vsel %vm6639_vm15, %v4213_v1, %v4330_v0  ;;  %v4334_v45 = vsel %vm6639_vm15, %v4220_v37, %v4333_v10  ;;  %v4337_v21 = vsel %vm6639_vm15, %v4227_v35, %v4336_v44  ;;  %v3603_v13 = vunpack.i.h.s16 %v6625_v61 }
 0x5d6   : > { %v4340_v57 = vsel %vm6639_vm15, %v4234_v16, %v4339_v52  ;;  %4332 = vst [vmem:[%s5597_s6 + $0x4] sm:$0x2] %v4331_v54  ;;  %4335 = vst [vmem:[%s5597_s6 + $0x6] sm:$0x2] %v4334_v45  ;;  %v4343_v49 = vsel %vm6639_vm15, %v4241_v56, %v4342_v5  ;;  %v4346_v9 = vsel %vm6639_vm15, %v4248_v58, %v4345_v14  ;;  %v3611_v53 = vunpack.i.h.s16 %v6629_v48  ;;  %v3780_v54 = vld [vmem:[%s5597_s6 + $0xa] sm:$0x1] }
 0x5d7   : > { %4338 = vst [vmem:[%s5597_s6 + $0x8] sm:$0x2] %v4337_v21  ;;  %4341 = vst [vmem:[%s5597_s6 + $0xa] sm:$0x2] %v4340_v57  ;;  %v4349_v30 = vsel %vm6639_vm15, %v4255_v59, %v4348_v41  ;;  %v4352_v23 = vsel %vm6639_vm15, %v4262_v32, %v4351_v43  ;;  %v4355_v31 = vsel %vm6639_vm15, %v4269_v39, %v4354_v19  ;;  %v3765_v43 = vld [vmem:[%s5597_s6] sm:$0x1] }
 0x5d8   : > { %4344 = vst [vmem:[%s5597_s6 + $0xc] sm:$0x2] %v4343_v49  ;;  %4347 = vst [vmem:[%s5597_s6 + $0xe] sm:$0x2] %v4346_v9  ;;  %v4358_v28 = vsel %vm6639_vm15, %v4276_v20, %v4357_v25  ;;  %v4361_v15 = vsel %vm6639_vm15, %v4283_v33, %v4360_v11  ;;  %v4364_v17 = vsel %vm6639_vm15, %v4290_v62, %v4363_v50  ;;  %v3768_v19 = vld [vmem:[%s5597_s6 + $0x2] sm:$0x1] }
 0x5d9   : > { %4350 = vst [vmem:[%s5597_s6 + $0x10] sm:$0x2] %v4349_v30  ;;  %4353 = vst [vmem:[%s5597_s6 + $0x12] sm:$0x2] %v4352_v23  ;;  %v4367_v4 = vsel %vm6639_vm15, %v4297_v26, %v4366_v63  ;;  %v4370_v60 = vsel %vm6639_vm15, %v4304_v27, %v4369_v12  ;;  %v3590_v34 = vrot.slane %v3568_v46, %v6601_v22  ;;  %v3771_v39 = vld [vmem:[%s5597_s6 + $0x4] sm:$0x1] }
 0x5da   : > { %4356 = vst [vmem:[%s5597_s6 + $0x14] sm:$0x2] %v4355_v31  ;;  %4359 = vst [vmem:[%s5597_s6 + $0x16] sm:$0x2] %v4358_v28  ;;  %v3597_v55 = vrot.slane %v3569_v47, %v6601_v22  ;;  %v3598_v29 = vcombine.high %v6625_v61, %v6625_v61  ;;  %v3599_v51 = vcombine.high %v6629_v48, %v6629_v48  ;;  %v3774_v11 = vld [vmem:[%s5597_s6 + $0x6] sm:$0x1] }
 0x5db   : > { %4362 = vst [vmem:[%s5597_s6 + $0x18] sm:$0x2] %v4361_v15  ;;  %4365 = vst [vmem:[%s5597_s6 + $0x1a] sm:$0x2] %v4364_v17  ;;  %v3600_v2 = vcombine.high %v3590_v34, %v3590_v34  ;;  %v3605_v46 = vunpack.i.h.s16 %v3590_v34  ;;  %v5048_v40 = vpack.i.b16 %v6625_v61, %v6625_v61  ;;  %v3619_v47 = vpack.i.b16 %v3603_v13, %v3603_v13  ;;  %v3777_v50 = vld [vmem:[%s5597_s6 + $0x8] sm:$0x1] }
 0x5dc   : > { %4368 = vst [vmem:[%s5597_s6 + $0x1c] sm:$0x2] %v4367_v4  ;;  %4371 = vst [vmem:[%s5597_s6 + $0x1e] sm:$0x2] %v4370_v60  ;;  %v3601_v3 = vcombine.high %v3597_v55, %v3597_v55  ;;  %v3613_v6 = vunpack.i.h.s16 %v3597_v55  ;;  %v3607_v7 = vunpack.i.h.s16 %v3598_v29  ;;  %v3615_v24 = vunpack.i.h.s16 %v3599_v51  ;;  %v3789_v26 = vld [vmem:[%s5597_s6 + $0x10] sm:$0x1] }
 0x5dd   : > { %v3609_v0 = vunpack.i.h.s16 %v3600_v2  ;;  %v5049_v44 = vpack.i.b16 %v3590_v34, %v3590_v34  ;;  %v3621_v1 = vpack.i.b16 %v3605_v46, %v3605_v46  ;;  %v5050_v37 = vpack.i.b16 %v3598_v29, %v3598_v29  ;;  %v3792_v27 = vld [vmem:[%s5597_s6 + $0x12] sm:$0x1]  ;;  %v3783_v45 = vld [vmem:[%s5597_s6 + $0xc] sm:$0x1]  ;;  %v3786_v21 = vld [vmem:[%s5597_s6 + $0xe] sm:$0x1] }
 0x5de   : > { %v3617_v10 = vunpack.i.h.s16 %v3601_v3  ;;  %v3623_v35 = vpack.i.b16 %v3607_v7, %v3607_v7  ;;  %v5051_v16 = vpack.i.b16 %v3600_v2, %v3600_v2  ;;  %v5052_v52 = vpack.i.b16 %v6629_v48, %v6629_v48  ;;  %v3795_v23 = vld [vmem:[%s5597_s6 + $0x14] sm:$0x1]  ;;  %v3798_v31 = vld [vmem:[%s5597_s6 + $0x16] sm:$0x1]  ;;  %v3801_v28 = vld [vmem:[%s5597_s6 + $0x18] sm:$0x1] }
 0x5df   : > { %v3625_v5 = vpack.i.b16 %v3609_v0, %v3609_v0  ;;  %v6746_v14 = vpack.i.b16 %v3611_v53, %v3611_v53  ;;  %v5053_v61 = vpack.i.b16 %v3597_v55, %v3597_v55  ;;  %v6748_v56 = vpack.i.b16 %v3613_v6, %v3613_v6  ;;  %v3804_v34 = vld [vmem:[%s5597_s6 + $0x1a] sm:$0x1]  ;;  %v3807_v55 = vld [vmem:[%s5597_s6 + $0x1c] sm:$0x1]  ;;  %v3810_v29 = vld [vmem:[%s5597_s6 + $0x1e] sm:$0x1]  ;;  %v4381_v0 = vpop.permute.xlu0 %4380 }
 0x5e0   : > { %v5054_v59 = vpack.i.b16 %v3599_v51, %v3599_v51  ;;  %v6756_v32 = vpack.i.b16 %v3615_v24, %v3615_v24  ;;  %v5055_v48 = vpack.i.b16 %v3601_v3, %v3601_v3  ;;  %v6758_v41 = vpack.i.b16 %v3617_v10, %v3617_v10  ;;  %v4373_v24 = vld [vmem:[#allocation4 + $0x38] sm:$0xff] }
 0x5e1   : > { %v3640_v20 = vrot.slane %v5048_v40, %v6603_v18  ;;  %v3647_v33 = vrot.slane %v3619_v47, %v6603_v18  ;;  %v3654_v62 = vrot.slane %v5049_v44, %v6603_v18  ;;  %v3661_v25 = vrot.slane %v3621_v1, %v6603_v18  ;;  %v4386_v40 = vpop.permute.xlu1 %4385  ;;  %v4372_v47 = vld [vmem:[#allocation4 + $0x30] sm:$0xff] }
 0x5e2   : > { %v3668_v36 = vrot.slane %v5050_v37, %v6603_v18  ;;  %v3675_v8 = vrot.slane %v3623_v35, %v6603_v18  ;;  %v3682_v63 = vrot.slane %v5051_v16, %v6603_v18  ;;  %v3689_v12 = vrot.slane %v3625_v5, %v6603_v18 }
 0x5e3   : > { %v3696_v57 = vrot.slane %v5052_v52, %v6603_v18  ;;  %v3703_v49 = vrot.slane %v6746_v14, %v6603_v18  ;;  %v3710_v9 = vrot.slane %v5053_v61, %v6603_v18  ;;  %v3717_v30 = vrot.slane %v6748_v56, %v6603_v18 }
 0x5e4   : > { %v3724_v15 = vrot.slane %v5054_v59, %v6603_v18  ;;  %v3731_v17 = vrot.slane %v6756_v32, %v6603_v18  ;;  %v3738_v4 = vrot.slane %v5055_v48, %v6603_v18  ;;  %v3745_v60 = vrot.slane %v6758_v41, %v6603_v18 }
 0x5e5   : > { %v3766_v51 = vsel %vm6752_vm2, %v3640_v20, %v3765_v43  ;;  %v3769_v13 = vsel %vm6752_vm2, %v3647_v33, %v3768_v19  ;;  %v3772_v53 = vsel %vm6752_vm2, %v3654_v62, %v3771_v39  ;;  %v3775_v2 = vsel %vm6752_vm2, %v3661_v25, %v3774_v11 }
 0x5e6   : > { %3767 = vst [vmem:[%s5597_s6] sm:$0x1] %v3766_v51  ;;  %3770 = vst [vmem:[%s5597_s6 + $0x2] sm:$0x1] %v3769_v13  ;;  %v3778_v3 = vsel %vm6752_vm2, %v3668_v36, %v3777_v50  ;;  %v3781_v46 = vsel %vm6752_vm2, %v3675_v8, %v3780_v54  ;;  %v3784_v6 = vsel %vm6752_vm2, %v3682_v63, %v3783_v45 }
 0x5e7   : > { %3773 = vst [vmem:[%s5597_s6 + $0x4] sm:$0x1] %v3772_v53  ;;  %3776 = vst [vmem:[%s5597_s6 + $0x6] sm:$0x1] %v3775_v2  ;;  %v3787_v7 = vsel %vm6752_vm2, %v3689_v12, %v3786_v21  ;;  %v3790_v10 = vsel %vm6752_vm2, %v3696_v57, %v3789_v26  ;;  %v3793_v44 = vsel %vm6752_vm2, %v3703_v49, %v3792_v27 }
 0x5e8   : > { %3779 = vst [vmem:[%s5597_s6 + $0x8] sm:$0x1] %v3778_v3  ;;  %3782 = vst [vmem:[%s5597_s6 + $0xa] sm:$0x1] %v3781_v46  ;;  %v3796_v1 = vsel %vm6752_vm2, %v3710_v9, %v3795_v23  ;;  %v3799_v37 = vsel %vm6752_vm2, %v3717_v30, %v3798_v31  ;;  %v3802_v35 = vsel %vm6752_vm2, %v3724_v15, %v3801_v28 }
 0x5e9   : > { %3785 = vst [vmem:[%s5597_s6 + $0xc] sm:$0x1] %v3784_v6  ;;  %3788 = vst [vmem:[%s5597_s6 + $0xe] sm:$0x1] %v3787_v7  ;;  %v3805_v16 = vsel %vm6752_vm2, %v3731_v17, %v3804_v34  ;;  %v3808_v52 = vsel %vm6752_vm2, %v3738_v4, %v3807_v55  ;;  %v3811_v5 = vsel %vm6752_vm2, %v3745_v60, %v3810_v29 }
 0x5ea   : > { %3791 = vst [vmem:[%s5597_s6 + $0x10] sm:$0x1] %v3790_v10  ;;  %3794 = vst [vmem:[%s5597_s6 + $0x12] sm:$0x1] %v3793_v44  ;;  %v5056_v14 = vpack.c.bf16 %v6613_v42, %v6613_v42  ;;  %v3831_v61 = vpack.c.bf16 %v6613_v42, %v6615_v38  ;;  %v4389_v56 = vmul.f32 %v4386_v40, %v4373_v24 }
 0x5eb   : > { %3797 = vst [vmem:[%s5597_s6 + $0x14] sm:$0x1] %v3796_v1  ;;  %3800 = vst [vmem:[%s5597_s6 + $0x16] sm:$0x1] %v3799_v37  ;;  %v4388_v59 = vmul.f32 %v4381_v0, %v4372_v47 }
 0x5ec   : > { %3803 = vst [vmem:[%s5597_s6 + $0x18] sm:$0x1] %v3802_v35  ;;  %3806 = vst [vmem:[%s5597_s6 + $0x1a] sm:$0x1] %v3805_v16  ;;  %v3847_v32 = vrot.slane %v5056_v14, %v6601_v22  ;;  %v3840_v48 = vrot.slane %v3831_v61, %v6601_v22  ;;  %v5074_v41 = vpack.c.bf16 %v4389_v56, %v4389_v56 }
 0x5ed   : > { %3809 = vst [vmem:[%s5597_s6 + $0x1c] sm:$0x1] %v3808_v52  ;;  %3812 = vst [vmem:[%s5597_s6 + $0x1e] sm:$0x1] %v3811_v5  ;;  %v4390_v43 = vpack.c.bf16 %v4389_v56, %v4388_v59 }
 0x5ee   : > { %v3849_v58 = vcombine.high %v3847_v32, %v3847_v32  ;;  %v3863_v19 = vrot.slane %v3847_v32, %v6601_v22  ;;  %v3848_v39 = vcombine.high %v3840_v48, %v3840_v48  ;;  %v6852_v20 = vrot.slane %v3840_v48, %v6601_v22  ;;  %v4044_v48 = vld [vmem:[%s5597_s6] sm:$0x1] }
 0x5ef   : > { %v6855_v33 = vrot.slane %v5074_v41, %v6601_v22  ;;  %v6858_v42 = vrot.slane %v4390_v43, %v6601_v22  ;;  %v4047_v41 = vld [vmem:[%s5597_s6 + $0x2] sm:$0x1]  ;;  %v4050_v43 = vld [vmem:[%s5597_s6 + $0x4] sm:$0x1] }
 0x5f0   : > { %v3877_v38 = vrot.slane %v3849_v58, %v6601_v22  ;;  %v3879_v62 = vcombine.high %v3863_v19, %v3863_v19  ;;  %v3891_v25 = vunpack.i.h.s16 %v3863_v19  ;;  %v5061_v11 = vpack.i.b16 %v3863_v19, %v3863_v19 }
 0x5f1   : > { %v6862_v50 = vrot.slane %v3848_v39, %v6601_v22  ;;  %v6866_v26 = vcombine.high %v6852_v20, %v6852_v20  ;;  %v3883_v27 = vunpack.i.h.s16 %v6852_v20  ;;  %v5057_v36 = vpack.i.b16 %v6852_v20, %v6852_v20  ;;  %v4068_v21 = vld [vmem:[%s5597_s6 + $0x10] sm:$0x1]  ;;  %v4071_v17 = vld [vmem:[%s5597_s6 + $0x12] sm:$0x1] }
 0x5f2   : > { %v3881_v63 = vcombine.high %v3877_v38, %v3877_v38  ;;  %v3893_v12 = vunpack.i.h.s16 %v3877_v38  ;;  %v3895_v54 = vunpack.i.h.s16 %v3879_v62  ;;  %v3907_v45 = vpack.i.b16 %v3891_v25, %v3891_v25  ;;  %v4074_v4 = vld [vmem:[%s5597_s6 + $0x14] sm:$0x1]  ;;  %v4077_v13 = vld [vmem:[%s5597_s6 + $0x16] sm:$0x1]  ;;  %v4062_v25 = vld [vmem:[%s5597_s6 + $0xc] sm:$0x1] }
 0x5f3   : > { %v5062_v57 = vpack.i.b16 %v3877_v38, %v3877_v38  ;;  %v5063_v49 = vpack.i.b16 %v3879_v62, %v3879_v62  ;;  %v3976_v9 = vrot.slane %v5061_v11, %v6603_v18  ;;  %v3880_v30 = vcombine.high %v6862_v50, %v6862_v50  ;;  %v4080_v60 = vld [vmem:[%s5597_s6 + $0x18] sm:$0x1]  ;;  %v4083_v53 = vld [vmem:[%s5597_s6 + $0x1a] sm:$0x1]  ;;  %v4053_v38 = vld [vmem:[%s5597_s6 + $0x6] sm:$0x1] }
 0x5f4   : > { %v3897_v23 = vunpack.i.h.s16 %v3881_v63  ;;  %v3909_v31 = vpack.i.b16 %v3893_v12, %v3893_v12  ;;  %v3911_v28 = vpack.i.b16 %v3895_v54, %v3895_v54  ;;  %v5064_v15 = vpack.i.b16 %v3881_v63, %v3881_v63  ;;  %v4086_v2 = vld [vmem:[%s5597_s6 + $0x1c] sm:$0x1]  ;;  %v4089_v0 = vld [vmem:[%s5597_s6 + $0x1e] sm:$0x1]  ;;  %v4056_v62 = vld [vmem:[%s5597_s6 + $0x8] sm:$0x1] }
 0x5f5   : > { %v3983_v34 = vrot.slane %v3907_v45, %v6603_v18  ;;  %v3990_v55 = vrot.slane %v5062_v57, %v6603_v18  ;;  %v4004_v29 = vrot.slane %v5063_v49, %v6603_v18  ;;  %v4069_v51 = vsel %vm6872_vm4, %v3976_v9, %v4068_v21  ;;  %v4059_v63 = vld [vmem:[%s5597_s6 + $0xa] sm:$0x1] }
 0x5f6   : > { %v3913_v3 = vpack.i.b16 %v3897_v23, %v3897_v23  ;;  %v3997_v46 = vrot.slane %v3909_v31, %v6603_v18  ;;  %v4011_v6 = vrot.slane %v3911_v28, %v6603_v18  ;;  %v4018_v7 = vrot.slane %v5064_v15, %v6603_v18  ;;  %4070 = vst [vmem:[%s5597_s6 + $0x10] sm:$0x1] %v4069_v51 }
 0x5f7   : > { %v4072_v24 = vsel %vm6872_vm4, %v3983_v34, %v4071_v17  ;;  %v4075_v40 = vsel %vm6872_vm4, %v3990_v55, %v4074_v4  ;;  %v4081_v47 = vsel %vm6872_vm4, %v4004_v29, %v4080_v60  ;;  %v3885_v10 = vunpack.i.h.s16 %v6862_v50 }
 0x5f8   : > { %v4025_v44 = vrot.slane %v3913_v3, %v6603_v18  ;;  %4073 = vst [vmem:[%s5597_s6 + $0x12] sm:$0x1] %v4072_v24  ;;  %4076 = vst [vmem:[%s5597_s6 + $0x14] sm:$0x1] %v4075_v40  ;;  %v4078_v1 = vsel %vm6872_vm4, %v3997_v46, %v4077_v13  ;;  %v4084_v37 = vsel %vm6872_vm4, %v4011_v6, %v4083_v53  ;;  %v3887_v16 = vunpack.i.h.s16 %v6866_v26  ;;  %v4627_v53 = vld [vmem:[%s5597_s6 + $0x10] sm:$0x2] }
 0x5f9   : > { %4082 = vst [vmem:[%s5597_s6 + $0x18] sm:$0x1] %v4081_v47  ;;  %v4087_v35 = vsel %vm6872_vm4, %v4018_v7, %v4086_v2  ;;  %4079 = vst [vmem:[%s5597_s6 + $0x16] sm:$0x1] %v4078_v1  ;;  %v3889_v52 = vunpack.i.h.s16 %v3880_v30  ;;  %v3899_v5 = vpack.i.b16 %v3883_v27, %v3883_v27  ;;  %v5058_v14 = vpack.i.b16 %v6862_v50, %v6862_v50  ;;  %v4630_v47 = vld [vmem:[%s5597_s6 + $0x12] sm:$0x2] }
 0x5fa   : > { %4085 = vst [vmem:[%s5597_s6 + $0x1a] sm:$0x1] %v4084_v37  ;;  %4088 = vst [vmem:[%s5597_s6 + $0x1c] sm:$0x1] %v4087_v35  ;;  %v4090_v61 = vsel %vm6872_vm4, %v4025_v44, %v4089_v0  ;;  %v3901_v56 = vpack.i.b16 %v3885_v10, %v3885_v10  ;;  %v5059_v59 = vpack.i.b16 %v6866_v26, %v6866_v26  ;;  %v4633_v0 = vld [vmem:[%s5597_s6 + $0x14] sm:$0x2] }
 0x5fb   : > { %v5060_v32 = vpack.i.b16 %v3880_v30, %v3880_v30  ;;  %4091 = vst [vmem:[%s5597_s6 + $0x1e] sm:$0x1] %v4090_v61  ;;  %v3903_v58 = vpack.i.b16 %v3887_v16, %v3887_v16  ;;  %v3905_v19 = vpack.i.b16 %v3889_v52, %v3889_v52  ;;  %v3920_v39 = vrot.slane %v5057_v36, %v6603_v18  ;;  %v4065_v36 = vld [vmem:[%s5597_s6 + $0xe] sm:$0x1]  ;;  %v4639_v10 = vld [vmem:[%s5597_s6 + $0x18] sm:$0x2] }
 0x5fc   : > { %v3927_v20 = vrot.slane %v3899_v5, %v6603_v18  ;;  %v3934_v11 = vrot.slane %v5058_v14, %v6603_v18  ;;  %v3941_v50 = vrot.slane %v3901_v56, %v6603_v18  ;;  %v3948_v26 = vrot.slane %v5059_v59, %v6603_v18  ;;  %v4636_v16 = vld [vmem:[%s5597_s6 + $0x16] sm:$0x2]  ;;  %v4642_v52 = vld [vmem:[%s5597_s6 + $0x1a] sm:$0x2]  ;;  %v4645_v5 = vld [vmem:[%s5597_s6 + $0x1c] sm:$0x2] }
 0x5fd   : > { %v3962_v27 = vrot.slane %v5060_v32, %v6603_v18  ;;  %v3955_v12 = vrot.slane %v3903_v58, %v6603_v18  ;;  %v3969_v54 = vrot.slane %v3905_v19, %v6603_v18  ;;  %v4045_v45 = vsel %vm6872_vm4, %v3920_v39, %v4044_v48  ;;  %v4648_v58 = vld [vmem:[%s5597_s6 + $0x1e] sm:$0x2] }
 0x5fe   : > { %v4048_v21 = vsel %vm6872_vm4, %v3927_v20, %v4047_v41  ;;  %4046 = vst [vmem:[%s5597_s6] sm:$0x1] %v4045_v45  ;;  %v4051_v57 = vsel %vm6872_vm4, %v3934_v11, %v4050_v43  ;;  %v4054_v49 = vsel %vm6872_vm4, %v3941_v50, %v4053_v38  ;;  %v4057_v9 = vsel %vm6872_vm4, %v3948_v26, %v4056_v62  ;;  %v4606_v45 = vld [vmem:[%s5597_s6 + $0x2] sm:$0x2] }
 0x5ff   : > { %4049 = vst [vmem:[%s5597_s6 + $0x2] sm:$0x1] %v4048_v21  ;;  %v4063_v30 = vsel %vm6872_vm4, %v3962_v27, %v4062_v25  ;;  %4052 = vst [vmem:[%s5597_s6 + $0x4] sm:$0x1] %v4051_v57  ;;  %v4060_v23 = vsel %vm6872_vm4, %v3955_v12, %v4059_v63  ;;  %v4066_v31 = vsel %vm6872_vm4, %v3969_v54, %v4065_v36  ;;  %v4603_v54 = vld [vmem:[%s5597_s6] sm:$0x2] }
 0x600   : > { %4055 = vst [vmem:[%s5597_s6 + $0x6] sm:$0x1] %v4054_v49  ;;  %4058 = vst [vmem:[%s5597_s6 + $0x8] sm:$0x1] %v4057_v9  ;;  %v4408_v28 = vcombine.high %v6855_v33, %v6855_v33  ;;  %v4422_v15 = vrot.slane %v6855_v33, %v6601_v22  ;;  %v4407_v17 = vcombine.high %v6858_v42, %v6858_v42  ;;  %v4609_v21 = vld [vmem:[%s5597_s6 + $0x4] sm:$0x2] }
 0x601   : > { %4064 = vst [vmem:[%s5597_s6 + $0xc] sm:$0x1] %v4063_v30  ;;  %4061 = vst [vmem:[%s5597_s6 + $0xa] sm:$0x1] %v4060_v23  ;;  %v6972_v4 = vrot.slane %v6858_v42, %v6601_v22  ;;  %v4612_v30 = vld [vmem:[%s5597_s6 + $0x6] sm:$0x2] }
 0x602   : > { %4067 = vst [vmem:[%s5597_s6 + $0xe] sm:$0x1] %v4066_v31  ;;  %v4436_v8 = vrot.slane %v4408_v28, %v6601_v22  ;;  %v4438_v60 = vcombine.high %v4422_v15, %v4422_v15  ;;  %v4450_v34 = vunpack.i.h.s16 %v4422_v15  ;;  %v5079_v55 = vpack.i.b16 %v4422_v15, %v4422_v15  ;;  %v4615_v23 = vld [vmem:[%s5597_s6 + $0x8] sm:$0x2]  ;;  %v4621_v31 = vld [vmem:[%s5597_s6 + $0xc] sm:$0x2] }
 0x603   : > { %v6976_v29 = vrot.slane %v4407_v17, %v6601_v22  ;;  %v6980_v33 = vcombine.high %v6972_v4, %v6972_v4  ;;  %v4442_v51 = vunpack.i.h.s16 %v6972_v4  ;;  %v5075_v42 = vpack.i.b16 %v6972_v4, %v6972_v4 }
 0x604   : > { %v4440_v2 = vcombine.high %v4436_v8, %v4436_v8  ;;  %v4452_v22 = vunpack.i.h.s16 %v4436_v8  ;;  %v4454_v3 = vunpack.i.h.s16 %v4438_v60  ;;  %v4466_v46 = vpack.i.b16 %v4450_v34, %v4450_v34 }
 0x605   : > { %v5080_v6 = vpack.i.b16 %v4436_v8, %v4436_v8  ;;  %v5081_v7 = vpack.i.b16 %v4438_v60, %v4438_v60  ;;  %v4535_v24 = vrot.slane %v5079_v55, %v6603_v18  ;;  %v4439_v40 = vcombine.high %v6976_v29, %v6976_v29  ;;  %v4618_v8 = vld [vmem:[%s5597_s6 + $0xa] sm:$0x2]  ;;  %v4624_v60 = vld [vmem:[%s5597_s6 + $0xe] sm:$0x2] }
 0x606   : > { %v4456_v44 = vunpack.i.h.s16 %v4440_v2  ;;  %v4468_v1 = vpack.i.b16 %v4452_v22, %v4452_v22  ;;  %v4470_v37 = vpack.i.b16 %v4454_v3, %v4454_v3  ;;  %v5082_v35 = vpack.i.b16 %v4440_v2, %v4440_v2 }
 0x607   : > { %v4542_v14 = vrot.slane %v4466_v46, %v6603_v18  ;;  %v4549_v61 = vrot.slane %v5080_v6, %v6603_v18  ;;  %v4563_v56 = vrot.slane %v5081_v7, %v6603_v18  ;;  %v4628_v59 = vsel %vm6986_vm6, %v4535_v24, %v4627_v53 }
 0x608   : > { %v4472_v32 = vpack.i.b16 %v4456_v44, %v4456_v44  ;;  %v4556_v48 = vrot.slane %v4468_v1, %v6603_v18  ;;  %v4570_v41 = vrot.slane %v4470_v37, %v6603_v18  ;;  %v4577_v43 = vrot.slane %v5082_v35, %v6603_v18  ;;  %4629 = vst [vmem:[%s5597_s6 + $0x10] sm:$0x2] %v4628_v59 }
 0x609   : > { %v4631_v19 = vsel %vm6986_vm6, %v4542_v14, %v4630_v47  ;;  %v4634_v39 = vsel %vm6986_vm6, %v4549_v61, %v4633_v0  ;;  %v4640_v20 = vsel %vm6986_vm6, %v4563_v56, %v4639_v10  ;;  %v4444_v38 = vunpack.i.h.s16 %v6976_v29 }
 0x60a   : > { %v4584_v62 = vrot.slane %v4472_v32, %v6603_v18  ;;  %4632 = vst [vmem:[%s5597_s6 + $0x12] sm:$0x2] %v4631_v19  ;;  %4635 = vst [vmem:[%s5597_s6 + $0x14] sm:$0x2] %v4634_v39  ;;  %v4637_v25 = vsel %vm6986_vm6, %v4556_v48, %v4636_v16  ;;  %v4643_v11 = vsel %vm6986_vm6, %v4570_v41, %v4642_v52  ;;  %v4446_v26 = vunpack.i.h.s16 %v6980_v33 }
 0x60b   : > { %4641 = vst [vmem:[%s5597_s6 + $0x18] sm:$0x2] %v4640_v20  ;;  %v4646_v50 = vsel %vm6986_vm6, %v4577_v43, %v4645_v5  ;;  %4638 = vst [vmem:[%s5597_s6 + $0x16] sm:$0x2] %v4637_v25  ;;  %v4448_v27 = vunpack.i.h.s16 %v4439_v40  ;;  %v4458_v63 = vpack.i.b16 %v4442_v51, %v4442_v51  ;;  %v5076_v36 = vpack.i.b16 %v6976_v29, %v6976_v29 }
 0x60c   : > { %4644 = vst [vmem:[%s5597_s6 + $0x1a] sm:$0x2] %v4643_v11  ;;  %4647 = vst [vmem:[%s5597_s6 + $0x1c] sm:$0x2] %v4646_v50  ;;  %v4649_v12 = vsel %vm6986_vm6, %v4584_v62, %v4648_v58  ;;  %v4460_v57 = vpack.i.b16 %v4444_v38, %v4444_v38  ;;  %v5077_v49 = vpack.i.b16 %v6980_v33, %v6980_v33 }
 0x60d   : > { %v5078_v9 = vpack.i.b16 %v4439_v40, %v4439_v40  ;;  %4650 = vst [vmem:[%s5597_s6 + $0x1e] sm:$0x2] %v4649_v12  ;;  %v4462_v28 = vpack.i.b16 %v4446_v26, %v4446_v26  ;;  %v4464_v15 = vpack.i.b16 %v4448_v27, %v4448_v27  ;;  %v4479_v17 = vrot.slane %v5075_v42, %v6603_v18 }
 0x60e   : > { %v4486_v4 = vrot.slane %v4458_v63, %v6603_v18  ;;  %v4493_v34 = vrot.slane %v5076_v36, %v6603_v18  ;;  %v4500_v55 = vrot.slane %v4460_v57, %v6603_v18  ;;  %v4507_v29 = vrot.slane %v5077_v49, %v6603_v18 }
 0x60f   : > { %v4521_v33 = vrot.slane %v5078_v9, %v6603_v18  ;;  %v4514_v51 = vrot.slane %v4462_v28, %v6603_v18  ;;  %v4528_v42 = vrot.slane %v4464_v15, %v6603_v18  ;;  %v4604_v53 = vsel %vm6986_vm6, %v4479_v17, %v4603_v54 }
 0x610   : > { %v4607_v2 = vsel %vm6986_vm6, %v4486_v4, %v4606_v45  ;;  %4605 = vst [vmem:[%s5597_s6] sm:$0x2] %v4604_v53  ;;  %v4610_v22 = vsel %vm6986_vm6, %v4493_v34, %v4609_v21  ;;  %v4613_v3 = vsel %vm6986_vm6, %v4500_v55, %v4612_v30  ;;  %v4616_v46 = vsel %vm6986_vm6, %v4507_v29, %v4615_v23 }
 0x611   : > { %4608 = vst [vmem:[%s5597_s6 + $0x2] sm:$0x2] %v4607_v2  ;;  %v4622_v18 = vsel %vm6986_vm6, %v4521_v33, %v4621_v31  ;;  %4611 = vst [vmem:[%s5597_s6 + $0x4] sm:$0x2] %v4610_v22  ;;  %v4619_v6 = vsel %vm6986_vm6, %v4514_v51, %v4618_v8  ;;  %v4625_v7 = vsel %vm6986_vm6, %v4528_v42, %v4624_v60 }
 0x612   : > { %4614 = vst [vmem:[%s5597_s6 + $0x6] sm:$0x2] %v4613_v3  ;;  %4617 = vst [vmem:[%s5597_s6 + $0x8] sm:$0x2] %v4616_v46 }
 0x613   : > { %4623 = vst [vmem:[%s5597_s6 + $0xc] sm:$0x2] %v4622_v18  ;;  %4620 = vst [vmem:[%s5597_s6 + $0xa] sm:$0x2] %v4619_v6 }
 0x614   : > { %4626 = vst [vmem:[%s5597_s6 + $0xe] sm:$0x2] %v4625_v7 }
 0x615 PF: > { %s13_s22 = sadd.s32 1, %s5385_s22   ;;  %s7205_s0 = sld [smem:[#allocation8_spill]] }
 0x616   : > { %p10_p4 = scmp.ge.s32.totalorder %s13_s22, 10   ;;  %s7206_s12 = smov %s5349_s13 }
 0x617   : > { %s7207_s13 = smov %s5506_s9  ;;  %s7208_s14 = smov %s5357_s15 }
 0x618   : > { %s7209_s15 = smov %s5503_s8  ;;  %s7210_s16 = smov %s5373_s19 }
 0x619   : > { %s7211_s17 = smov %s5377_s20  ;;  %s7212_s18 = smov %s5381_s21 }
 0x61a   : > { %s7213_s19 = smov %s7217_s23  ;;  %s7214_s20 = smov %s7221_s24 }
 0x61b   : > { %s7215_s21 = smov %s7205_s0  ;;  %12 = sbr.rel (!%p10_p4) target bundleno = 8 (0x8), region = 223 }

// kernel: moe_decoder_forward.7
= control target key start
LH: loop header
LB: loop body
LE: loop exit
PB: predicated region body
PF: predicated region fallthrough
CT: control target
= control target key end

     0   :  { %s1400_s0 = inlined_call_operand.vmem [shape: s32[8], index: 0, kind: input, shape index: {}]   ;;  %s1401_s3 = inlined_call_operand.vmem [shape: s32[64,1], index: 3, kind: input, shape index: {}]   ;;  %s1402_s4 = inlined_call_operand.vmem [shape: bf16[64,32], index: 4, kind: input, shape index: {}]   ;;  %s1403_s5 = inlined_call_operand.vmem [shape: bf16[4,32,64], index: 5, kind: input, shape index: {}]   ;;  %s1404_s6 = inlined_call_operand.vmem [shape: bf16[4,32,64], index: 6, kind: input, shape index: {}]   ;;  %s1405_s7 = inlined_call_operand.vmem [shape: bf16[4,64,32], index: 7, kind: input, shape index: {}]   ;;  %s1406_s8 = inlined_call_operand.vmem [shape: f32[64,32], index: 8, kind: output, shape index: {}]   ;;  %s1407_s1 = inlined_call_operand.vmem [shape: s32[8], index: 1, kind: input, shape index: {}]   ;;  %s1408_s2 = inlined_call_operand.vmem [shape: s32[8], index: 2, kind: input, shape index: {}]  }
   0x1   :  { %1409 = sst [smem:[#allocation8_spill]] %s1401_s3  ;;  %s13_s29 = sshll.u32 %s1400_s0, 4  ;;  %s14_s29 = int_to_ptr.vmem [resolvable:$true] %s13_s29 }
   0x2   :  { %1410 = sst [smem:[#allocation9_spill]] %s1402_s4  ;;  %s17_s10 = sshll.u32 %s1407_s1, 4  ;;  %s18_s10 = int_to_ptr.vmem [resolvable:$true] %s17_s10 }
   0x3   :  { %1411 = sst [smem:[#allocation10_spill]] %s1406_s8  ;;  %s1145_s11 = scalar_lea.vmem %s14_s29, 16 }
   0x4   :  { %p1146_p0 = scmp.ne.s32.totalorder %s14_s29, %s1145_s11  ;;  %p1150_p1 = scmp.lt.s32.totalorder %s14_s29, %s14_s29 }
   0x5   :  { %p1151_p2 = scmp.lt.s32.totalorder %s1145_s11, %s1145_s11 }
   0x7   :  { %p1152_p3 = por %p1151_p2, %p1150_p1 }
   0x9   :  { %p1153_p4 = pnand %p1152_p3, %p1146_p0 }
   0xb   :  { %1156 = shalt.err (!%p1153_p4)  }
   0xc   :  { %s1223_s12 = smov [#allocation3]   ;;  %s1157_s13 = scalar_lea.vmem %s18_s10, 16 }
   0xd   :  { %16 = dma.vmem_to_smem %s14_s29, 16, %s1223_s12, [#allocation2] }
   0xe   :  { %p1158_p5 = scmp.ne.s32.totalorder %s18_s10, %s1157_s13  ;;  %p1162_p6 = scmp.lt.s32.totalorder %s18_s10, %s18_s10 }
   0xf   :  { %p1163_p7 = scmp.lt.s32.totalorder %s1157_s13, %s1157_s13 }
  0x11   :  { %p1164_p8 = por %p1163_p7, %p1162_p6 }
  0x13   :  { %p1165_p9 = pnand %p1164_p8, %p1158_p5 }
  0x15   :  { %1168 = shalt.err (!%p1165_p9)  }
  0x16   :  { %s1224_s0 = smov [#allocation4]   ;;  %s21_s15 = sshll.u32 %s1408_s2, 4  ;;  %s22_s15 = int_to_ptr.vmem [resolvable:$true] %s21_s15 }
  0x17   :  { %20 = dma.vmem_to_smem %s18_s10, 16, %s1224_s0, [#allocation2] }
  0x18   :  { %s1169_s16 = scalar_lea.vmem %s22_s15, 16  ;;  %p1174_p11 = scmp.lt.s32.totalorder %s22_s15, %s22_s15 }
  0x19   :  { %p1170_p10 = scmp.ne.s32.totalorder %s22_s15, %s1169_s16  ;;  %p1175_p12 = scmp.lt.s32.totalorder %s1169_s16, %s1169_s16 }
  0x1b   :  { %p1176_p13 = por %p1175_p12, %p1174_p11 }
  0x1d   :  { %p1177_p0 = pnand %p1176_p13, %p1170_p10 }
  0x1f   :  { %1180 = shalt.err (!%p1177_p0)  }
  0x20   :  { %s1225_s17 = smov [#allocation5]  }
  0x21   :  { %24 = dma.vmem_to_smem %s22_s15, 16, %s1225_s17, [#allocation2] }
  0x22   :  { %1201 = dma.done.wait [#allocation2], 48 }
  0x23   :  { %1202 = vsyncadd [#allocation2], 4294967248 }
  0x24   :  { %26 = sfence }
  0x25   :  { %s1283_s18 = smov 0   ;;  %s1285_s19 = smov 0  }
  0x26   :  { %s1287_s20 = smov 0   ;;  %s1289_s2 = smov 0  }
  0x27   :  { %s1291_s21 = smov 0  }
  0x28 LB: > { %s47_s22 = sadd.s32 1, %s1213_s20  ;;  %s51_s23 = sadd.s32 1, %s1217_s2  ;;  %s1221_s21 = sphi %s1291_s21, %s32_s21   ;;  %s1217_s2 = sphi %s1289_s2, %s1420_s2   ;;  %s1213_s20 = sphi %s1287_s20, %s1419_s20   ;;  %s1209_s19 = sphi %s1285_s19, %s1418_s19   ;;  %s1205_s18 = sphi %s1283_s18, %s1417_s18  }
  0x29   : > { %p49_p1 = scmp.ge.s32.totalorder %s47_s22, 4  ;;  %p977_p2 = scmp.ge.s32.totalorder %s1221_s21, 1 }
  0x2a   : > { %p342_p3 = scmp.lt.s32.totalorder %s1221_s21, 9 }
  0x2b   : > { %s1422_s22 = smov (%p49_p1, %s47_s22), 0  ;;  %s1424_s23 = smov (!%p49_p1, %s51_s23), %s1217_s2 }
  0x2c   : > { %p343_p4 = pnand %p977_p2, %p342_p3  ;;  %p53_p5 = scmp.ge.s32.totalorder %s1424_s23, 2 }
  0x2d   : > { %s978_s24 = sshll.u32 (!%p343_p4), %s1209_s19, 2  ;;  %p490_p6 = scmp.eq.s32.totalorder (!%p343_p4), %s1205_s18, 0 }
  0x2e   : > { %s1426_s23 = smov (%p53_p5, %s1424_s23), 0  ;;  %346 = sbr.rel (%p343_p4) target bundleno = 562 (0x232), region = 40 }
  0x2f   : > { %1412 = sst [smem:[#allocation7_spill]] %s1426_s23  ;;  %p416_p7 = scmp.lt.s32.totalorder (!%p343_p4), %s978_s24, 7 }
  0x30   : > { %s1317_s25 = sadd.s32 (!%p343_p4), %s1205_s18, %s978_s24  ;;  %s1413_s3 = sld [smem:[#allocation8_spill]] (!%p343_p4) }
  0x31   : > { %s430_s26 = sld [smem:[#allocation3 + %s1317_s25]] (!%p343_p4) }
  0x32   : > { %s431_s27 = sld [smem:[#allocation4 + %s1317_s25]] (!%p343_p4) }
  0x33   : > { %s448_s28 = sld [smem:[#allocation3 + %s1317_s25]] (!%p343_p4) }
  0x34   : > { %s449_s29 = sld [smem:[#allocation4 + %s1317_s25]] (!%p343_p4) }
  0x35   : > { %s1428_s24 = smov (!%p416_p7, %s978_s24), 7  ;;  %s1414_s4 = sld [smem:[#allocation9_spill]]  ;;  %vm496_vm0 = vcmask (%p490_p6), 261120   ;;  %v1226_v0 = vmov (%p490_p6), 0.0  }
  0x36   : > { %s979_s30 = sshll.u32 %s1428_s24, 3  ;;  %s981_s9 = sshll.u32 %s1428_s24, 2 }
  0x37   : > { %s1326_s12 = scalar_lea.vmem %s1413_s3, %s979_s30  ;;  %s467_s14 = sld [smem:[#allocation4 + %s1317_s25]] }
  0x38   : > { %p432_p8 = scmp.lt.s32.totalorder %s430_s26, 3  ;;  %p434_p9 = scmp.lt.s32.totalorder %s431_s27, 0 }
  0x39   : > { %s466_s15 = sld [smem:[#allocation3 + %s1317_s25]]  ;;  %p450_p10 = scmp.lt.s32.totalorder %s448_s28, 3 }
  0x3a   : > { %s1415_s8 = sld [smem:[#allocation10_spill]]  ;;  %s1430_s26 = smov (!%p432_p8, %s430_s26), 3 }
  0x3b   : > { %s1331_s1 = scalar_lea.vmem %s1414_s4, %s981_s9  ;;  %s1432_s27 = smov (!%p434_p9, %s431_s27), 0 }
  0x3c   : > { %s983_s24 = sshll.u32 %s1430_s26, 2  ;;  %p452_p11 = scmp.lt.s32.totalorder %s449_s29, 0 }
  0x3d   : > { %s437_s10 = sadd.s32 %s983_s24, %s1432_s27  ;;  %s989_s0 = sshll.u32 %s467_s14, 3 }
  0x3e   : > { %s984_s11 = sshll.u32 %s437_s10, 2  ;;  %s1434_s28 = smov (!%p450_p10, %s448_s28), 3 }
  0x3f   : > { %s439_s9 = scalar_lea.vmem %s1403_s5, %s984_s11  ;;  %s1436_s29 = smov (!%p452_p11, %s449_s29), 0 }
  0x40   : > { %s1338_s19 = scalar_lea.vmem %s1415_s8, %s979_s30  ;;  %s986_s4 = sshll.u32 %s1434_s28, 2 }
  0x41   : > { %p469_p12 = scmp.lt.s32.totalorder %s466_s15, 3  ;;  %s455_s23 = sadd.s32 %s986_s4, %s1436_s29  ;;  %497 = vst.msk [vmem:[%s1338_s19] sm:$0xff] (%p490_p6), %vm496_vm0, %v1226_v0  ;;  %498 = vst.msk [vmem:[%s1338_s19 + $0x8] sm:$0xff] (%p490_p6), %vm496_vm0, %v1226_v0 }
  0x42   : > { %p471_p13 = scmp.lt.s32.totalorder %s989_s0, 7  ;;  %s987_s30 = sshll.u32 %s455_s23, 2  ;;  %499 = vst.msk [vmem:[%s1338_s19 + $0x10] sm:$0xff] (%p490_p6), %vm496_vm0, %v1226_v0  ;;  %500 = vst.msk [vmem:[%s1338_s19 + $0x18] sm:$0xff] (%p490_p6), %vm496_vm0, %v1226_v0 }
  0x43   : > { %s457_s26 = scalar_lea.vmem %s1404_s6, %s987_s30  ;;  %s1438_s15 = smov (!%p469_p12, %s466_s15), 3 }
  0x44   : > { %s1440_s0 = smov (!%p471_p13, %s989_s0), 7  ;;  %s990_s27 = sshll.u32 %s1438_s15, 3 }
  0x45   : > { %s474_s24 = sadd.s32 %s990_s27, %s1440_s0  ;;  %495 = sbr.rel (!%p490_p6) target bundleno = 76 (0x4c), region = 44 }
  0x46   : > { %s991_s10 = sshll.u32 %s474_s24, 2 }
  0x47   : > { %s1349_s14 = scalar_lea.vmem %s1405_s7, %s991_s10 }
  0x4c PF: > { %s503_s4 = sld [smem:[#allocation5 + %s1317_s25]] }
  0x52   : > { %p996_p0 = scmp.ne.s32.totalorder %s503_s4, 1 }
  0x53   : > { %v1119_v1 = vld [vmem:[%s439_s9] sm:$0xff] (!%p996_p0)   ;;  %v1120_v2 = vld [vmem:[%s439_s9 + $0x8] sm:$0xff] (!%p996_p0)   ;;  %vm555_vm1 = vcmask (!%p996_p0), 261120   ;;  %v1127_v9 = vld [vmem:[%s1349_s14 + $0x10] sm:$0xff] (!%p996_p0)   ;;  %v512_v13 = vstv (!%p996_p0), %s1205_s18  ;;  %v1227_v15 = vmov (!%p996_p0), 0   ;;  %v1228_v17 = vmov (!%p996_p0), 0.0  }
  0x54   : > { %507 = sbr.rel (%p996_p0) target bundleno = 562 (0x232), region = 48  ;;  %1034 = vmatprep.subr.bf16.mxu1 (!%p996_p0), %v1119_v1  ;;  %v1121_v3 = vld [vmem:[%s1331_s1] sm:$0xff] (!%p996_p0)   ;;  %v1122_v5 = vld [vmem:[%s1331_s1 + $0x8] sm:$0xff] (!%p996_p0)   ;;  %v1128_v10 = vld [vmem:[%s1349_s14 + $0x18] sm:$0xff] (!%p996_p0)   ;;  %1108 = vset.pattern.permute.xlu0 (!%p996_p0), %v1227_v15  ;;  %vm738_vm6 = vcmask (!%p996_p0), 523264  }
  0x55   : > { %1035 = vmatpush3.bf16.msra.mxu1 (!%p996_p0), %v1119_v1  ;;  %1038 = vmatprep.mubr.msk.bf16.mxu1 (!%p996_p0), %vm555_vm1, %v1121_v3  ;;  %v1123_v4 = vld [vmem:[%s457_s26] sm:$0xff] (!%p996_p0)   ;;  %v1124_v6 = vld [vmem:[%s457_s26 + $0x8] sm:$0xff] (!%p996_p0)   ;;  %v510_v14 = vld [vmem:[%s1326_s12 + $0x10] sm:$0xff] (!%p996_p0) }
  0x56   : > { %1036 = vmatprep.subr.bf16.mxu1 (!%p996_p0), %v1120_v2  ;;  %v1125_v7 = vld [vmem:[%s1349_s14] sm:$0xff] (!%p996_p0)   ;;  %v1126_v8 = vld [vmem:[%s1349_s14 + $0x8] sm:$0xff] (!%p996_p0)   ;;  %v511_v16 = vld [vmem:[%s1326_s12 + $0x18] sm:$0xff] (!%p996_p0)  ;;  %vm515_vm4 = vcmp.eq.s32.totalorder (!%p996_p0), %v510_v14, %v512_v13 }
  0x57   : > { %1050 = vmatprep.subr.bf16.mxu0 (!%p996_p0), %v1125_v7  ;;  %v508_v11 = vld [vmem:[%s1326_s12] sm:$0xff] (!%p996_p0)  ;;  %v509_v12 = vld [vmem:[%s1326_s12 + $0x8] sm:$0xff] (!%p996_p0)  ;;  %vm516_vm5 = vcmp.eq.s32.totalorder (!%p996_p0), %v511_v16, %v512_v13  ;;  %v999_v20 = vsel (!%p996_p0), %vm515_vm4, 1.0, %v1228_v17 }
  0x58   : > { %1051 = vmatpush3.bf16.msra.mxu0 (!%p996_p0), %v1125_v7  ;;  %vm513_vm2 = vcmp.eq.s32.totalorder (!%p996_p0), %v508_v11, %v512_v13  ;;  %vm514_vm3 = vcmp.eq.s32.totalorder (!%p996_p0), %v509_v12, %v512_v13  ;;  %v1000_v22 = vsel (!%p996_p0), %vm516_vm5, 1.0, %v1228_v17  ;;  %v795_v12 = vld [vmem:[%s1338_s19 + $0x8] sm:$0xff] (!%p996_p0)  ;;  %v796_v13 = vld [vmem:[%s1338_s19 + $0x10] sm:$0xff] (!%p996_p0) }
  0x59   : > { %1037 = vmatpush3.bf16.msra.mxu1 (!%p996_p0), %v1120_v2  ;;  %1052 = vmatprep.subr.bf16.mxu0 (!%p996_p0), %v1126_v8  ;;  %v997_v18 = vsel (!%p996_p0), %vm513_vm2, 1.0, %v1228_v17  ;;  %v998_v19 = vsel (!%p996_p0), %vm514_vm3, 1.0, %v1228_v17  ;;  %v1114_v23 = vpack.i.bf16 (!%p996_p0), %v1000_v22, %v999_v20 }
  0x5a   : > { %1042 = vmatprep.subr.bf16.mxu1 (!%p996_p0), %v1123_v4  ;;  %v1109_v21 = vpack.i.bf16 (!%p996_p0), %v998_v19, %v997_v18 }
  0x5c   : > { %1039 = vmatmul.mubr.msk.bf16.vlgmr.msra.gmra.mrb[0].mxu1 %vm555_vm1, %v1122_v5  ;;  %1053 = vmatpush3.bf16.msra.mxu0 %v1126_v8 }
  0x5d   : > { %1043 = vmatpush3.bf16.msra.mxu1 %v1123_v4  ;;  %1046 = vmatprep.mubr.msk.bf16.mxu1 %vm555_vm1, %v1121_v3  ;;  %v794_v4 = vld [vmem:[%s1338_s19] sm:$0xff] }
  0x5e   : > { %1044 = vmatprep.subr.bf16.mxu1 %v1124_v6  ;;  %1054 = vmatprep.subr.bf16.mxu0 %v1127_v9 }
  0x5f   : > { %1110 = vperm.xlu0 %1108, %v1109_v21  }
  0x60   : > { %1055 = vmatpush3.bf16.msra.mxu0 %v1127_v9 }
  0x61   : > { %1045 = vmatpush3.bf16.msra.mxu1 %v1124_v6  ;;  %1056 = vmatprep.subr.bf16.mxu0 %v1128_v10 }
  0x63   : > { %1115 = vperm.xlu0 %1108, %v1114_v23  }
  0x64   : > { %1047 = vmatmul.mubr.msk.bf16.vlgmr.msra.gmra.mrb[4].mxu1 %vm555_vm1, %v1122_v5  ;;  %1057 = vmatpush3.bf16.msra.mxu0 %v1128_v10  ;;  %v797_v10 = vld [vmem:[%s1338_s19 + $0x18] sm:$0xff] }
  0xde   : > { %v1111_v62 = vpop.permute.xlu0 %1110 }
  0xdf   : > { %v1112_v0 = vunpack.i.l.bf16 %v1111_v62  ;;  %v1113_v5 = vunpack.i.h.bf16 %v1111_v62 }
  0xe2   : > { %v1116_v63 = vpop.permute.xlu0 %1115 }
  0xe3   : > { %v1117_v1 = vunpack.i.l.bf16 %v1116_v63  ;;  %v1118_v6 = vunpack.i.h.bf16 %v1116_v63 }
 0x12f   : > { %v1040_v24 = vpop.f32.mrb[0].mxu1 }
 0x130   : > { %v678_v25 = vsub.f32 0.0, %v1040_v24  ;;  %v596_v26 = vpop.f32.mrb[1].mxu1 }
 0x131   : > { %v676_v27 = vsub.f32 0.0, %v596_v26  ;;  %v1041_v28 = vpop.f32.mrb[2].mxu1 }
 0x132   : > { %v684_v29 = vmul.f32 1.442695, %v678_v25  ;;  %v679_v30 = vsub.f32 0.0, %v1041_v28  ;;  %v599_v31 = vpop.f32.mrb[3].mxu1 }
 0x133   : > { %v680_v32 = vmul.f32 1.442695, %v676_v27  ;;  %v677_v33 = vsub.f32 0.0, %v599_v31 }
 0x134   : > { %1129 = vpow2.f32 %v684_v29  ;;  %v686_v34 = vmul.f32 1.442695, %v679_v30 }
 0x135   : > { %1131 = vpow2.f32 %v680_v32  ;;  %v682_v35 = vmul.f32 1.442695, %v677_v33 }
 0x136   : > { %1133 = vpow2.f32 %v686_v34 }
 0x137   : > { %1135 = vpow2.f32 %v682_v35  ;;  %v1048_v36 = vpop.f32.mrb[4].mxu1 }
 0x138   : > { %v661_v37 = vpop.f32.mrb[5].mxu1 }
 0x139   : > { %v1049_v38 = vpop.f32.mrb[6].mxu1 }
 0x13a   : > { %v664_v39 = vpop.f32.mrb[7].mxu1 }
 0x13e   : > { %v1130_v40 = vpop.eup %1129 }
 0x13f   : > { %v1132_v41 = vpop.eup %1131  ;;  %v690_v42 = vadd.f32 1.0, %v1130_v40 }
 0x140   : > { %v1134_v43 = vpop.eup %1133  ;;  %v688_v44 = vadd.f32 1.0, %v1132_v41 }
 0x141   : > { %v1136_v45 = vpop.eup %1135  ;;  %1137 = vrcp.f32 %v690_v42  ;;  %v691_v46 = vadd.f32 1.0, %v1134_v43 }
 0x142   : > { %1139 = vrcp.f32 %v688_v44  ;;  %v689_v47 = vadd.f32 1.0, %v1136_v45 }
 0x143   : > { %1141 = vrcp.f32 %v691_v46 }
 0x144   : > { %1143 = vrcp.f32 %v689_v47 }
 0x14b   : > { %v1138_v48 = vpop.eup %1137 }
 0x14c   : > { %v1140_v49 = vpop.eup %1139  ;;  %v698_v50 = vmul.f32 %v1138_v48, %v1040_v24 }
 0x14d   : > { %v1142_v51 = vpop.eup %1141  ;;  %v696_v52 = vmul.f32 %v1140_v49, %v596_v26 }
 0x14e   : > { %v1144_v53 = vpop.eup %1143  ;;  %v699_v54 = vmul.f32 %v1142_v51, %v1041_v28  ;;  %v702_v55 = vmul.f32 %v1048_v36, %v698_v50 }
 0x14f   : > { %v697_v56 = vmul.f32 %v1144_v53, %v599_v31  ;;  %v700_v57 = vmul.f32 %v696_v52, %v661_v37 }
 0x150   : > { %v703_v58 = vmul.f32 %v1049_v38, %v699_v54 }
 0x151   : > { %v701_v59 = vmul.f32 %v697_v56, %v664_v39 }
 0x152   : > { %v705_v60 = vpack.c.bf16 %v703_v58, %v702_v55 }
 0x153   : > { %v704_v61 = vpack.c.bf16 %v701_v59, %v700_v57 }
 0x155   : > { %1058 = vmatprep.mubr.msk.bf16.mxu0 %vm738_vm6, %v704_v61 }
 0x156   : > { %1059 = vmatmul.mubr.msk.bf16.vlgmr.msra.gmra.mrb[0].mxu0 %vm738_vm6, %v705_v60 }
 0x229   : > { %v1060_v2 = vpop.f32.mrb[0].mxu0 }
 0x22a   : > { %v779_v3 = vpop.f32.mrb[1].mxu0  ;;  %v820_v9 = vmul.f32 %v1117_v1, %v1060_v2 }
 0x22b   : > { %v818_v7 = vmul.f32 %v1112_v0, %v779_v3  ;;  %v1061_v8 = vpop.f32.mrb[2].mxu0 }
 0x22c   : > { %v782_v11 = vpop.f32.mrb[3].mxu0  ;;  %v821_v15 = vmul.f32 %v1118_v6, %v1061_v8  ;;  %v824_v18 = vadd.f32 %v820_v9, %v796_v13 }
 0x22d   : > { %v822_v14 = vadd.f32 %v818_v7, %v794_v4  ;;  %v819_v16 = vmul.f32 %v1113_v5, %v782_v11 }
 0x22e   : > { %v825_v19 = vadd.f32 %v821_v15, %v797_v10  ;;  %828 = vst.msk [vmem:[%s1338_s19 + $0x10] sm:$0xff] %vm555_vm1, %v824_v18 }
 0x22f   : > { %v823_v17 = vadd.f32 %v819_v16, %v795_v12  ;;  %826 = vst.msk [vmem:[%s1338_s19] sm:$0xff] %vm555_vm1, %v822_v14 }
 0x230   : > { %829 = vst.msk [vmem:[%s1338_s19 + $0x18] sm:$0xff] %vm555_vm1, %v825_v19 }
 0x231   : > { %827 = vst.msk [vmem:[%s1338_s19 + $0x8] sm:$0xff] %vm555_vm1, %v823_v17 }
 0x232 PF: > { %s32_s21 = sadd.s32 1, %s1221_s21   ;;  %s1416_s8 = sld [smem:[#allocation7_spill]] }
 0x233   : > { %p29_p1 = scmp.ge.s32.totalorder %s32_s21, 10   ;;  %s1417_s18 = smov %s1213_s20 }
 0x234   : > { %s1418_s19 = smov %s1217_s2  ;;  %s1419_s20 = smov %s1422_s22 }
 0x235   :  { %31 = sbr.rel (!%p29_p1) target bundleno = 40 (0x28), region = 90 }
 0x238   : > { %s1420_s2 = smov %s1416_s8 }

</bundles_post_ra>
